<compile_context>
chip_gen: v7x
topology: tpu7x:2x2x1
jax: 0.10.0
libtpu: 0.0.40
codegen_flags: <defaults>
</compile_context>

<pallas_src>
import functools

import jax
import jax.numpy as jnp
from jax import lax
from jax.experimental import pallas as pl
from jax.experimental.pallas import tpu as pltpu

BLOCK_SIZE = 32
N_EMBD = 64
N_HEAD = 4
HEAD_SIZE = N_EMBD // N_HEAD   # 16
DROPOUT = 0.2                  # identity in eval-mode forward


# ---------------------------------------------------------------------------
# Kernel: one batch BLOCK (BB elements) per grid step.
# ---------------------------------------------------------------------------
def _multihead_kernel(x_ref, wqkv_ref, bqkv_ref, wproj_ref, bproj_ref, o_ref,
                      *, n_head, head_size):
    bb, t, c = x_ref.shape
    r = bb * t

    # Flatten the batch block to (BB*T, C) rows for the big projections.
    x2 = x_ref[...].reshape(r, c).astype(jnp.bfloat16)

    # Fused QKV projection: one (C, 3C) bf16 weight push, f32 accumulation.
    # The sqrt(C) score scale is already folded into the q columns/bias host-side.
    qkv = jnp.dot(x2, wqkv_ref[...],
                  preferred_element_type=jnp.float32) + bqkv_ref[...]   # (R, 3C) f32

    # Causal mask, hoisted once and shared by all heads / batch elements.
    row = lax.broadcasted_iota(jnp.int32, (t, t), 0)
    col = lax.broadcasted_iota(jnp.int32, (t, t), 1)
    causal = row >= col
    neg = jnp.float32(-1e30)   # large finite negative (robust vs. -inf)

    y = None   # f32 output-projection accumulator, (R, C)
    for h in range(n_head):                          # static unrolled loop (n_head=4)
        q_h = qkv[:, h * head_size:(h + 1) * head_size]
        k_h = qkv[:, c + h * head_size: c + (h + 1) * head_size]
        v_h = qkv[:, 2 * c + h * head_size: 2 * c + (h + 1) * head_size]
        q_h = q_h.reshape(bb, t, head_size).astype(jnp.bfloat16)
        k_h = k_h.reshape(bb, t, head_size).astype(jnp.bfloat16)
        v_h = v_h.reshape(bb, t, head_size).astype(jnp.bfloat16)

        # Per-batch-element scores (no cross-batch attention): (BB, T, T) f32.
        wei = jnp.einsum("bqd,bkd->bqk", q_h, k_h,
                         preferred_element_type=jnp.float32)
        wei = jnp.where(causal, wei, neg)

        # Max-stabilized softmax with deferred normalization.
        m = jnp.max(wei, axis=-1, keepdims=True)
        p = jnp.exp(wei - m)                                    # f32, unnormalized
        denom = jnp.sum(p, axis=-1, keepdims=True)
        # TODO(synk): nn.Dropout(0.2) on attention weights — identity in eval mode.
        o_h = jnp.einsum("bqk,bkd->bqd", p.astype(jnp.bfloat16), v_h,
                         preferred_element_type=jnp.float32)    # (BB, T, hs)
        o_h = o_h * pl.reciprocal(denom, approx=True)           # EUP divide

        # Distribute the output projection per head (no concat).
        contrib = jnp.dot(o_h.reshape(r, head_size).astype(jnp.bfloat16),
                          wproj_ref[h * head_size:(h + 1) * head_size, :],
                          preferred_element_type=jnp.float32)   # (R, C) f32
        y = contrib if y is None else y + contrib

    y = y + bproj_ref[...]
    # TODO(synk): nn.Dropout(0.2) on projection output — identity in eval mode.
    o_ref[...] = y.reshape(bb, t, c)


def _pick_block_b(b, max_block=64):
    # Amortize per-grid-step overhead by batching rows, but keep >=2 grid steps
    # when possible so both v7x TensorCores get work.
    if b <= 1:
        return 1
    target = min(max_block, b // 2)
    for bb in range(target, 0, -1):
        if b % bb == 0:
            return bb
    return 1


# ---------------------------------------------------------------------------
# Wrapper (mirrors MultiHead.forward; per-head Linear weights packed as columns:
# w* has shape (C, n_head*head_size), i.e. x @ w == x @ W.T for each head).
# ---------------------------------------------------------------------------
def multihead_forward(params, x, block_b=None):
    B, T, C = x.shape
    assert C == N_EMBD and T <= BLOCK_SIZE
    if block_b is None:
        block_b = _pick_block_b(B)
    assert B % block_b == 0

    scale = jnp.float32(C) ** 0.5   # spec: wei = q @ k.T * C**0.5 (multiply)

    # Host-side packing: fold scale into q weights/bias, fuse QKV, cast weights to
    # bf16 once (f32 accumulation in-kernel); keep biases in f32.
    wqkv = jnp.concatenate(
        [params["wq"] * scale, params["wk"], params["wv"]], axis=1
    ).astype(jnp.bfloat16)                                       # (C, 3C)
    bqkv = jnp.concatenate(
        [params["bq"] * scale, params["bk"], params["bv"]], axis=1
    ).astype(jnp.float32)                                        # (1, 3C)
    wproj = params["wproj"].astype(jnp.bfloat16)                 # (C, C)
    bproj = params["bproj"].astype(jnp.float32)                  # (1, C)

    kernel = functools.partial(_multihead_kernel, n_head=N_HEAD,
                               head_size=HEAD_SIZE)

    def full2d(arr):
        return pl.BlockSpec(arr.shape, lambda b: (0, 0))

    return pl.pallas_call(
        kernel,
        out_shape=jax.ShapeDtypeStruct((B, T, C), jnp.float32),
        grid=(B // block_b,),
        in_specs=[
            pl.BlockSpec((block_b, T, C), lambda b: (b, 0, 0)),   # x batch block
            full2d(wqkv), full2d(bqkv), full2d(wproj), full2d(bproj),
        ],
        out_specs=pl.BlockSpec((block_b, T, C), lambda b: (b, 0, 0)),
        compiler_params=pltpu.CompilerParams(
            dimension_semantics=("parallel",)),
    )(x, wqkv, bqkv, wproj, bproj)


# ---------------------------------------------------------------------------
# Plain-JAX reference (same math as the PyTorch module in eval mode, mirroring
# the kernel's precision choices: bf16 matmul inputs, f32 accumulation), so the
# comparison isolates kernel logic from quantization.
# ---------------------------------------------------------------------------
def _ref_forward(params, x):
    B, T, C = x.shape
    scale = jnp.float32(C) ** 0.5

    def mm(a, w):
        return jnp.einsum("...c,cd->...d", a.astype(jnp.bfloat16),
                          w.astype(jnp.bfloat16),
                          preferred_element_type=jnp.float32)

    q = mm(x, params["wq"]) * scale + params["bq"] * scale
    k = mm(x, params["wk"]) + params["bk"]
    v = mm(x, params["wv"]) + params["bv"]
    tril = jnp.tril(jnp.ones((T, T)))
    outs = []
    for h in range(N_HEAD):
        sl = slice(h * HEAD_SIZE, (h + 1) * HEAD_SIZE)
        qh, kh, vh = q[..., sl], k[..., sl], v[..., sl]
        wei = jnp.einsum("btd,bsd->bts", qh.astype(jnp.bfloat16),
                         kh.astype(jnp.bfloat16),
                         preferred_element_type=jnp.float32)
        wei = jnp.where(tril == 0, -1e30, wei)
        wei = jax.nn.softmax(wei, axis=-1)
        outs.append(jnp.einsum("bts,bsd->btd", wei.astype(jnp.bfloat16),
                               vh.astype(jnp.bfloat16),
                               preferred_element_type=jnp.float32))
    cat = jnp.concatenate(outs, axis=-1)
    return mm(cat, params["wproj"]) + params["bproj"]


# ---------------------------------------------------------------------------
if __name__ == "__main__":
    B, T = 8, BLOCK_SIZE   # (8, 32, 64): BB=4 -> grid=(2,), 128 rows per step

    key = jax.random.PRNGKey(0)
    keys = jax.random.split(key, 9)

    def init(k, shape, fan_in):
        bound = 1.0 / (fan_in ** 0.5)   # nn.Linear default uniform init range
        return jax.random.uniform(k, shape, jnp.float32, -bound, bound)

    params = {
        "wq": init(keys[0], (N_EMBD, N_HEAD * HEAD_SIZE), N_EMBD),
        "bq": init(keys[1], (1, N_HEAD * HEAD_SIZE), N_EMBD),
        "wk": init(keys[2], (N_EMBD, N_HEAD * HEAD_SIZE), N_EMBD),
        "bk": init(keys[3], (1, N_HEAD * HEAD_SIZE), N_EMBD),
        "wv": init(keys[4], (N_EMBD, N_HEAD * HEAD_SIZE), N_EMBD),
        "bv": init(keys[5], (1, N_HEAD * HEAD_SIZE), N_EMBD),
        "wproj": init(keys[6], (N_EMBD, N_EMBD), N_EMBD),
        "bproj": init(keys[7], (1, N_EMBD), N_EMBD),
    }
    x = jax.random.normal(keys[8], (B, T, N_EMBD), dtype=jnp.float32)

    out = multihead_forward(params, x)
    out = jax.block_until_ready(out)
    assert out.shape == (B, T, N_EMBD)

    ref = _ref_forward(params, x)
    max_err = float(jnp.max(jnp.abs(out - ref)))
    assert jnp.allclose(out, ref, atol=5e-2, rtol=5e-2), f"max_err={max_err}"

    print("KERNEL_OK")
</pallas_src>

<mosaic_0001>
module attributes {stable_mosaic.version = 11 : i64} {
  func.func @_multihead_kernel(%arg0: i32, %arg1: memref<4x32x64xf32, #tpu.memory_space<vmem>>, %arg2: memref<64x192xbf16, #tpu.memory_space<vmem>>, %arg3: memref<1x192xf32, #tpu.memory_space<vmem>>, %arg4: memref<64x64xbf16, #tpu.memory_space<vmem>>, %arg5: memref<1x64xf32, #tpu.memory_space<vmem>>, %arg6: memref<4x32x64xf32, #tpu.memory_space<vmem>>) attributes {dimension_semantics = [#tpu.dimension_semantics<parallel>], iteration_bounds = array<i64: 2>, scalar_prefetch = 0 : i64, scratch_operands = 0 : i64, tpu.core_type = #tpu.core_type<tc>, window_params = [{transform_indices = @transform_0, window_bounds = array<i64: 4, 32, 64>}, {pipeline_mode = #tpu.pipeline_mode<synchronous>, transform_indices = @transform_1, window_bounds = array<i64: 64, 192>}, {pipeline_mode = #tpu.pipeline_mode<synchronous>, transform_indices = @transform_2, window_bounds = array<i64: 1, 192>}, {pipeline_mode = #tpu.pipeline_mode<synchronous>, transform_indices = @transform_3, window_bounds = array<i64: 64, 64>}, {pipeline_mode = #tpu.pipeline_mode<synchronous>, transform_indices = @transform_4, window_bounds = array<i64: 1, 64>}, {transform_indices = @transform_5, window_bounds = array<i64: 4, 32, 64>}]} {
    %c0 = arith.constant 0 : index
    %c0_0 = arith.constant 0 : index
    %c0_1 = arith.constant 0 : index
    %0 = vector.load %arg1[%c0, %c0_0, %c0_1] : memref<4x32x64xf32, #tpu.memory_space<vmem>>, vector<4x32x64xf32>
    %1 = vector.shape_cast %0 : vector<4x32x64xf32> to vector<128x64xf32>
    %2 = arith.truncf %1 : vector<128x64xf32> to vector<128x64xbf16>
    %c0_2 = arith.constant 0 : index
    %c0_3 = arith.constant 0 : index
    %3 = vector.load %arg2[%c0_2, %c0_3] : memref<64x192xbf16, #tpu.memory_space<vmem>>, vector<64x192xbf16>
    %cst = arith.constant dense<0.000000e+00> : vector<128x192xf32>
    %4 = tpu.matmul %2, %3, %cst {dimension_numbers = #tpu.dot_dimension_numbers<[1], [0], [0], [1], [0, 0, 1, 1], [], []>} : vector<128x64xbf16>, vector<64x192xbf16>, vector<128x192xf32> -> vector<128x192xf32>
    %c0_4 = arith.constant 0 : index
    %c0_5 = arith.constant 0 : index
    %5 = vector.load %arg3[%c0_4, %c0_5] : memref<1x192xf32, #tpu.memory_space<vmem>>, vector<1x192xf32>
    %6 = vector.broadcast %5 : vector<1x192xf32> to vector<128x192xf32>
    %7 = arith.addf %4, %6 : vector<128x192xf32>
    %8 = tpu.iota {dimensions = array<i32: 0>} : vector<32x32xi32>
    %9 = tpu.iota {dimensions = array<i32: 1>} : vector<32x32xi32>
    %10 = arith.cmpi sge, %8, %9 : vector<32x32xi32>
    %11 = vector.extract_strided_slice %7 {offsets = [0, 0], sizes = [128, 16], strides = [1, 1]} : vector<128x192xf32> to vector<128x16xf32>
    %12 = vector.extract_strided_slice %7 {offsets = [0, 64], sizes = [128, 16], strides = [1, 1]} : vector<128x192xf32> to vector<128x16xf32>
    %13 = vector.extract_strided_slice %7 {offsets = [0, 128], sizes = [128, 16], strides = [1, 1]} : vector<128x192xf32> to vector<128x16xf32>
    %14 = vector.shape_cast %11 : vector<128x16xf32> to vector<4x32x16xf32>
    %15 = arith.truncf %14 : vector<4x32x16xf32> to vector<4x32x16xbf16>
    %16 = vector.shape_cast %12 : vector<128x16xf32> to vector<4x32x16xf32>
    %17 = arith.truncf %16 : vector<4x32x16xf32> to vector<4x32x16xbf16>
    %18 = vector.shape_cast %13 : vector<128x16xf32> to vector<4x32x16xf32>
    %19 = arith.truncf %18 : vector<4x32x16xf32> to vector<4x32x16xbf16>
    "tpu.trace_start"() <{level = 10 : i32, message = "bqd,bkd->bqk"}> : () -> ()
    %cst_6 = arith.constant dense<0.000000e+00> : vector<4x32x32xf32>
    %20 = tpu.matmul %15, %17, %cst_6 {dimension_numbers = #tpu.dot_dimension_numbers<[2], [2], [1], [1], [0, 0, 0, 1, 1, 1], [0], [0]>} : vector<4x32x16xbf16>, vector<4x32x16xbf16>, vector<4x32x32xf32> -> vector<4x32x32xf32>
    %cst_7 = arith.constant -1.000000e+30 : f32
    "tpu.trace_stop"() : () -> ()
    %21 = vector.shape_cast %10 : vector<32x32xi1> to vector<1x32x32xi1>
    %22 = vector.broadcast %21 : vector<1x32x32xi1> to vector<4x32x32xi1>
    %23 = vector.broadcast %cst_7 : f32 to vector<4x32x32xf32>
    %24 = arith.select %22, %20, %23 : vector<4x32x32xi1>, vector<4x32x32xf32>
    %cst_8 = arith.constant dense<0xFF800000> : vector<4x32xf32>
    %25 = vector.multi_reduction <maximumf>, %24, %cst_8 [2] : vector<4x32x32xf32> to vector<4x32xf32>
    %26 = vector.shape_cast %25 : vector<4x32xf32> to vector<4x32x1xf32>
    %27 = vector.broadcast %26 : vector<4x32x1xf32> to vector<4x32x32xf32>
    %28 = arith.subf %24, %27 : vector<4x32x32xf32>
    %29 = math.exp %28 : vector<4x32x32xf32>
    %cst_9 = arith.constant dense<0.000000e+00> : vector<4x32xf32>
    %30 = vector.multi_reduction <add>, %29, %cst_9 [2] : vector<4x32x32xf32> to vector<4x32xf32>
    %31 = vector.shape_cast %30 : vector<4x32xf32> to vector<4x32x1xf32>
    %32 = arith.truncf %29 : vector<4x32x32xf32> to vector<4x32x32xbf16>
    "tpu.trace_start"() <{level = 10 : i32, message = "bqk,bkd->bqd"}> : () -> ()
    %cst_10 = arith.constant dense<0.000000e+00> : vector<4x32x16xf32>
    %33 = tpu.matmul %32, %19, %cst_10 {dimension_numbers = #tpu.dot_dimension_numbers<[2], [1], [1], [2], [0, 0, 0, 1, 1, 2], [0], [0]>} : vector<4x32x32xbf16>, vector<4x32x16xbf16>, vector<4x32x16xf32> -> vector<4x32x16xf32>
    "tpu.trace_stop"() : () -> ()
    %34 = tpu.reciprocal %31 {approx = true} : vector<4x32x1xf32> -> vector<4x32x1xf32>
    %35 = vector.broadcast %34 : vector<4x32x1xf32> to vector<4x32x16xf32>
    %36 = arith.mulf %33, %35 : vector<4x32x16xf32>
    %37 = vector.shape_cast %36 : vector<4x32x16xf32> to vector<128x16xf32>
    %38 = arith.truncf %37 : vector<128x16xf32> to vector<128x16xbf16>
    %c0_11 = arith.constant 0 : index
    %c0_12 = arith.constant 0 : index
    %39 = vector.load %arg4[%c0_11, %c0_12] : memref<64x64xbf16, #tpu.memory_space<vmem>>, vector<16x64xbf16>
    %cst_13 = arith.constant dense<0.000000e+00> : vector<128x64xf32>
    %40 = tpu.matmul %38, %39, %cst_13 {dimension_numbers = #tpu.dot_dimension_numbers<[1], [0], [0], [1], [0, 0, 1, 1], [], []>} : vector<128x16xbf16>, vector<16x64xbf16>, vector<128x64xf32> -> vector<128x64xf32>
    %41 = vector.extract_strided_slice %7 {offsets = [0, 16], sizes = [128, 16], strides = [1, 1]} : vector<128x192xf32> to vector<128x16xf32>
    %42 = vector.extract_strided_slice %7 {offsets = [0, 80], sizes = [128, 16], strides = [1, 1]} : vector<128x192xf32> to vector<128x16xf32>
    %43 = vector.extract_strided_slice %7 {offsets = [0, 144], sizes = [128, 16], strides = [1, 1]} : vector<128x192xf32> to vector<128x16xf32>
    %44 = vector.shape_cast %41 : vector<128x16xf32> to vector<4x32x16xf32>
    %45 = arith.truncf %44 : vector<4x32x16xf32> to vector<4x32x16xbf16>
    %46 = vector.shape_cast %42 : vector<128x16xf32> to vector<4x32x16xf32>
    %47 = arith.truncf %46 : vector<4x32x16xf32> to vector<4x32x16xbf16>
    %48 = vector.shape_cast %43 : vector<128x16xf32> to vector<4x32x16xf32>
    %49 = arith.truncf %48 : vector<4x32x16xf32> to vector<4x32x16xbf16>
    "tpu.trace_start"() <{level = 10 : i32, message = "bqd,bkd->bqk"}> : () -> ()
    %cst_14 = arith.constant dense<0.000000e+00> : vector<4x32x32xf32>
    %50 = tpu.matmul %45, %47, %cst_14 {dimension_numbers = #tpu.dot_dimension_numbers<[2], [2], [1], [1], [0, 0, 0, 1, 1, 1], [0], [0]>} : vector<4x32x16xbf16>, vector<4x32x16xbf16>, vector<4x32x32xf32> -> vector<4x32x32xf32>
    %cst_15 = arith.constant -1.000000e+30 : f32
    "tpu.trace_stop"() : () -> ()
    %51 = vector.shape_cast %10 : vector<32x32xi1> to vector<1x32x32xi1>
    %52 = vector.broadcast %51 : vector<1x32x32xi1> to vector<4x32x32xi1>
    %53 = vector.broadcast %cst_15 : f32 to vector<4x32x32xf32>
    %54 = arith.select %52, %50, %53 : vector<4x32x32xi1>, vector<4x32x32xf32>
    %cst_16 = arith.constant dense<0xFF800000> : vector<4x32xf32>
    %55 = vector.multi_reduction <maximumf>, %54, %cst_16 [2] : vector<4x32x32xf32> to vector<4x32xf32>
    %56 = vector.shape_cast %55 : vector<4x32xf32> to vector<4x32x1xf32>
    %57 = vector.broadcast %56 : vector<4x32x1xf32> to vector<4x32x32xf32>
    %58 = arith.subf %54, %57 : vector<4x32x32xf32>
    %59 = math.exp %58 : vector<4x32x32xf32>
    %cst_17 = arith.constant dense<0.000000e+00> : vector<4x32xf32>
    %60 = vector.multi_reduction <add>, %59, %cst_17 [2] : vector<4x32x32xf32> to vector<4x32xf32>
    %61 = vector.shape_cast %60 : vector<4x32xf32> to vector<4x32x1xf32>
    %62 = arith.truncf %59 : vector<4x32x32xf32> to vector<4x32x32xbf16>
    "tpu.trace_start"() <{level = 10 : i32, message = "bqk,bkd->bqd"}> : () -> ()
    %cst_18 = arith.constant dense<0.000000e+00> : vector<4x32x16xf32>
    %63 = tpu.matmul %62, %49, %cst_18 {dimension_numbers = #tpu.dot_dimension_numbers<[2], [1], [1], [2], [0, 0, 0, 1, 1, 2], [0], [0]>} : vector<4x32x32xbf16>, vector<4x32x16xbf16>, vector<4x32x16xf32> -> vector<4x32x16xf32>
    "tpu.trace_stop"() : () -> ()
    %64 = tpu.reciprocal %61 {approx = true} : vector<4x32x1xf32> -> vector<4x32x1xf32>
    %65 = vector.broadcast %64 : vector<4x32x1xf32> to vector<4x32x16xf32>
    %66 = arith.mulf %63, %65 : vector<4x32x16xf32>
    %67 = vector.shape_cast %66 : vector<4x32x16xf32> to vector<128x16xf32>
    %68 = arith.truncf %67 : vector<128x16xf32> to vector<128x16xbf16>
    %c16 = arith.constant 16 : index
    %c0_19 = arith.constant 0 : index
    %69 = vector.load %arg4[%c16, %c0_19] : memref<64x64xbf16, #tpu.memory_space<vmem>>, vector<16x64xbf16>
    %cst_20 = arith.constant dense<0.000000e+00> : vector<128x64xf32>
    %70 = tpu.matmul %68, %69, %cst_20 {dimension_numbers = #tpu.dot_dimension_numbers<[1], [0], [0], [1], [0, 0, 1, 1], [], []>} : vector<128x16xbf16>, vector<16x64xbf16>, vector<128x64xf32> -> vector<128x64xf32>
    %71 = arith.addf %40, %70 : vector<128x64xf32>
    %72 = vector.extract_strided_slice %7 {offsets = [0, 32], sizes = [128, 16], strides = [1, 1]} : vector<128x192xf32> to vector<128x16xf32>
    %73 = vector.extract_strided_slice %7 {offsets = [0, 96], sizes = [128, 16], strides = [1, 1]} : vector<128x192xf32> to vector<128x16xf32>
    %74 = vector.extract_strided_slice %7 {offsets = [0, 160], sizes = [128, 16], strides = [1, 1]} : vector<128x192xf32> to vector<128x16xf32>
    %75 = vector.shape_cast %72 : vector<128x16xf32> to vector<4x32x16xf32>
    %76 = arith.truncf %75 : vector<4x32x16xf32> to vector<4x32x16xbf16>
    %77 = vector.shape_cast %73 : vector<128x16xf32> to vector<4x32x16xf32>
    %78 = arith.truncf %77 : vector<4x32x16xf32> to vector<4x32x16xbf16>
    %79 = vector.shape_cast %74 : vector<128x16xf32> to vector<4x32x16xf32>
    %80 = arith.truncf %79 : vector<4x32x16xf32> to vector<4x32x16xbf16>
    "tpu.trace_start"() <{level = 10 : i32, message = "bqd,bkd->bqk"}> : () -> ()
    %cst_21 = arith.constant dense<0.000000e+00> : vector<4x32x32xf32>
    %81 = tpu.matmul %76, %78, %cst_21 {dimension_numbers = #tpu.dot_dimension_numbers<[2], [2], [1], [1], [0, 0, 0, 1, 1, 1], [0], [0]>} : vector<4x32x16xbf16>, vector<4x32x16xbf16>, vector<4x32x32xf32> -> vector<4x32x32xf32>
    %cst_22 = arith.constant -1.000000e+30 : f32
    "tpu.trace_stop"() : () -> ()
    %82 = vector.shape_cast %10 : vector<32x32xi1> to vector<1x32x32xi1>
    %83 = vector.broadcast %82 : vector<1x32x32xi1> to vector<4x32x32xi1>
    %84 = vector.broadcast %cst_22 : f32 to vector<4x32x32xf32>
    %85 = arith.select %83, %81, %84 : vector<4x32x32xi1>, vector<4x32x32xf32>
    %cst_23 = arith.constant dense<0xFF800000> : vector<4x32xf32>
    %86 = vector.multi_reduction <maximumf>, %85, %cst_23 [2] : vector<4x32x32xf32> to vector<4x32xf32>
    %87 = vector.shape_cast %86 : vector<4x32xf32> to vector<4x32x1xf32>
    %88 = vector.broadcast %87 : vector<4x32x1xf32> to vector<4x32x32xf32>
    %89 = arith.subf %85, %88 : vector<4x32x32xf32>
    %90 = math.exp %89 : vector<4x32x32xf32>
    %cst_24 = arith.constant dense<0.000000e+00> : vector<4x32xf32>
    %91 = vector.multi_reduction <add>, %90, %cst_24 [2] : vector<4x32x32xf32> to vector<4x32xf32>
    %92 = vector.shape_cast %91 : vector<4x32xf32> to vector<4x32x1xf32>
    %93 = arith.truncf %90 : vector<4x32x32xf32> to vector<4x32x32xbf16>
    "tpu.trace_start"() <{level = 10 : i32, message = "bqk,bkd->bqd"}> : () -> ()
    %cst_25 = arith.constant dense<0.000000e+00> : vector<4x32x16xf32>
    %94 = tpu.matmul %93, %80, %cst_25 {dimension_numbers = #tpu.dot_dimension_numbers<[2], [1], [1], [2], [0, 0, 0, 1, 1, 2], [0], [0]>} : vector<4x32x32xbf16>, vector<4x32x16xbf16>, vector<4x32x16xf32> -> vector<4x32x16xf32>
    "tpu.trace_stop"() : () -> ()
    %95 = tpu.reciprocal %92 {approx = true} : vector<4x32x1xf32> -> vector<4x32x1xf32>
    %96 = vector.broadcast %95 : vector<4x32x1xf32> to vector<4x32x16xf32>
    %97 = arith.mulf %94, %96 : vector<4x32x16xf32>
    %98 = vector.shape_cast %97 : vector<4x32x16xf32> to vector<128x16xf32>
    %99 = arith.truncf %98 : vector<128x16xf32> to vector<128x16xbf16>
    %c32 = arith.constant 32 : index
    %c0_26 = arith.constant 0 : index
    %100 = vector.load %arg4[%c32, %c0_26] : memref<64x64xbf16, #tpu.memory_space<vmem>>, vector<16x64xbf16>
    %cst_27 = arith.constant dense<0.000000e+00> : vector<128x64xf32>
    %101 = tpu.matmul %99, %100, %cst_27 {dimension_numbers = #tpu.dot_dimension_numbers<[1], [0], [0], [1], [0, 0, 1, 1], [], []>} : vector<128x16xbf16>, vector<16x64xbf16>, vector<128x64xf32> -> vector<128x64xf32>
    %102 = arith.addf %71, %101 : vector<128x64xf32>
    %103 = vector.extract_strided_slice %7 {offsets = [0, 48], sizes = [128, 16], strides = [1, 1]} : vector<128x192xf32> to vector<128x16xf32>
    %104 = vector.extract_strided_slice %7 {offsets = [0, 112], sizes = [128, 16], strides = [1, 1]} : vector<128x192xf32> to vector<128x16xf32>
    %105 = vector.extract_strided_slice %7 {offsets = [0, 176], sizes = [128, 16], strides = [1, 1]} : vector<128x192xf32> to vector<128x16xf32>
    %106 = vector.shape_cast %103 : vector<128x16xf32> to vector<4x32x16xf32>
    %107 = arith.truncf %106 : vector<4x32x16xf32> to vector<4x32x16xbf16>
    %108 = vector.shape_cast %104 : vector<128x16xf32> to vector<4x32x16xf32>
    %109 = arith.truncf %108 : vector<4x32x16xf32> to vector<4x32x16xbf16>
    %110 = vector.shape_cast %105 : vector<128x16xf32> to vector<4x32x16xf32>
    %111 = arith.truncf %110 : vector<4x32x16xf32> to vector<4x32x16xbf16>
    "tpu.trace_start"() <{level = 10 : i32, message = "bqd,bkd->bqk"}> : () -> ()
    %cst_28 = arith.constant dense<0.000000e+00> : vector<4x32x32xf32>
    %112 = tpu.matmul %107, %109, %cst_28 {dimension_numbers = #tpu.dot_dimension_numbers<[2], [2], [1], [1], [0, 0, 0, 1, 1, 1], [0], [0]>} : vector<4x32x16xbf16>, vector<4x32x16xbf16>, vector<4x32x32xf32> -> vector<4x32x32xf32>
    %cst_29 = arith.constant -1.000000e+30 : f32
    "tpu.trace_stop"() : () -> ()
    %113 = vector.shape_cast %10 : vector<32x32xi1> to vector<1x32x32xi1>
    %114 = vector.broadcast %113 : vector<1x32x32xi1> to vector<4x32x32xi1>
    %115 = vector.broadcast %cst_29 : f32 to vector<4x32x32xf32>
    %116 = arith.select %114, %112, %115 : vector<4x32x32xi1>, vector<4x32x32xf32>
    %cst_30 = arith.constant dense<0xFF800000> : vector<4x32xf32>
    %117 = vector.multi_reduction <maximumf>, %116, %cst_30 [2] : vector<4x32x32xf32> to vector<4x32xf32>
    %118 = vector.shape_cast %117 : vector<4x32xf32> to vector<4x32x1xf32>
    %119 = vector.broadcast %118 : vector<4x32x1xf32> to vector<4x32x32xf32>
    %120 = arith.subf %116, %119 : vector<4x32x32xf32>
    %121 = math.exp %120 : vector<4x32x32xf32>
    %cst_31 = arith.constant dense<0.000000e+00> : vector<4x32xf32>
    %122 = vector.multi_reduction <add>, %121, %cst_31 [2] : vector<4x32x32xf32> to vector<4x32xf32>
    %123 = vector.shape_cast %122 : vector<4x32xf32> to vector<4x32x1xf32>
    %124 = arith.truncf %121 : vector<4x32x32xf32> to vector<4x32x32xbf16>
    "tpu.trace_start"() <{level = 10 : i32, message = "bqk,bkd->bqd"}> : () -> ()
    %cst_32 = arith.constant dense<0.000000e+00> : vector<4x32x16xf32>
    %125 = tpu.matmul %124, %111, %cst_32 {dimension_numbers = #tpu.dot_dimension_numbers<[2], [1], [1], [2], [0, 0, 0, 1, 1, 2], [0], [0]>} : vector<4x32x32xbf16>, vector<4x32x16xbf16>, vector<4x32x16xf32> -> vector<4x32x16xf32>
    "tpu.trace_stop"() : () -> ()
    %126 = tpu.reciprocal %123 {approx = true} : vector<4x32x1xf32> -> vector<4x32x1xf32>
    %127 = vector.broadcast %126 : vector<4x32x1xf32> to vector<4x32x16xf32>
    %128 = arith.mulf %125, %127 : vector<4x32x16xf32>
    %129 = vector.shape_cast %128 : vector<4x32x16xf32> to vector<128x16xf32>
    %130 = arith.truncf %129 : vector<128x16xf32> to vector<128x16xbf16>
    %c48 = arith.constant 48 : index
    %c0_33 = arith.constant 0 : index
    %131 = vector.load %arg4[%c48, %c0_33] : memref<64x64xbf16, #tpu.memory_space<vmem>>, vector<16x64xbf16>
    %cst_34 = arith.constant dense<0.000000e+00> : vector<128x64xf32>
    %132 = tpu.matmul %130, %131, %cst_34 {dimension_numbers = #tpu.dot_dimension_numbers<[1], [0], [0], [1], [0, 0, 1, 1], [], []>} : vector<128x16xbf16>, vector<16x64xbf16>, vector<128x64xf32> -> vector<128x64xf32>
    %133 = arith.addf %102, %132 : vector<128x64xf32>
    %c0_35 = arith.constant 0 : index
    %c0_36 = arith.constant 0 : index
    %134 = vector.load %arg5[%c0_35, %c0_36] : memref<1x64xf32, #tpu.memory_space<vmem>>, vector<1x64xf32>
    %135 = vector.broadcast %134 : vector<1x64xf32> to vector<128x64xf32>
    %136 = arith.addf %133, %135 : vector<128x64xf32>
    %137 = vector.shape_cast %136 : vector<128x64xf32> to vector<4x32x64xf32>
    %c0_37 = arith.constant 0 : index
    %c0_38 = arith.constant 0 : index
    %c0_39 = arith.constant 0 : index
    %138 = vector.load %arg6[%c0_37, %c0_38, %c0_39] : memref<4x32x64xf32, #tpu.memory_space<vmem>>, vector<4x32x64xf32>
    tpu.vector_store %arg6[%c0_37, %c0_38, %c0_39], %137 {strides = array<i32>} : memref<4x32x64xf32, #tpu.memory_space<vmem>>, vector<4x32x64xf32>,
    return
  }
  func.func @transform_0(%arg0: i32) -> (i32, i32, i32) {
    %c0_i32 = arith.constant 0 : i32
    %c0_i32_0 = arith.constant 0 : i32
    %c0_i32_1 = arith.constant 0 : i32
    return %arg0, %c0_i32, %c0_i32_0 : i32, i32, i32
  }
  func.func @transform_1(%arg0: i32) -> (i32, i32) {
    %c0_i32 = arith.constant 0 : i32
    %c0_i32_0 = arith.constant 0 : i32
    %c0_i32_1 = arith.constant 0 : i32
    return %c0_i32, %c0_i32_0 : i32, i32
  }
  func.func @transform_2(%arg0: i32) -> (i32, i32) {
    %c0_i32 = arith.constant 0 : i32
    %c0_i32_0 = arith.constant 0 : i32
    %c0_i32_1 = arith.constant 0 : i32
    return %c0_i32, %c0_i32_0 : i32, i32
  }
  func.func @transform_3(%arg0: i32) -> (i32, i32) {
    %c0_i32 = arith.constant 0 : i32
    %c0_i32_0 = arith.constant 0 : i32
    %c0_i32_1 = arith.constant 0 : i32
    return %c0_i32, %c0_i32_0 : i32, i32
  }
  func.func @transform_4(%arg0: i32) -> (i32, i32) {
    %c0_i32 = arith.constant 0 : i32
    %c0_i32_0 = arith.constant 0 : i32
    %c0_i32_1 = arith.constant 0 : i32
    return %c0_i32, %c0_i32_0 : i32, i32
  }
  func.func @transform_5(%arg0: i32) -> (i32, i32, i32) {
    %c0_i32 = arith.constant 0 : i32
    %c0_i32_0 = arith.constant 0 : i32
    %c0_i32_1 = arith.constant 0 : i32
    return %arg0, %c0_i32, %c0_i32_0 : i32, i32, i32
  }
}

</mosaic_0001>

<bundles_post_ra>
// kernel: tpu_custom_call.1
= control target key start
LH: loop header
LB: loop body
LE: loop exit
PB: predicated region body
PF: predicated region fallthrough
CT: control target
= control target key end

     0   :  { %10 = vsyncpa [#allocation3], 0  ;;  %s7009_s0 = inlined_call_operand.hbm [shape: f32[8,32,64], index: 0, kind: input, shape index: {}]   ;;  %s7010_s1 = inlined_call_operand.hbm [shape: bf16[64,192], index: 1, kind: input, shape index: {}]   ;;  %s7011_s2 = inlined_call_operand.vmem [shape: f32[1,192], index: 2, kind: input, shape index: {}]   ;;  %s7012_s3 = inlined_call_operand.hbm [shape: bf16[64,64], index: 3, kind: input, shape index: {}]   ;;  %s7013_s4 = inlined_call_operand.vmem [shape: f32[1,64], index: 4, kind: input, shape index: {}]   ;;  %s7014_s5 = inlined_call_operand.hbm [shape: f32[8,32,64], index: 5, kind: output, shape index: {}]  }
   0x1   :  { %12 = vsyncpa [#allocation3 + $0x1], 0 }
   0x2   :  { %13 = vsyncpa [#allocation6], 0 }
   0x3   :  { %14 = vsyncpa [#allocation4], 0 }
   0x4   :  { %16 = vsyncpa [#allocation4 + $0x1], 0  ;;  %s5389_s18 = smov 0   ;;  %s5391_s19 = smov 0  }
   0x5   :  { %s5393_s20 = smov 0   ;;  %s5395_s21 = smov 0  }
   0x6 LB: > { %s5410_s22 = sadd.s32 4294967295, %s5339_s21   ;;  %s4117_s23 = sadd.s32 4294967294, %s5339_s21   ;;  %s5339_s21 = sphi %s5395_s21, %s7142_s21   ;;  %s5335_s20 = sphi %s5393_s20, %s7141_s20   ;;  %s5331_s19 = sphi %s5391_s19, %s7140_s19   ;;  %s5327_s18 = sphi %s5389_s18, %s7139_s18  }
   0x7   : > { %p42_p0 = scmp.ne.s32.totalorder %s5331_s19, %s5327_s18  ;;  %p7015_p1 = scmp.eq.s32.totalorder %s5410_s22, 0 }
   0x8   : > { %p156_p3 = scmp.eq.s32.totalorder %s4117_s23, 1  ;;  %p4118_p5 = scmp.ge.s32.totalorder %s5339_s21, 1 }
   0x9   : > { %p5419_p4 = por %p7015_p1, %p42_p0  ;;  %p163_p7 = scmp.lt.s32.totalorder %s5339_s21, 3 }
   0xa   : > { %p5424_p6 = por %p156_p3, %p42_p0  ;;  %s5341_s27 = smov [#allocation5]  }
   0xb   : > { %s7050_s24 = scalar_select %p5419_p4, 1, 0 }
   0xc   : > { %s7051_s25 = scalar_select %p5424_p6, 1, 0 }
   0xd   : > { %p5429_p8 = pnand %p4118_p5, %p163_p7  ;;  %s175_s28 = sshll.u32 %s5341_s27, 4  ;;  %s5433_s28 = int_to_ptr.vmem [resolvable:$true] %s175_s28 }
   0xe   : > { %s5342_s30 = smov [#allocation7]   ;;  %s5183_s9 = scalar_lea.hbm %s7010_s1, 1024 }
   0xf   : > { %p4842_p9 = pneg %p5429_p8  ;;  %s191_s6 = sshll.u32 %s5342_s30, 4  ;;  %s5444_s6 = int_to_ptr.vmem [resolvable:$true] %s191_s6 }
  0x10   : > { %p5184_p12 = scmp.ne.s32.totalorder %s7010_s1, %s5183_s9  ;;  %p5190_p5 = scmp.lt.u32.totalorder %s5183_s9, %s7010_s1 }
  0x11   : > { %p5440_p11 = pnand %p4842_p9, %p7015_p1 }
  0x13   : > { %p5185_p13 = pneg %p5440_p11 }
  0x15   : > { %p5186_p0 = pnand %p5185_p13, %p5184_p12 }
  0x17   : > { %p5187_p3 = pneg %p5186_p0 }
  0x19   : > { %p5192_p7 = pnand %p5190_p5, %p5187_p3 }
  0x1b   : > { %5195 = shalt.err (!%p5192_p7)
}
  0x1c   : > { %s5196_s14 = scalar_lea.vmem %s5433_s28, 1024  ;;  %p5204_p2 = scmp.lt.s32.totalorder %s5433_s28, %s5433_s28 }
  0x1d   : > { %p5197_p9 = scmp.ne.s32.totalorder %s5433_s28, %s5196_s14  ;;  %p5205_p12 = scmp.lt.s32.totalorder %s5196_s14, %s5196_s14 }
  0x1f   : > { %p5199_p10 = pnand %p5197_p9, %p5185_p13  ;;  %p5206_p0 = por %p5205_p12, %p5204_p2 }
  0x21   : > { %p5200_p1 = pneg %p5199_p10 }
  0x23   : > { %p5207_p6 = pnand %p5206_p0, %p5200_p1 }
  0x25   : > { %5210 = shalt.err (!%p5207_p6)
}
  0x26   : > { %s5343_s15 = smov 128   ;;  %s5344_s16 = smov 8  }
  0x27   : > { %4845 = dma.hbm_to_vmem [thread:$0]  (!%p5440_p11), %s7010_s1, 1024, %s5433_s28, [#allocation6], %s5343_s15, %s5343_s15, %s5344_s16  }
  0x28   : > { %s5211_s7 = scalar_lea.hbm %s7012_s3, 512 }
  0x29   : > { %p5212_p1 = scmp.ne.s32.totalorder %s7012_s3, %s5211_s7  ;;  %p5218_p10 = scmp.lt.u32.totalorder %s5211_s7, %s7012_s3 }
  0x2b   : > { %p5214_p2 = pnand %p5212_p1, %p5185_p13 }
  0x2d   : > { %p5215_p6 = pneg %p5214_p2 }
  0x2f   : > { %p5220_p3 = pnand %p5218_p10, %p5215_p6 }
  0x31   : > { %5223 = shalt.err (!%p5220_p3)
}
  0x32   : > { %s5224_s28 = scalar_lea.vmem %s5444_s6, 512  ;;  %p5232_p12 = scmp.lt.s32.totalorder %s5444_s6, %s5444_s6 }
  0x33   : > { %p5225_p5 = scmp.ne.s32.totalorder %s5444_s6, %s5224_s28  ;;  %p5233_p0 = scmp.lt.s32.totalorder %s5224_s28, %s5224_s28 }
  0x35   : > { %p5227_p7 = pnand %p5225_p5, %p5185_p13  ;;  %p5234_p1 = por %p5233_p0, %p5232_p12 }
  0x37   : > { %p5228_p9 = pneg %p5227_p7 }
  0x39   : > { %p5235_p2 = pnand %p5234_p1, %p5228_p9 }
  0x3b   : > { %5238 = shalt.err (!%p5235_p2)
}
  0x3c   : > { %s5345_s12 = smov 64   ;;  %s5346_s13 = smov 4  }
  0x3d   : > { %4848 = dma.hbm_to_vmem [thread:$0]  (!%p5440_p11), %s7012_s3, 512, %s5444_s6, [#allocation6], %s5345_s12, %s5345_s12, %s5346_s13  }
  0x3e   : > { %s5502_s23 = sadd.s32 1, %s5339_s21   ;;  %s29_s30 = sadd.s32 1, %s5335_s20 }
  0x3f   : > { %s26_s27 = ssub.s32 %s5339_s21, %s5502_s23  ;;  %p36_p6 = scmp.ne.s32.totalorder %s5335_s20, %s5331_s19 }
  0x40   : > { %p27_p13 = scmp.eq.s32.totalorder %s26_s27, 0  ;;  %p37_p10 = scmp.eq.s32.totalorder %s5339_s21, 0 }
  0x41   : > { %p7054_p5 = scmp.eq.s32.totalorder %s5410_s22, 1  ;;  %p4859_p9 = scmp.lt.s32.totalorder %s5339_s21, 2 }
  0x42   : > { %s5511_s7 = scalar_select %p27_p13, %s5335_s20, %s29_s30  }
  0x43   : > { %p38_p3 = por %p37_p10, %p36_p6  ;;  %p5515_p7 = por %p7054_p5, %p36_p6 }
  0x44   : > { %s208_s29 = sand.u32 1, %s5335_s20   ;;  %s4255_s6 = sshll.u32 %s5339_s21, 11 }
  0x45   : > { %s7055_s8 = scalar_select %p5515_p7, 1, 0 }
  0x46   : > { %s4122_s9 = sshll.u32 %s208_s29, 7  ;;  %s5525_s28 = scalar_lea.hbm %s7009_s0, %s4255_s6 }
  0x47   : > { %s212_s12 = scalar_lea.vmem [#allocation2], %s4122_s9  ;;  %p5529_p11 = pnand %p4859_p9, %p38_p3 }
  0x48   : > { %s220_s13 = sshll.u32 %s212_s12, 4  ;;  %s5533_s17 = scalar_lea.sflag [#allocation3], %s208_s29  ;;  %s5527_s13 = int_to_ptr.vmem [resolvable:$true] %s220_s13 }
  0x49   : > { %s5239_s27 = scalar_lea.hbm %s5525_s28, 2048  ;;  %p5241_p0 = pneg %p5529_p11 }
  0x4a   : > { %p5240_p12 = scmp.ne.s32.totalorder %s5525_s28, %s5239_s27  ;;  %s5244_s6 = scalar_lea.hbm %s7009_s0, 4096 }
  0x4b   : > { %p5245_p13 = scmp.lt.u32.totalorder %s5525_s28, %s7009_s0  ;;  %p5246_p6 = scmp.lt.u32.totalorder %s5244_s6, %s5239_s27 }
  0x4c   : > { %p5242_p1 = pnand %p5241_p0, %p5240_p12  ;;  %p5248_p3 = scmp.lt.u32.totalorder %s5239_s27, %s5525_s28 }
  0x4d   : > { %p5247_p10 = por %p5246_p6, %p5245_p13 }
  0x4e   : > { %p5243_p2 = pneg %p5242_p1 }
  0x4f   : > { %p5249_p5 = por %p5248_p3, %p5247_p10 }
  0x51   : > { %p5250_p9 = pnand %p5249_p5, %p5243_p2 }
  0x53   : > { %5253 = shalt.err (!%p5250_p9)
}
  0x54   : > { %s5254_s29 = scalar_lea.vmem %s5527_s13, 2048  ;;  %s5347_s12 = smov [#allocation2]  }
  0x55   : > { %p5255_p12 = scmp.ne.s32.totalorder %s5527_s13, %s5254_s29  ;;  %s5259_s30 = sshll.u32 %s5347_s12, 4  ;;  %s5260_s30 = int_to_ptr.vmem [resolvable:$false] %s5259_s30 }
  0x56   : > { %s5261_s9 = scalar_lea.vmem %s5260_s30, 4096  ;;  %p5262_p4 = scmp.lt.s32.totalorder %s5527_s13, %s5260_s30 }
  0x57   : > { %p5257_p1 = pnand %p5255_p12, %p5241_p0  ;;  %p5263_p13 = scmp.lt.s32.totalorder %s5261_s9, %s5254_s29 }
  0x59   : > { %p5258_p7 = pneg %p5257_p1  ;;  %p5264_p6 = por %p5263_p13, %p5262_p4 }
  0x5b   : > { %p5265_p10 = pnand %p5264_p6, %p5258_p7 }
  0x5d   : > { %5268 = shalt.err (!%p5265_p10)
}
  0x5e   : > { %4852 = dma.hbm_to_vmem [thread:$0]  (!%p5529_p11), %s5525_s28, 2048, %s5527_s13, %s5533_s17, %s5343_s15, %s5343_s15, %s5344_s16  }
  0x5f   : > { %232 = sbr.rel (%p5429_p8) target bundleno = 2945 (0xb81), region = 40 }
  0x66   : > { %s5567_s27 = sand.u32 1, %s5331_s19   ;;  %p7057_p4 = scmp.ne.s32.totalorder %s7050_s24, 0 }
  0x67   : > { %s4127_s6 = sshll.u32 %s5567_s27, 7  ;;  %s235_s10 = scalar_lea.sflag [#allocation3], %s5567_s27 }
  0x68   : > { %s5573_s14 = scalar_lea.vmem [#allocation2], %s4127_s6 }
  0x69   : > { %5314 = dma.done.wait (%p7057_p4), %s235_s10, 2048  }
  0x6a   : > { %5316 = vsyncadd (%p7057_p4), %s235_s10, 4294965248  ;;  %p7058_p7 = scmp.eq.s32.totalorder %s5410_s22, 0 }
  0x6c   : > { %5318 = dma.done.wait (%p7058_p7), [#allocation6], 1536   ;;  %p7059_p8 = pmov %p7058_p7 }
  0x6d   : > { %v5348_v0 = vmov 0   ;;  %v4911_v1 = vld [vmem:[#allocation5 + $0x4] ss:$8 sps:$4 sm:$0xff]   ;;  %v4913_v2 = vld [vmem:[#allocation5] ss:$8 sps:$4 sm:$0xff]   ;;  %vm360_vm0 = vcmask 523264   ;;  %v310_v33 = vlaneseq }
  0x6e   : > { %5320 = vsyncadd (%p7059_p8), [#allocation6], 4294965760  ;;  %417 = vmatprep.mubr.bf16.mxu0 %v5348_v0  ;;  %385 = vmatprep.subr.bf16.mxu0 %v4911_v1  ;;  %v4914_v3 = vld [vmem:[#allocation5 + $0x14] ss:$8 sps:$4 sm:$0xff]   ;;  %v4916_v4 = vld [vmem:[#allocation5 + $0x10] ss:$8 sps:$4 sm:$0xff]  }
  0x6f   : > { %386 = vmatpush1.bf16.msra.mxu0 %v4913_v2  ;;  %v4917_v5 = vld [vmem:[#allocation5 + $0x24] ss:$8 sps:$4 sm:$0xff]   ;;  %v4919_v6 = vld [vmem:[#allocation5 + $0x20] ss:$8 sps:$4 sm:$0xff]   ;;  %v4920_v7 = vld [vmem:[#allocation5 + $0x34] ss:$8 sps:$4 sm:$0xff]  }
  0x70   : > { %387 = vmatprep.subr.bf16.mxu0 %v4914_v3  ;;  %v4922_v8 = vld [vmem:[#allocation5 + $0x30] ss:$8 sps:$4 sm:$0xff]   ;;  %v276_v9 = vld [vmem:[%s5573_s14] sm:$0xff]  ;;  %v277_v10 = vld [vmem:[%s5573_s14 + $0x8] sm:$0xff]  ;;  %v5608_v34 = vshrl.u32 %v310_v33, 7  ;;  %vm531_vm1 = vcmask 130048  }
  0x71   : > { %v292_v11 = vpack.c.bf16 %v277_v10, %v276_v9  ;;  %v278_v12 = vld [vmem:[%s5573_s14 + $0x10] sm:$0xff]  ;;  %v279_v13 = vld [vmem:[%s5573_s14 + $0x18] sm:$0xff]  ;;  %v280_v15 = vld [vmem:[%s5573_s14 + $0x20] sm:$0xff]  ;;  %s5349_s15 = smov 64   ;;  %vm818_vm3 = vcmask 261120   ;;  %s5350_s16 = smov 48  }
  0x72   : > { %v293_v14 = vpack.c.bf16 %v279_v13, %v278_v12  ;;  %v281_v16 = vld [vmem:[%s5573_s14 + $0x28] sm:$0xff]  ;;  %v282_v18 = vld [vmem:[%s5573_s14 + $0x30] sm:$0xff]  ;;  %v283_v19 = vld [vmem:[%s5573_s14 + $0x38] sm:$0xff]  ;;  %v312_v35 = vsub.s32 0, %v5608_v34  ;;  %v316_v37 = vsub.s32 1, %v5608_v34  ;;  %s5351_s28 = smov 112  }
  0x73   : > { %388 = vmatpush1.bf16.msra.mxu0 %v4916_v4  ;;  %v294_v17 = vpack.c.bf16 %v281_v16, %v280_v15  ;;  %v295_v20 = vpack.c.bf16 %v283_v19, %v282_v18  ;;  %v284_v21 = vld [vmem:[%s5573_s14 + $0x40] sm:$0xff]  ;;  %v285_v22 = vld [vmem:[%s5573_s14 + $0x48] sm:$0xff]  ;;  %v286_v24 = vld [vmem:[%s5573_s14 + $0x50] sm:$0xff]  ;;  %s5352_s13 = smov 32   ;;  %s5353_s17 = smov 96  }
  0x74   : > { %389 = vmatprep.subr.bf16.mxu0 %v4917_v5  ;;  %v296_v23 = vpack.c.bf16 %v285_v22, %v284_v21  ;;  %v287_v25 = vld [vmem:[%s5573_s14 + $0x58] sm:$0xff]  ;;  %v288_v27 = vld [vmem:[%s5573_s14 + $0x60] sm:$0xff]  ;;  %v289_v28 = vld [vmem:[%s5573_s14 + $0x68] sm:$0xff]  ;;  %s5354_s11 = smov 16   ;;  %s5355_s29 = smov 80  }
  0x75   : > { %v297_v26 = vpack.c.bf16 %v287_v25, %v286_v24  ;;  %v298_v29 = vpack.c.bf16 %v289_v28, %v288_v27  ;;  %v290_v30 = vld [vmem:[%s5573_s14 + $0x70] sm:$0xff]  ;;  %v291_v31 = vld [vmem:[%s5573_s14 + $0x78] sm:$0xff]  ;;  %v308_v36 = vld [vmem:[%s7011_s2] sm:$0x3]  ;;  %s6924_s9 = scalar_lea.vmem [#allocation8], %s4127_s6  ;;  %s4257_s6 = sshll.u32 %s5410_s22, 11 }
  0x76   : > { %v299_v32 = vpack.c.bf16 %v291_v31, %v290_v30  ;;  %v5615_v38 = vrot.slane %v308_v36, %v312_v35  ;;  %v5617_v40 = vrot.slane %v308_v36, %v316_v37  ;;  %s4025_s10 = sshll.u32 %s6924_s9, 4  ;;  %s6957_s26 = scalar_lea.hbm %s7014_s5, %s4257_s6  ;;  %s6959_s10 = int_to_ptr.vmem [resolvable:$true] %s4025_s10 }
  0x77   : > { %390 = vmatpush1.bf16.msra.mxu0 %v4919_v6  ;;  %s4011_s22 = scalar_lea.sflag [#allocation4], %s5567_s27  ;;  %p7136_p0 = scmp.ne.s32.totalorder %s7055_s8, 0 }
  0x78   : > { %391 = vmatprep.subr.bf16.mxu0 %v4920_v7 }
  0x7b   : > { %392 = vmatpush1.bf16.msra.mxu0 %v4922_v8 }
  0x7e   : > { %4139 = vmatmul.mubr.msk.bf16.vlgmr.msra.gmra.mrb[0].mxu0 %vm360_vm0, %v292_v11 }
  0x7f   : > { %427 = vmatprep.mubr.bf16.mxu0 %v5348_v0 }
  0x86   : > { %4140 = vmatmul.mubr.msk.bf16.gmra.mrb[4].mxu0 %vm360_vm0, %v293_v14 }
  0x87   : > { %437 = vmatprep.mubr.bf16.mxu0 %v5348_v0 }
  0x8e   : > { %4141 = vmatmul.mubr.msk.bf16.gmra.mrb[8].mxu0 %vm360_vm0, %v294_v17 }
  0x8f   : > { %447 = vmatprep.mubr.bf16.mxu0 %v5348_v0 }
  0x96   : > { %4142 = vmatmul.mubr.msk.bf16.gmra.mrb[12].mxu0 %vm360_vm0, %v295_v20 }
  0x97   : > { %457 = vmatprep.mubr.bf16.mxu0 %v5348_v0 }
  0x9e   : > { %4143 = vmatmul.mubr.msk.bf16.gmra.mrb[16].mxu0 %vm360_vm0, %v296_v23 }
  0x9f   : > { %467 = vmatprep.mubr.bf16.mxu0 %v5348_v0 }
  0xa6   : > { %4144 = vmatmul.mubr.msk.bf16.gmra.mrb[20].mxu0 %vm360_vm0, %v297_v26 }
  0xa7   : > { %477 = vmatprep.mubr.bf16.mxu0 %v5348_v0 }
  0xae   : > { %4145 = vmatmul.mubr.msk.bf16.gmra.mrb[24].mxu0 %vm360_vm0, %v298_v29 }
  0xaf   : > { %487 = vmatprep.mubr.bf16.mxu0 %v5348_v0 }
  0xb6   : > { %4146 = vmatmul.mubr.msk.bf16.gmra.mrb[28].mxu0 %vm360_vm0, %v299_v32 }
 0x151   : > { %v419_v39 = vpop.f32.mrb[0].mxu0 }
 0x152   : > { %v421_v41 = vpop.f32.mrb[1].mxu0  ;;  %v420_v43 = vadd.f32 %v419_v39, %v5615_v38 }
 0x153   : > { %v423_v42 = vpop.f32.mrb[2].mxu0  ;;  %v422_v46 = vadd.f32 %v421_v41, %v5617_v40 }
 0x154   : > { %v424_v44 = vadd.f32 %v423_v42, %v5615_v38  ;;  %v425_v45 = vpop.f32.mrb[3].mxu0 }
 0x155   : > { %v426_v47 = vadd.f32 %v425_v45, %v5617_v40 }
 0x156   : > { %v5623_v48 = vpack.c.bf16 %v424_v44, %v420_v43 }
 0x157   : > { %v5625_v49 = vpack.c.bf16 %v426_v47, %v422_v46 }
 0x158   : > { %7060 = vst [vmem:[#allocation12_spill] sm:$0xff] %v5623_v48  ;;  %4426 = vmatprep.mubr.msk.bf16.mxu0 %vm531_vm1, %v5623_v48 }
 0x159   : > { %v429_v50 = vpop.f32.mrb[4].mxu0 }
 0x15a   : > { %v431_v51 = vpop.f32.mrb[5].mxu0  ;;  %v430_v53 = vadd.f32 %v429_v50, %v5615_v38 }
 0x15b   : > { %v433_v52 = vpop.f32.mrb[6].mxu0  ;;  %v432_v56 = vadd.f32 %v431_v51, %v5617_v40 }
 0x15c   : > { %v434_v54 = vadd.f32 %v433_v52, %v5615_v38  ;;  %v435_v55 = vpop.f32.mrb[7].mxu0 }
 0x15d   : > { %v436_v57 = vadd.f32 %v435_v55, %v5617_v40 }
 0x15e   : > { %v5633_v58 = vpack.c.bf16 %v434_v54, %v430_v53 }
 0x15f   : > { %v5635_v59 = vpack.c.bf16 %v436_v57, %v432_v56 }
 0x160   : > { %7061 = vst [vmem:[#allocation13_spill] sm:$0xff] %v5633_v58 }
 0x161   : > { %7062 = vst [vmem:[#allocation14_spill] sm:$0xff] %v5635_v59  ;;  %v439_v60 = vpop.f32.mrb[8].mxu0 }
 0x162   : > { %v441_v61 = vpop.f32.mrb[9].mxu0  ;;  %v440_v63 = vadd.f32 %v439_v60, %v5615_v38 }
 0x163   : > { %v443_v62 = vpop.f32.mrb[10].mxu0  ;;  %v442_v2 = vadd.f32 %v441_v61, %v5617_v40 }
 0x164   : > { %v444_v0 = vadd.f32 %v443_v62, %v5615_v38  ;;  %v445_v1 = vpop.f32.mrb[11].mxu0 }
 0x165   : > { %v446_v3 = vadd.f32 %v445_v1, %v5617_v40 }
 0x166   : > { %v5641_v4 = vpack.c.bf16 %v444_v0, %v440_v63 }
 0x167   : > { %v5643_v5 = vpack.c.bf16 %v446_v3, %v442_v2 }
 0x168   : > { %7063 = vst [vmem:[#allocation15_spill] sm:$0xff] %v5641_v4  ;;  %595 = vrot.lane.b32.xlu0 %v5641_v4, %s5349_s15  ;;  %4434 = vmatprep.mubr.msk.bf16.mxu1 %vm531_vm1, %v5641_v4 }
 0x169   : > { %v449_v6 = vpop.f32.mrb[12].mxu0 }
 0x16a   : > { %v451_v7 = vpop.f32.mrb[13].mxu0  ;;  %v450_v9 = vadd.f32 %v449_v6, %v5615_v38 }
 0x16b   : > { %v453_v8 = vpop.f32.mrb[14].mxu0  ;;  %v452_v12 = vadd.f32 %v451_v7, %v5617_v40 }
 0x16c   : > { %v454_v10 = vadd.f32 %v453_v8, %v5615_v38  ;;  %v455_v11 = vpop.f32.mrb[15].mxu0 }
 0x16d   : > { %v456_v13 = vadd.f32 %v455_v11, %v5617_v40 }
 0x16e   : > { %v5653_v14 = vpack.c.bf16 %v454_v10, %v450_v9 }
 0x16f   : > { %v5655_v15 = vpack.c.bf16 %v456_v13, %v452_v12 }
 0x170   : > { %7064 = vst [vmem:[#allocation16_spill] sm:$0xff] %v5653_v14  ;;  %597 = vrot.lane.b32.xlu0 %v5653_v14, %s5349_s15 }
 0x171   : > { %7065 = vst [vmem:[#allocation17_spill] sm:$0xff] %v5655_v15  ;;  %v459_v16 = vpop.f32.mrb[16].mxu0 }
 0x172   : > { %v460_v17 = vadd.f32 %v459_v16, %v5615_v38  ;;  %v461_v18 = vpop.f32.mrb[17].mxu0 }
 0x173   : > { %v462_v19 = vadd.f32 %v461_v18, %v5617_v40  ;;  %v463_v20 = vpop.f32.mrb[18].mxu0  ;;  %v501_v18 = vadd.s32 16, %v5608_v34 }
 0x174   : > { %v464_v21 = vadd.f32 %v463_v20, %v5615_v38  ;;  %v465_v22 = vpop.f32.mrb[19].mxu0  ;;  %v500_v20 = vadd.s32 8, %v5608_v34 }
 0x175   : > { %v466_v23 = vadd.f32 %v465_v22, %v5617_v40 }
 0x176   : > { %v5663_v24 = vpack.c.bf16 %v464_v21, %v460_v17  ;;  %v7074_v21 = vmov 0 }
 0x177   : > { %v5665_v25 = vpack.c.bf16 %v466_v23, %v462_v19  ;;  %v504_v19 = vand.u32 127, %v310_v33  ;;  %v7077_v23 = vmov 0 }
 0x178   : > { %7066 = vst [vmem:[#allocation18_spill] sm:$0xff] %v5663_v24  ;;  %662 = vrot.lane.b32.xlu1 %v5663_v24, %s5349_s15 }
 0x179   : > { %7067 = vst [vmem:[#allocation19_spill] sm:$0xff] %v5665_v25  ;;  %v469_v26 = vpop.f32.mrb[20].mxu0  ;;  %vm5744_vm2 = vcmp.ge.s32.totalorder %v501_v18, %v504_v19  ;;  %vm5749_vm4 = vcmp.ge.s32.totalorder %v5608_v34, %v504_v19  ;;  %vm5758_vm5 = vcmp.ge.s32.totalorder %v500_v20, %v504_v19 }
 0x17a   : > { %v470_v27 = vadd.f32 %v469_v26, %v5615_v38  ;;  %v471_v28 = vpop.f32.mrb[21].mxu0  ;;  %v7075_v21 = vsel %vm5744_vm2, 4294967295, %v7074_v21  ;;  %v7078_v23 = vsel %vm5749_vm4, 4294967295, %v7077_v23  ;;  %v502_v26 = vadd.s32 24, %v5608_v34 }
 0x17b   : > { %v472_v29 = vadd.f32 %v471_v28, %v5617_v40  ;;  %v473_v30 = vpop.f32.mrb[22].mxu0  ;;  %7076 = vst [vmem:[#allocation26_spill] sm:$0xff] %v7075_v21  ;;  %7079 = vst [vmem:[#allocation27_spill] sm:$0xff] %v7078_v23  ;;  %v7080_v28 = vmov 0  ;;  %v7083_v34 = vmov 0 }
 0x17c   : > { %v474_v31 = vadd.f32 %v473_v30, %v5615_v38  ;;  %v475_v32 = vpop.f32.mrb[23].mxu0  ;;  %v7081_v28 = vsel %vm5758_vm5, 4294967295, %v7080_v28  ;;  %vm5768_vm6 = vcmp.ge.s32.totalorder %v502_v26, %v504_v19 }
 0x17d   : > { %v476_v35 = vadd.f32 %v475_v32, %v5617_v40  ;;  %7082 = vst [vmem:[#allocation28_spill] sm:$0xff] %v7081_v28  ;;  %v7084_v34 = vsel %vm5768_vm6, 4294967295, %v7083_v34 }
 0x17e   : > { %v5673_v36 = vpack.c.bf16 %v474_v31, %v470_v27  ;;  %7085 = vst [vmem:[#allocation29_spill] sm:$0xff] %v7084_v34 }
 0x17f   : > { %v5675_v37 = vpack.c.bf16 %v476_v35, %v472_v29 }
 0x180   : > { %7068 = vst [vmem:[#allocation20_spill] sm:$0xff] %v5673_v36  ;;  %664 = vrot.lane.b32.xlu1 %v5673_v36, %s5349_s15 }
 0x181   : > { %7069 = vst [vmem:[#allocation21_spill] sm:$0xff] %v5675_v37  ;;  %v479_v39 = vpop.f32.mrb[24].mxu0 }
 0x182   : > { %v480_v41 = vadd.f32 %v479_v39, %v5615_v38  ;;  %v481_v42 = vpop.f32.mrb[25].mxu0 }
 0x183   : > { %v482_v43 = vadd.f32 %v481_v42, %v5617_v40  ;;  %v483_v44 = vpop.f32.mrb[26].mxu0 }
 0x184   : > { %v484_v45 = vadd.f32 %v483_v44, %v5615_v38  ;;  %v485_v46 = vpop.f32.mrb[27].mxu0 }
 0x185   : > { %v486_v47 = vadd.f32 %v485_v46, %v5617_v40 }
 0x186   : > { %v5683_v50 = vpack.c.bf16 %v484_v45, %v480_v41 }
 0x187   : > { %v5685_v51 = vpack.c.bf16 %v486_v47, %v482_v43 }
 0x188   : > { %7070 = vst [vmem:[#allocation22_spill] sm:$0xff] %v5683_v50  ;;  %729 = vrot.lane.b32.xlu0 %v5683_v50, %s5349_s15 }
 0x189   : > { %7071 = vst [vmem:[#allocation23_spill] sm:$0xff] %v5685_v51  ;;  %v489_v52 = vpop.f32.mrb[28].mxu0 }
 0x18a   : > { %v490_v53 = vadd.f32 %v489_v52, %v5615_v38  ;;  %v491_v54 = vpop.f32.mrb[29].mxu0 }
 0x18b   : > { %v492_v55 = vadd.f32 %v491_v54, %v5617_v40  ;;  %v493_v56 = vpop.f32.mrb[30].mxu0 }
 0x18c   : > { %v494_v57 = vadd.f32 %v493_v56, %v5615_v38  ;;  %527 = vrot.lane.b32.xlu0 %v5623_v48, %s5349_s15  ;;  %v495_v60 = vpop.f32.mrb[31].mxu0 }
 0x18d   : > { %v496_v61 = vadd.f32 %v495_v60, %v5617_v40 }
 0x18e   : > { %v5695_v62 = vpack.c.bf16 %v494_v57, %v490_v53 }
 0x18f   : > { %v5697_v63 = vpack.c.bf16 %v496_v61, %v492_v55 }
 0x190   : > { %7072 = vst [vmem:[#allocation24_spill] sm:$0xff] %v5695_v62  ;;  %731 = vrot.lane.b32.xlu1 %v5695_v62, %s5349_s15 }
 0x191   : > { %7073 = vst [vmem:[#allocation25_spill] sm:$0xff] %v5697_v63 }
 0x194   : > { %529 = vrot.lane.b32.xlu1 %v5633_v58, %s5349_s15  ;;  %s5269_s15 = scalar_lea.vmem %s6959_s10, 2048 }
 0x195   : > { %p5270_p11 = scmp.ne.s32.totalorder %s6959_s10, %s5269_s15 }
 0x197   : > { %p5271_p2 = pnand %p5270_p11, %p7136_p0 }
 0x199   : > { %p5272_p3 = pneg %p5271_p2 }
 0x1da   : > { %v596_v0 = vpop.permute.xlu0 %595 }
 0x1db   : > { %4800 = vmatprep.subr.msk.bf16.mxu1 %vm531_vm1, %v596_v0  ;;  %v606_v38 = vsel %vm531_vm1, %v596_v0, 0 }
 0x1dc   : > { %4431 = vmatpush3.bf16.xpose.msra.mxu1 %v606_v38 }
 0x1e2   : > { %v598_v1 = vpop.permute.xlu0 %597 }
 0x1e3   : > { %4801 = vmatprep.subr.msk.bf16.mxu1 %vm531_vm1, %v598_v1  ;;  %v609_v40 = vsel %vm531_vm1, %v598_v1, 0 }
 0x1e4   : > { %4433 = vmatpush3.bf16.xpose.msra.mxu1 %v609_v40 }
 0x1ea   : > { %v663_v2 = vpop.permute.xlu1 %662 }
 0x1eb   : > { %4435 = vmatmul.mubr.msk.bf16.vlgmr.msra.gmra.mrb[0].mxu1 %vm531_vm1, %v5653_v14  ;;  %4802 = vmatprep.subr.msk.bf16.mxu1 %vm531_vm1, %v663_v2  ;;  %v673_v3 = vsel %vm531_vm1, %v663_v2, 0 }
 0x1ec   : > { %4439 = vmatpush3.bf16.xpose.msra.mxu1 %v673_v3  ;;  %4442 = vmatprep.mubr.msk.bf16.mxu1 %vm531_vm1, %v5663_v24 }
 0x1f2   : > { %v665_v6 = vpop.permute.xlu1 %664 }
 0x1f3   : > { %4803 = vmatprep.subr.msk.bf16.mxu1 %vm531_vm1, %v665_v6  ;;  %v676_v7 = vsel %vm531_vm1, %v665_v6, 0 }
 0x1f4   : > { %4441 = vmatpush3.bf16.xpose.msra.mxu1 %v676_v7 }
 0x1fa   : > { %v730_v8 = vpop.permute.xlu0 %729 }
 0x1fb   : > { %4443 = vmatmul.mubr.msk.bf16.vlgmr.msra.gmra.mrb[4].mxu1 %vm531_vm1, %v5673_v36  ;;  %4804 = vmatprep.subr.msk.bf16.mxu1 %vm531_vm1, %v730_v8  ;;  %v740_v9 = vsel %vm531_vm1, %v730_v8, 0 }
 0x1fc   : > { %4447 = vmatpush3.bf16.xpose.msra.mxu1 %v740_v9  ;;  %4450 = vmatprep.mubr.msk.bf16.mxu1 %vm531_vm1, %v5683_v50 }
 0x1fe   : > { %v528_v10 = vpop.permute.xlu0 %527 }
 0x1ff   : > { %4798 = vmatprep.subr.msk.bf16.mxu0 %vm531_vm1, %v528_v10  ;;  %v539_v11 = vsel %vm531_vm1, %v528_v10, 0 }
 0x200   : > { %4423 = vmatpush3.bf16.xpose.msra.mxu0 %v539_v11 }
 0x202   : > { %v732_v12 = vpop.permute.xlu1 %731 }
 0x203   : > { %4805 = vmatprep.subr.msk.bf16.mxu1 %vm531_vm1, %v732_v12  ;;  %v743_v13 = vsel %vm531_vm1, %v732_v12, 0 }
 0x204   : > { %4449 = vmatpush3.bf16.xpose.msra.mxu1 %v743_v13 }
 0x205   : > { %4454 = vmatprep.subr.bf16.mxu1 %v5625_v49 }
 0x206   : > { %v530_v16 = vpop.permute.xlu1 %529 }
 0x207   : > { %4799 = vmatprep.subr.msk.bf16.mxu0 %vm531_vm1, %v530_v16  ;;  %v542_v17 = vsel %vm531_vm1, %v530_v16, 0 }
 0x208   : > { %4425 = vmatpush3.bf16.xpose.msra.mxu0 %v542_v17 }
 0x209   : > { %4462 = vmatprep.subr.bf16.mxu0 %v5643_v5 }
 0x20b   : > { %4451 = vmatmul.mubr.msk.bf16.vlgmr.msra.gmra.mrb[8].mxu1 %vm531_vm1, %v5695_v62 }
 0x20c   : > { %4455 = vmatpush3.bf16.msra.mxu1 %v5625_v49 }
 0x20d   : > { %4456 = vmatprep.subr.bf16.mxu1 %v5635_v59 }
 0x20f   : > { %4427 = vmatmul.mubr.msk.bf16.vlgmr.msra.gmra.mrb[32].mxu0 %vm531_vm1, %v5633_v58 }
 0x210   : > { %4457 = vmatpush3.bf16.msra.mxu1 %v5635_v59  ;;  %4463 = vmatpush3.bf16.msra.mxu0 %v5643_v5 }
 0x211   : > { %4464 = vmatprep.subr.bf16.mxu0 %v5655_v15  ;;  %4470 = vmatprep.subr.bf16.mxu1 %v5665_v25 }
 0x214   : > { %4465 = vmatpush3.bf16.msra.mxu0 %v5655_v15 }
 0x215   : > { %4478 = vmatprep.subr.bf16.mxu0 %v5685_v51 }
 0x2be   : > { %v4436_v22 = vpop.f32.mrb[0].mxu1 }
 0x2bf   : > { %v5756_v27 = vsel %vm5744_vm2, %v4436_v22, -1e+30  ;;  %v645_v33 = vpop.f32.mrb[1].mxu1 }
 0x2c0   : > { %v4437_v29 = vpop.f32.mrb[2].mxu1  ;;  %v837_v30 = vsel %vm818_vm3, %v5756_v27, -inf  ;;  %v5766_v31 = vsel %vm5749_vm4, %v645_v33, -1e+30 }
 0x2c1   : > { %v648_v32 = vpop.f32.mrb[3].mxu1  ;;  %838 = vmax.xlane.f32.xlu0 %v837_v30  ;;  %v831_v41 = vsel %vm818_vm3, %v5766_v31, -inf  ;;  %v5782_v42 = vsel %vm5768_vm6, %v4437_v29, -1e+30 }
 0x2c2   : > { %v5774_v35 = vsel %vm5758_vm5, %v648_v32, -1e+30  ;;  %v840_v43 = vsel %vm818_vm3, %v5782_v42, -inf }
 0x2c3   : > { %v834_v39 = vsel %vm818_vm3, %v5774_v35, -inf }
 0x2c4   : > { %835 = vmax.xlane.f32.xlu1 %v834_v39 }
 0x2c5   : > { %832 = vmax.xlane.f32.xlu0 %v831_v41 }
 0x2c9   : > { %841 = vmax.xlane.f32.xlu0 %v840_v43 }
 0x2ce   : > { %v4444_v44 = vpop.f32.mrb[4].mxu1 }
 0x2cf   : > { %v712_v45 = vpop.f32.mrb[5].mxu1  ;;  %v5870_v29 = vsel %vm5744_vm2, %v4444_v44, -1e+30 }
 0x2d0   : > { %v4445_v46 = vpop.f32.mrb[6].mxu1  ;;  %v5864_v26 = vsel %vm5749_vm4, %v712_v45, -1e+30  ;;  %v849_v30 = vsel %vm818_vm3, %v5870_v29, -inf }
 0x2d1   : > { %v715_v47 = vpop.f32.mrb[7].mxu1  ;;  %v5852_v18 = vsel %vm5768_vm6, %v4445_v46, -1e+30  ;;  %v843_v33 = vsel %vm818_vm3, %v5864_v26, -inf }
 0x2d2   : > { %v5846_v16 = vsel %vm5758_vm5, %v715_v47, -1e+30  ;;  %v852_v19 = vsel %vm818_vm3, %v5852_v18, -inf }
 0x2d3   : > { %v846_v17 = vsel %vm818_vm3, %v5846_v16, -inf }
 0x2d5   : > { %1306 = vrot.lane.b32.xlu1 %v5641_v4, %s5350_s16 }
 0x2de   : > { %v4452_v52 = vpop.f32.mrb[8].mxu1 }
 0x2df   : > { %v779_v53 = vpop.f32.mrb[9].mxu1  ;;  %v5802_v2 = vsel %vm5744_vm2, %v4452_v52, -1e+30 }
 0x2e0   : > { %v4453_v54 = vpop.f32.mrb[10].mxu1  ;;  %v861_v3 = vsel %vm818_vm3, %v5802_v2, -inf  ;;  %v5808_v6 = vsel %vm5749_vm4, %v779_v53, -1e+30 }
 0x2e1   : > { %v5790_v55 = vsel %vm5768_vm6, %v4453_v54, -1e+30  ;;  %v782_v56 = vpop.f32.mrb[11].mxu1  ;;  %v855_v7 = vsel %vm818_vm3, %v5808_v6, -inf }
 0x2e2   : > { %v4428_v57 = vpop.f32.mrb[32].mxu0  ;;  %v864_v60 = vsel %vm818_vm3, %v5790_v55, -inf  ;;  %v5796_v61 = vsel %vm5758_vm5, %v782_v56, -1e+30 }
 0x2e3   : > { %865 = vmax.xlane.f32.xlu0 %v864_v60  ;;  %v578_v0 = vpop.f32.mrb[33].mxu0  ;;  %v858_v40 = vsel %vm818_vm3, %v5796_v61, -inf  ;;  %v5834_v10 = vsel %vm5744_vm2, %v4428_v57, -1e+30 }
 0x2e4   : > { %v4429_v38 = vpop.f32.mrb[34].mxu0  ;;  %v5828_v8 = vsel %vm5749_vm4, %v578_v0, -1e+30  ;;  %v825_v11 = vsel %vm818_vm3, %v5834_v10, -inf }
 0x2e5   : > { %v581_v1 = vpop.f32.mrb[35].mxu0  ;;  %v819_v9 = vsel %vm818_vm3, %v5828_v8, -inf  ;;  %v5840_v12 = vsel %vm5768_vm6, %v4429_v38, -1e+30 }
 0x2e6   : > { %v828_v13 = vsel %vm818_vm3, %v5840_v12, -inf  ;;  %v5858_v20 = vsel %vm5758_vm5, %v581_v1, -1e+30 }
 0x2e7   : > { %859 = vmax.xlane.f32.xlu0 %v858_v40  ;;  %v822_v22 = vsel %vm818_vm3, %v5858_v20, -inf }
 0x2f9   : > { %862 = vmax.xlane.f32.xlu1 %v861_v3 }
 0x2fd   : > { %856 = vmax.xlane.f32.xlu1 %v855_v7  ;;  %1308 = vrot.lane.b32.xlu0 %v5653_v14, %s5350_s16 }
 0x301   : > { %1304 = vrot.lane.b32.xlu0 %v5653_v14, %s5351_s28 }
 0x305   : > { %1440 = vrot.lane.b32.xlu0 %v5683_v50, %s5351_s28 }
 0x30e   : > { %1302 = vrot.lane.b32.xlu1 %v5641_v4, %s5351_s28 }
 0x312   : > { %1444 = vrot.lane.b32.xlu1 %v5683_v50, %s5350_s16 }
 0x316   : > { %1446 = vrot.lane.b32.xlu1 %v5695_v62, %s5350_s16 }
 0x31a   : > { %1442 = vrot.lane.b32.xlu1 %v5695_v62, %s5351_s28 }
 0x324   : > { %820 = vmax.xlane.f32.xlu0 %v819_v9 }
 0x328   : > { %826 = vmax.xlane.f32.xlu0 %v825_v11 }
 0x32c   : > { %829 = vmax.xlane.f32.xlu0 %v828_v13 }
 0x330   : > { %847 = vmax.xlane.f32.xlu0 %v846_v17 }
 0x334   : > { %853 = vmax.xlane.f32.xlu0 %v852_v19 }
 0x33e   : > { %823 = vmax.xlane.f32.xlu1 %v822_v22 }
 0x342   : > { %844 = vmax.xlane.f32.xlu1 %v843_v33 }
 0x346   : > { %850 = vmax.xlane.f32.xlu1 %v849_v30 }
 0x34a   : > { %1239 = vrot.lane.b32.xlu0 %v5633_v58, %s5350_s16 }
 0x34e   : > { %v839_v32 = vpop.xlane.xlu0 %838  ;;  %1375 = vrot.lane.b32.xlu0 %v5663_v24, %s5350_s16 }
 0x34f   : > { %v873_v41 = vsub.f32 %v5756_v27, %v839_v32 }
 0x351   : > { %v836_v39 = vpop.xlane.xlu1 %835  ;;  %v895_v52 = vmul.f32 1.442695, %v873_v41 }
 0x352   : > { %v872_v43 = vsub.f32 %v5774_v35, %v836_v39  ;;  %v833_v45 = vpop.xlane.xlu0 %832  ;;  %1371 = vrot.lane.b32.xlu0 %v5663_v24, %s5351_s28 }
 0x353   : > { %v871_v44 = vsub.f32 %v5766_v31, %v833_v45 }
 0x354   : > { %v893_v46 = vmul.f32 1.442695, %v872_v43 }
 0x355   : > { %v891_v47 = vmul.f32 1.442695, %v871_v44  ;;  %v1307_v0 = vpop.permute.xlu1 %1306 }
 0x356   : > { %4927 = vpow2.f32 %v893_v46  ;;  %v842_v53 = vpop.xlane.xlu0 %841  ;;  %1744 = vrot.lane.b32.xlu0 %v5655_v15, %s5351_s28  ;;  %v1317_v41 = vsel %vm531_vm1, %v1307_v0, 0 }
 0x357   : > { %4929 = vpow2.f32 %v891_v47  ;;  %v874_v54 = vsub.f32 %v5782_v42, %v842_v53  ;;  %1237 = vrot.lane.b32.xlu1 %v5623_v48, %s5350_s16 }
 0x358   : > { %4931 = vpow2.f32 %v895_v52 }
 0x359   : > { %v897_v27 = vmul.f32 1.442695, %v874_v54 }
 0x35a   : > { %2229 = vrot.lane.b32.xlu0 %v5623_v48, %s5352_s13 }
 0x35b   : > { %4933 = vpow2.f32 %v897_v27  ;;  %1233 = vrot.lane.b32.xlu1 %v5623_v48, %s5351_s28 }
 0x35e   : > { %2225 = vrot.lane.b32.xlu0 %v5623_v48, %s5353_s17 }
 0x35f   : > { %1235 = vrot.lane.b32.xlu1 %v5633_v58, %s5351_s28 }
 0x360   : > { %v5896_v31 = vpop.eup %4927 }
 0x361   : > { %v5898_v35 = vpop.eup %4929 }
 0x362   : > { %2227 = vrot.lane.b32.xlu0 %v5633_v58, %s5353_s17  ;;  %v965_v42 = vpack.c.bf16 %v5896_v31, %v5898_v35  ;;  %v5906_v56 = vpop.eup %4931 }
 0x363   : > { %1377 = vrot.lane.b32.xlu1 %v5673_v36, %s5350_s16  ;;  %s5356_s16 = smov [#allocation8]  }
 0x364   : > { %4466 = vmatprep.mubr.msk.bf16.mxu0 %vm818_vm3, %v965_v42 }
 0x365   : > { %v5909_v57 = vpop.eup %4933 }
 0x366   : > { %v966_v60 = vpack.c.bf16 %v5909_v57, %v5906_v56 }
 0x367   : > { %1373 = vrot.lane.b32.xlu1 %v5673_v36, %s5351_s28 }
 0x368   : > { %4467 = vmatmul.mubr.msk.bf16.vlgmr.msra.gmra.mrb[36].mxu0 %vm818_vm3, %v966_v60 }
 0x369   : > { %4479 = vmatpush3.bf16.msra.mxu0 %v5685_v51 }
 0x36a   : > { %4480 = vmatprep.subr.bf16.mxu0 %v5697_v63 }
 0x36b   : > { %1742 = vrot.lane.b32.xlu1 %v5643_v5, %s5351_s28 }
 0x36d   : > { %4481 = vmatpush3.bf16.msra.mxu0 %v5697_v63 }
 0x36e   : > { %4808 = vmatprep.subr.msk.bf16.mxu0 %vm531_vm1, %v1307_v0 }
 0x36f   : > { %1868 = vrot.lane.b32.xlu1 %v5685_v51, %s5351_s28 }
 0x370   : > { %v866_v38 = vpop.xlane.xlu0 %865 }
 0x371   : > { %v882_v9 = vsub.f32 %v5790_v55, %v866_v38 }
 0x373   : > { %1870 = vrot.lane.b32.xlu1 %v5697_v63, %s5351_s28  ;;  %v913_v22 = vmul.f32 1.442695, %v882_v9 }
 0x374   : > { %v860_v1 = vpop.xlane.xlu0 %859 }
 0x375   : > { %v880_v40 = vsub.f32 %v5796_v61, %v860_v1 }
 0x377   : > { %2231 = vrot.lane.b32.xlu1 %v5633_v58, %s5352_s13  ;;  %v909_v11 = vmul.f32 1.442695, %v880_v40 }
 0x378   : > { %v1309_v43 = vpop.permute.xlu0 %1308 }
 0x379   : > { %4935 = vpow2.f32 %v909_v11  ;;  %v1320_v45 = vsel %vm531_vm1, %v1309_v43, 0 }
 0x37b   : > { %2298 = vrot.lane.b32.xlu1 %v5641_v4, %s5352_s13 }
 0x37c   : > { %v1305_v46 = vpop.permute.xlu0 %1304 }
 0x37f   : > { %2300 = vrot.lane.b32.xlu1 %v5653_v14, %s5352_s13 }
 0x380   : > { %v1441_v47 = vpop.permute.xlu0 %1440 }
 0x383   : > { %2294 = vrot.lane.b32.xlu1 %v5641_v4, %s5353_s17  ;;  %v5938_v30 = vpop.eup %4935 }
 0x386   : > { %v863_v3 = vpop.xlane.xlu1 %862 }
 0x387   : > { %v881_v7 = vsub.f32 %v5802_v2, %v863_v3 }
 0x389   : > { %v911_v13 = vmul.f32 1.442695, %v881_v7 }
 0x38a   : > { %v857_v17 = vpop.xlane.xlu1 %856 }
 0x38b   : > { %v879_v19 = vsub.f32 %v5808_v6, %v857_v17  ;;  %4937 = vpow2.f32 %v911_v13 }
 0x38d   : > { %v907_v33 = vmul.f32 1.442695, %v879_v19 }
 0x38e   : > { %v1303_v39 = vpop.permute.xlu1 %1302 }
 0x38f   : > { %4939 = vpow2.f32 %v907_v33 }
 0x390   : > { %4941 = vpow2.f32 %v913_v22 }
 0x392   : > { %v1445_v44 = vpop.permute.xlu1 %1444 }
 0x393   : > { %v1455_v52 = vsel %vm531_vm1, %v1445_v44, 0 }
 0x395   : > { %v5940_v32 = vpop.eup %4937 }
 0x396   : > { %v1447_v53 = vpop.permute.xlu1 %1446 }
 0x397   : > { %v1458_v27 = vsel %vm531_vm1, %v1447_v53, 0 }
 0x399   : > { %v5942_v61 = vpop.eup %4939 }
 0x39a   : > { %v5944_v2 = vpop.eup %4941  ;;  %v969_v55 = vpack.c.bf16 %v5938_v30, %v5942_v61  ;;  %v1443_v60 = vpop.permute.xlu1 %1442 }
 0x39b   : > { %v970_v6 = vpack.c.bf16 %v5944_v2, %v5940_v32 }
 0x39c   : > { %4482 = vmatprep.mubr.msk.bf16.mxu0 %vm818_vm3, %v969_v55 }
 0x39d   : > { %4483 = vmatmul.mubr.msk.bf16.vlgmr.msra.gmra.mrb[40].mxu0 %vm818_vm3, %v970_v6 }
 0x39e   : > { %4495 = vmatpush3.bf16.xpose.msra.mxu0 %v1317_v41  ;;  %4498 = vmatprep.mubr.msk.bf16.mxu0 %vm531_vm1, %v1303_v39 }
 0x39f   : > { %4809 = vmatprep.subr.msk.bf16.mxu0 %vm531_vm1, %v1309_v43 }
 0x3a6   : > { %4497 = vmatpush3.bf16.xpose.msra.mxu0 %v1320_v45 }
 0x3a7   : > { %4812 = vmatprep.subr.msk.bf16.mxu0 %vm531_vm1, %v1445_v44 }
 0x3ad   : > { %4499 = vmatmul.mubr.msk.bf16.vlgmr.msra.gmra.mrb[44].mxu0 %vm531_vm1, %v1305_v46 }
 0x3ae   : > { %4511 = vmatpush3.bf16.xpose.msra.mxu0 %v1455_v52  ;;  %4514 = vmatprep.mubr.msk.bf16.mxu0 %vm531_vm1, %v1441_v47 }
 0x3af   : > { %4813 = vmatprep.subr.msk.bf16.mxu0 %vm531_vm1, %v1447_v53 }
 0x3b1   : > { %v821_v54 = vpop.xlane.xlu0 %820 }
 0x3b2   : > { %v867_v38 = vsub.f32 %v5828_v8, %v821_v54 }
 0x3b4   : > { %v883_v7 = vmul.f32 1.442695, %v867_v38 }
 0x3b5   : > { %v827_v42 = vpop.xlane.xlu0 %826 }
 0x3b6   : > { %4513 = vmatpush3.bf16.xpose.msra.mxu0 %v1458_v27  ;;  %v869_v3 = vsub.f32 %v5834_v10, %v827_v42  ;;  %4943 = vpow2.f32 %v883_v7 }
 0x3b8   : > { %v887_v22 = vmul.f32 1.442695, %v869_v3 }
 0x3b9   : > { %v830_v0 = vpop.xlane.xlu0 %829 }
 0x3ba   : > { %v870_v40 = vsub.f32 %v5840_v12, %v830_v0 }
 0x3bc   : > { %v889_v9 = vmul.f32 1.442695, %v870_v40 }
 0x3bd   : > { %4515 = vmatmul.mubr.msk.bf16.vlgmr.msra.gmra.mrb[48].mxu0 %vm531_vm1, %v1443_v60  ;;  %v848_v1 = vpop.xlane.xlu0 %847 }
 0x3be   : > { %v876_v11 = vsub.f32 %v5846_v16, %v848_v1  ;;  %4945 = vpow2.f32 %v889_v9 }
 0x3c0   : > { %v901_v55 = vmul.f32 1.442695, %v876_v11  ;;  %v5971_v45 = vpop.eup %4943 }
 0x3c1   : > { %v854_v17 = vpop.xlane.xlu0 %853 }
 0x3c2   : > { %v878_v8 = vsub.f32 %v5852_v18, %v854_v17 }
 0x3c4   : > { %v905_v39 = vmul.f32 1.442695, %v878_v8 }
 0x3c8   : > { %v5973_v44 = vpop.eup %4945 }
 0x3cb   : > { %v824_v13 = vpop.xlane.xlu1 %823 }
 0x3cc   : > { %v868_v19 = vsub.f32 %v5858_v20, %v824_v13 }
 0x3ce   : > { %v885_v33 = vmul.f32 1.442695, %v868_v19 }
 0x3cf   : > { %v845_v6 = vpop.xlane.xlu1 %844 }
 0x3d0   : > { %4947 = vpow2.f32 %v885_v33  ;;  %v875_v12 = vsub.f32 %v5864_v26, %v845_v6  ;;  %v1240_v26 = vpop.permute.xlu0 %1239 }
 0x3d1   : > { %4949 = vpow2.f32 %v887_v22  ;;  %v1251_v19 = vsel %vm531_vm1, %v1240_v26, 0 }
 0x3d2   : > { %v899_v10 = vmul.f32 1.442695, %v875_v12  ;;  %4951 = vpow2.f32 %v901_v55 }
 0x3d3   : > { %v851_v16 = vpop.xlane.xlu1 %850 }
 0x3d4   : > { %4953 = vpow2.f32 %v899_v10  ;;  %v877_v41 = vsub.f32 %v5870_v29, %v851_v16  ;;  %v1376_v0 = vpop.permute.xlu0 %1375 }
 0x3d5   : > { %4955 = vpow2.f32 %v905_v39  ;;  %v1386_v22 = vsel %vm531_vm1, %v1376_v0, 0 }
 0x3d6   : > { %v903_v20 = vmul.f32 1.442695, %v877_v41 }
 0x3d7   : > { %v1238_v43 = vpop.permute.xlu1 %1237 }
 0x3d8   : > { %4957 = vpow2.f32 %v903_v20  ;;  %v1372_v3 = vpop.permute.xlu0 %1371  ;;  %v1248_v9 = vsel %vm531_vm1, %v1238_v43, 0 }
 0x3da   : > { %v5975_v18 = vpop.eup %4947 }
 0x3db   : > { %v5977_v46 = vpop.eup %4949  ;;  %v1234_v47 = vpop.permute.xlu1 %1233  ;;  %v963_v52 = vpack.c.bf16 %v5975_v18, %v5971_v45 }
 0x3dc   : > { %v964_v29 = vpack.c.bf16 %v5973_v44, %v5977_v46  ;;  %v5983_v53 = vpop.eup %4951  ;;  %v1745_v13 = vpop.permute.xlu0 %1744 }
 0x3dd   : > { %4458 = vmatprep.mubr.msk.bf16.mxu1 %vm818_vm3, %v963_v52 }
 0x3de   : > { %v5986_v54 = vpop.eup %4953  ;;  %4459 = vmatmul.mubr.msk.bf16.vlgmr.msra.gmra.mrb[12].mxu1 %vm818_vm3, %v964_v29 }
 0x3df   : > { %4471 = vmatpush3.bf16.msra.mxu1 %v5665_v25  ;;  %v1236_v27 = vpop.permute.xlu1 %1235  ;;  %v967_v42 = vpack.c.bf16 %v5983_v53, %v5986_v54  ;;  %v5993_v60 = vpop.eup %4955 }
 0x3e0   : > { %4472 = vmatprep.subr.bf16.mxu1 %v5675_v37 }
 0x3e1   : > { %4474 = vmatprep.mubr.msk.bf16.mxu1 %vm818_vm3, %v967_v42 }
 0x3e2   : > { %v5996_v38 = vpop.eup %4957 }
 0x3e3   : > { %4473 = vmatpush3.bf16.msra.mxu1 %v5675_v37  ;;  %v1378_v1 = vpop.permute.xlu1 %1377  ;;  %v968_v40 = vpack.c.bf16 %v5993_v60, %v5996_v38 }
 0x3e4   : > { %4806 = vmatprep.subr.msk.bf16.mxu1 %vm531_vm1, %v1238_v43  ;;  %v1389_v33 = vsel %vm531_vm1, %v1378_v1, 0 }
 0x3e6   : > { %4475 = vmatmul.mubr.msk.bf16.vlgmr.msra.gmra.mrb[16].mxu1 %vm818_vm3, %v968_v40 }
 0x3e7   : > { %4490 = vmatprep.mubr.msk.bf16.mxu1 %vm531_vm1, %v1234_v47  ;;  %v1374_v7 = vpop.permute.xlu1 %1373 }
 0x3eb   : > { %v1743_v11 = vpop.permute.xlu1 %1742 }
 0x3ec   : > { %4487 = vmatpush3.bf16.xpose.msra.mxu1 %v1248_v9  ;;  %4526 = vmatprep.subr.bf16.mxu0 %v1743_v11 }
 0x3ed   : > { %4807 = vmatprep.subr.msk.bf16.mxu1 %vm531_vm1, %v1240_v26  ;;  %4527 = vmatpush3.bf16.msra.mxu0 %v1743_v11 }
 0x3ee   : > { %4528 = vmatprep.subr.bf16.mxu0 %v1745_v13 }
 0x3ef   : > { %v6006_v17 = vpop.permute.xlu1 %1868 }
 0x3f1   : > { %4529 = vmatpush3.bf16.msra.mxu0 %v1745_v13 }
 0x3f2   : > { %4542 = vmatprep.subr.bf16.mxu0 %v6006_v17 }
 0x3f4   : > { %4489 = vmatpush3.bf16.xpose.msra.mxu1 %v1251_v19 }
 0x3f5   : > { %4810 = vmatprep.subr.msk.bf16.mxu1 %vm531_vm1, %v1376_v0 }
 0x3fb   : > { %4491 = vmatmul.mubr.msk.bf16.vlgmr.msra.gmra.mrb[20].mxu1 %vm531_vm1, %v1236_v27 }
 0x3fc   : > { %4503 = vmatpush3.bf16.xpose.msra.mxu1 %v1386_v22  ;;  %4506 = vmatprep.mubr.msk.bf16.mxu1 %vm531_vm1, %v1372_v3 }
 0x3fd   : > { %4811 = vmatprep.subr.msk.bf16.mxu1 %vm531_vm1, %v1378_v1 }
 0x404   : > { %4505 = vmatpush3.bf16.xpose.msra.mxu1 %v1389_v33 }
 0x40b   : > { %4507 = vmatmul.mubr.msk.bf16.vlgmr.msra.gmra.mrb[24].mxu1 %vm531_vm1, %v1374_v7 }
 0x43b   : > { %v6017_v55 = vpop.f32.mrb[36].mxu0 }
 0x43c   : > { %7086 = vst [vmem:[#allocation30_spill] sm:$0xff] %v6017_v55  ;;  %v6019_v8 = vpop.f32.mrb[37].mxu0 }
 0x43d   : > { %v6021_v6 = vpop.f32.mrb[38].mxu0 }
 0x43e   : > { %7087 = vst [vmem:[#allocation31_spill] sm:$0xff] %v6021_v6  ;;  %v6023_v12 = vpop.f32.mrb[39].mxu0 }
 0x470   : > { %v6025_v10 = vpop.f32.mrb[40].mxu0 }
 0x471   : > { %7088 = vst [vmem:[#allocation32_spill] sm:$0xff] %v6025_v10  ;;  %v6027_v39 = vpop.f32.mrb[41].mxu0 }
 0x472   : > { %7089 = vst [vmem:[#allocation33_spill] sm:$0xff] %v6027_v39  ;;  %v6029_v16 = vpop.f32.mrb[42].mxu0 }
 0x473   : > { %7090 = vst [vmem:[#allocation34_spill] sm:$0xff] %v6029_v16  ;;  %v6031_v41 = vpop.f32.mrb[43].mxu0 }
 0x474   : > { %7091 = vst [vmem:[#allocation35_spill] sm:$0xff] %v6031_v41 }
 0x480   : > { %v4500_v20 = vpop.f32.mrb[44].mxu0 }
 0x481   : > { %v1356_v43 = vpop.f32.mrb[45].mxu0 }
 0x482   : > { %v4501_v26 = vpop.f32.mrb[46].mxu0 }
 0x483   : > { %v1359_v47 = vpop.f32.mrb[47].mxu0 }
 0x490   : > { %v4516_v52 = vpop.f32.mrb[48].mxu0 }
 0x491   : > { %v1494_v29 = vpop.f32.mrb[49].mxu0 }
 0x492   : > { %v4517_v27 = vpop.f32.mrb[50].mxu0 }
 0x493   : > { %v1497_v42 = vpop.f32.mrb[51].mxu0 }
 0x4b1   : > { %v6033_v0 = vpop.f32.mrb[12].mxu1 }
 0x4b2   : > { %v6035_v1 = vpop.f32.mrb[13].mxu1 }
 0x4b3   : > { %v6037_v40 = vpop.f32.mrb[14].mxu1 }
 0x4b4   : > { %v6039_v3 = vpop.f32.mrb[15].mxu1 }
 0x4b9   : > { %v6041_v7 = vpop.f32.mrb[16].mxu1 }
 0x4ba   : > { %7092 = vst [vmem:[#allocation36_spill] sm:$0xff] %v6041_v7  ;;  %v6043_v9 = vpop.f32.mrb[17].mxu1  ;;  %v6117_v7 = vsel %vm5758_vm5, %v1497_v42, -1e+30 }
 0x4bb   : > { %7093 = vst [vmem:[#allocation37_spill] sm:$0xff] %v6043_v9  ;;  %v6045_v11 = vpop.f32.mrb[18].mxu1  ;;  %v921_v9 = vsel %vm818_vm3, %v5977_v46, 0.0 }
 0x4bc   : > { %7094 = vst [vmem:[#allocation38_spill] sm:$0xff] %v6045_v11  ;;  %v6047_v13 = vpop.f32.mrb[19].mxu1 }
 0x4bd   : > { %7095 = vst [vmem:[#allocation39_spill] sm:$0xff] %v6047_v13 }
 0x4ce   : > { %v4492_v19 = vpop.f32.mrb[20].mxu1 }
 0x4cf   : > { %v6051_v22 = vsel %vm5744_vm2, %v4492_v19, -1e+30  ;;  %v1287_v33 = vpop.f32.mrb[21].mxu1  ;;  %v6067_v19 = vsel %vm5758_vm5, %v1359_v47, -1e+30 }
 0x4d0   : > { %v4493_v51 = vpop.f32.mrb[22].mxu1  ;;  %v1531_v4 = vsel %vm818_vm3, %v6051_v22, -inf  ;;  %v6057_v58 = vsel %vm5749_vm4, %v1287_v33, -1e+30 }
 0x4d1   : > { %1532 = vmax.xlane.f32.xlu0 %v1531_v4  ;;  %v1290_v48 = vpop.f32.mrb[23].mxu1  ;;  %v1525_v10 = vsel %vm818_vm3, %v6057_v58, -inf  ;;  %v6073_v33 = vsel %vm5768_vm6, %v4493_v51, -1e+30  ;;  %v6079_v4 = vsel %vm5744_vm2, %v4516_v52, -1e+30 }
 0x4d2   : > { %v6061_v63 = vsel %vm5758_vm5, %v1290_v48, -1e+30  ;;  %v1540_v48 = vsel %vm818_vm3, %v6067_v19, -inf  ;;  %v1534_v47 = vsel %vm818_vm3, %v6073_v33, -inf  ;;  %v1567_v51 = vsel %vm818_vm3, %v6079_v4, -inf }
 0x4d3   : > { %v1528_v16 = vsel %vm818_vm3, %v6061_v63, -inf }
 0x4d4   : > { %1529 = vmax.xlane.f32.xlu1 %v1528_v16  ;;  %v6085_v16 = vsel %vm5744_vm2, %v4500_v20, -1e+30 }
 0x4d5   : > { %1526 = vmax.xlane.f32.xlu0 %v1525_v10  ;;  %v6091_v10 = vsel %vm5749_vm4, %v1494_v29, -1e+30  ;;  %v1543_v52 = vsel %vm818_vm3, %v6085_v16, -inf }
 0x4d8   : > { %1541 = vmax.xlane.f32.xlu1 %v1540_v48  ;;  %v6097_v48 = vsel %vm5749_vm4, %v1356_v43, -1e+30 }
 0x4d9   : > { %1535 = vmax.xlane.f32.xlu0 %v1534_v47  ;;  %v1561_v47 = vsel %vm818_vm3, %v6091_v10, -inf  ;;  %v1537_v29 = vsel %vm818_vm3, %v6097_v48, -inf }
 0x4dc   : > { %1568 = vmax.xlane.f32.xlu1 %v1567_v51  ;;  %v6105_v51 = vsel %vm5768_vm6, %v4501_v26, -1e+30  ;;  %v1564_v26 = vsel %vm818_vm3, %v6117_v7, -inf }
 0x4dd   : > { %1544 = vmax.xlane.f32.xlu0 %v1543_v52  ;;  %v1546_v43 = vsel %vm818_vm3, %v6105_v51, -inf  ;;  %v6111_v52 = vsel %vm5768_vm6, %v4517_v27, -1e+30 }
 0x4de   : > { %v4508_v41 = vpop.f32.mrb[24].mxu1 }
 0x4df   : > { %v1425_v20 = vpop.f32.mrb[25].mxu1 }
 0x4e0   : > { %1562 = vmax.xlane.f32.xlu1 %v1561_v47  ;;  %v4509_v39 = vpop.f32.mrb[26].mxu1  ;;  %v1570_v47 = vsel %vm818_vm3, %v6111_v52, -inf }
 0x4e1   : > { %1538 = vmax.xlane.f32.xlu0 %v1537_v29  ;;  %v1428_v11 = vpop.f32.mrb[27].mxu1  ;;  %v6135_v29 = vsel %vm5749_vm4, %v1425_v20, -1e+30 }
 0x4e2   : > { %v6129_v27 = vsel %vm5758_vm5, %v1428_v11, -1e+30 }
 0x4e3   : > { %v1552_v42 = vsel %vm818_vm3, %v6129_v27, -inf }
 0x4e5   : > { %1547 = vmax.xlane.f32.xlu0 %v1546_v43  ;;  %v1549_v43 = vsel %vm818_vm3, %v6135_v29, -inf }
 0x4e9   : > { %1571 = vmax.xlane.f32.xlu0 %v1570_v47  ;;  %v6141_v47 = vsel %vm5744_vm2, %v4508_v41, -1e+30 }
 0x4ea   : > { %v1555_v11 = vsel %vm818_vm3, %v6141_v47, -inf }
 0x4ed   : > { %1565 = vmax.xlane.f32.xlu0 %v1564_v26  ;;  %v6147_v26 = vsel %vm5768_vm6, %v4509_v39, -1e+30  ;;  %v6167_v39 = vpop.permute.xlu1 %1870 }
 0x4ee   : > { %v1558_v20 = vsel %vm818_vm3, %v6147_v26, -inf }
 0x4f1   : > { %2296 = vrot.lane.b32.xlu1 %v5653_v14, %s5353_s17  ;;  %v6171_v41 = vpop.permute.xlu1 %2231 }
 0x4f5   : > { %2369 = vrot.lane.b32.xlu1 %v5673_v36, %s5352_s13 }
 0x503   : > { %2367 = vrot.lane.b32.xlu0 %v5663_v24, %s5352_s13 }
 0x519   : > { %1553 = vmax.xlane.f32.xlu1 %v1552_v42  ;;  %v6175_v42 = vpop.permute.xlu0 %2229 }
 0x522   : > { %1550 = vmax.xlane.f32.xlu0 %v1549_v43  ;;  %v6177_v43 = vpop.permute.xlu1 %2298 }
 0x526   : > { %1556 = vmax.xlane.f32.xlu0 %v1555_v11  ;;  %v6179_v11 = vpop.permute.xlu0 %2225 }
 0x52a   : > { %1559 = vmax.xlane.f32.xlu0 %v1558_v20  ;;  %2363 = vrot.lane.b32.xlu1 %v5663_v24, %s5353_s17  ;;  %v6181_v20 = vpop.permute.xlu1 %2300 }
 0x52e   : > { %2365 = vrot.lane.b32.xlu1 %v5673_v36, %s5353_s17  ;;  %v6183_v36 = vpop.permute.xlu0 %2227 }
 0x532   : > { %1679 = vrot.lane.b32.xlu1 %v5625_v49, %s5351_s28 }
 0x536   : > { %1681 = vrot.lane.b32.xlu1 %v5635_v59, %s5351_s28 }
 0x53a   : > { %2434 = vrot.lane.b32.xlu1 %v5695_v62, %s5353_s17 }
 0x53e   : > { %1807 = vrot.lane.b32.xlu1 %v5675_v37, %s5351_s28 }
 0x540   : > { %2436 = vrot.lane.b32.xlu0 %v5683_v50, %s5352_s13 }
 0x544   : > { %2438 = vrot.lane.b32.xlu0 %v5695_v62, %s5352_s13  ;;  %v6185_v62 = vpop.permute.xlu1 %2294 }
 0x548   : > { %2432 = vrot.lane.b32.xlu0 %v5683_v50, %s5353_s17  ;;  %v915_v50 = vsel %vm818_vm3, %v5971_v45, 0.0  ;;  %v927_v45 = vsel %vm818_vm3, %v5898_v35, 0.0  ;;  %v924_v35 = vsel %vm818_vm3, %v5973_v44, 0.0 }
 0x54c   : > { %1805 = vrot.lane.b32.xlu0 %v5665_v25, %s5351_s28  ;;  %s5273_s28 = sshll.u32 %s5356_s16, 4  ;;  %s5274_s28 = int_to_ptr.vmem [resolvable:$false] %s5273_s28 }
 0x54d   : > { %s5275_s13 = scalar_lea.vmem %s5274_s28, 4096  ;;  %p5276_p5 = scmp.lt.s32.totalorder %s6959_s10, %s5274_s28 }
 0x54e   : > { %p5277_p9 = scmp.lt.s32.totalorder %s5275_s13, %s5269_s15 }
 0x550   : > { %p5278_p12 = por %p5277_p9, %p5276_p5 }
 0x552   : > { %p5279_p1 = pnand %p5278_p12, %p5272_p3 }
 0x55e   : > { %v1533_v24 = vpop.xlane.xlu0 %1532 }
 0x561   : > { %v1530_v14 = vpop.xlane.xlu1 %1529 }
 0x562   : > { %v1574_v28 = vsub.f32 %v6061_v63, %v1530_v14  ;;  %v1527_v34 = vpop.xlane.xlu0 %1526  ;;  %916 = vadd.xlane.f32.xlu1 %v915_v50 }
 0x563   : > { %v1573_v23 = vsub.f32 %v6057_v58, %v1527_v34  ;;  %v918_v58 = vsel %vm818_vm3, %v5975_v18, 0.0 }
 0x564   : > { %v1591_v21 = vmul.f32 1.442695, %v1574_v28 }
 0x565   : > { %v1589_v13 = vmul.f32 1.442695, %v1573_v23  ;;  %v1542_v6 = vpop.xlane.xlu1 %1541 }
 0x566   : > { %4959 = vpow2.f32 %v1591_v21  ;;  %v6193_v55 = vpop.xlane.xlu0 %1535  ;;  %922 = vadd.xlane.f32.xlu1 %v921_v9  ;;  %v1578_v14 = vsub.f32 %v6067_v19, %v1542_v6  ;;  %v933_v21 = vsel %vm818_vm3, %v5906_v56, 0.0 }
 0x567   : > { %4961 = vpow2.f32 %v1589_v13  ;;  %v939_v13 = vsel %vm818_vm3, %v5986_v54, 0.0 }
 0x568   : > { %v1599_v23 = vmul.f32 1.442695, %v1578_v14  ;;  %v1575_v14 = vsub.f32 %v6051_v22, %v1533_v24 }
 0x569   : > { %v1569_v50 = vpop.xlane.xlu1 %1568 }
 0x56a   : > { %v1545_v63 = vpop.xlane.xlu0 %1544  ;;  %928 = vadd.xlane.f32.xlu1 %v927_v45  ;;  %4963 = vpow2.f32 %v1599_v23  ;;  %v930_v45 = vsel %vm818_vm3, %v5896_v31, 0.0  ;;  %v936_v31 = vsel %vm818_vm3, %v5909_v57, 0.0  ;;  %v1593_v23 = vmul.f32 1.442695, %v1575_v14 }
 0x56b   : > { %919 = vadd.xlane.f32.xlu0 %v918_v58  ;;  %v1579_v28 = vsub.f32 %v6085_v16, %v1545_v63  ;;  %v945_v58 = vsel %vm818_vm3, %v5996_v38, 0.0  ;;  %v1587_v24 = vsub.f32 %v6079_v4, %v1569_v50  ;;  %v942_v38 = vsel %vm818_vm3, %v5983_v53, 0.0 }
 0x56c   : > { %v1576_v4 = vsub.f32 %v6073_v33, %v6193_v55  ;;  %v957_v50 = vsel %vm818_vm3, %v5940_v32, 0.0  ;;  %v948_v53 = vsel %vm818_vm3, %v5993_v60, 0.0  ;;  %v954_v32 = vsel %vm818_vm3, %v5938_v30, 0.0 }
 0x56d   : > { %v1601_v56 = vmul.f32 1.442695, %v1579_v28  ;;  %v1563_v19 = vpop.xlane.xlu1 %1562  ;;  %v2240_v14 = vsel %vm531_vm1, %v6175_v42, 0 }
 0x56e   : > { %v1539_v34 = vpop.xlane.xlu0 %1538  ;;  %934 = vadd.xlane.f32.xlu1 %v933_v21  ;;  %v1585_v54 = vsub.f32 %v6091_v10, %v1563_v19  ;;  %v951_v10 = vsel %vm818_vm3, %v5942_v61, 0.0  ;;  %v1595_v33 = vmul.f32 1.442695, %v1576_v4 }
 0x56f   : > { %v1577_v46 = vsub.f32 %v6097_v48, %v1539_v34  ;;  %925 = vadd.xlane.f32.xlu0 %v924_v35 }
 0x570   : > { %v6206_v6 = vpop.eup %4959  ;;  %v1613_v22 = vmul.f32 1.442695, %v1585_v54 }
 0x571   : > { %v6208_v9 = vpop.eup %4961  ;;  %v1597_v18 = vmul.f32 1.442695, %v1577_v46 }
 0x572   : > { %v1548_v16 = vpop.xlane.xlu0 %1547  ;;  %940 = vadd.xlane.f32.xlu1 %v939_v13  ;;  %v1669_v44 = vpack.c.bf16 %v6206_v6, %v6208_v9 }
 0x573   : > { %4965 = vpow2.f32 %v1597_v18  ;;  %v1580_v48 = vsub.f32 %v6105_v51, %v1548_v16  ;;  %931 = vadd.xlane.f32.xlu0 %v930_v45 }
 0x574   : > { %4522 = vmatprep.mubr.msk.bf16.mxu1 %vm818_vm3, %v1669_v44  ;;  %4967 = vpow2.f32 %v1601_v56  ;;  %v6231_v57 = vpop.eup %4963  ;;  %v960_v56 = vsel %vm818_vm3, %v5944_v2, 0.0 }
 0x575   : > { %v1603_v63 = vmul.f32 1.442695, %v1580_v48 }
 0x576   : > { %v1572_v21 = vpop.xlane.xlu0 %1571  ;;  %946 = vadd.xlane.f32.xlu1 %v945_v58 }
 0x577   : > { %4969 = vpow2.f32 %v1603_v63  ;;  %v1588_v51 = vsub.f32 %v6111_v52, %v1572_v21  ;;  %937 = vadd.xlane.f32.xlu0 %v936_v31  ;;  %v1617_v52 = vmul.f32 1.442695, %v1587_v24  ;;  %v2297_v63 = vpop.permute.xlu1 %2296  ;;  %v2312_v21 = vsel %vm531_vm1, %v6181_v20, 0 }
 0x578   : > { %4971 = vpow2.f32 %v1593_v23 }
 0x579   : > { %v1619_v28 = vmul.f32 1.442695, %v1588_v51  ;;  %4973 = vpow2.f32 %v1613_v22 }
 0x57a   : > { %v1566_v34 = vpop.xlane.xlu0 %1565  ;;  %952 = vadd.xlane.f32.xlu1 %v951_v10 }
 0x57b   : > { %v1586_v35 = vsub.f32 %v6117_v7, %v1566_v34  ;;  %943 = vadd.xlane.f32.xlu0 %v942_v38  ;;  %4975 = vpow2.f32 %v1619_v28  ;;  %v2370_v58 = vpop.permute.xlu1 %2369  ;;  %v1624_v28 = vsel %vm818_vm3, %v6206_v6, 0.0 }
 0x57c   : > { %v2381_v4 = vsel %vm531_vm1, %v2370_v58, 0 }
 0x57d   : > { %v6233_v46 = vpop.eup %4965  ;;  %v1615_v61 = vmul.f32 1.442695, %v1586_v35 }
 0x57e   : > { %958 = vadd.xlane.f32.xlu1 %v957_v50  ;;  %v1671_v7 = vpack.c.bf16 %v6231_v57, %v6233_v46  ;;  %v6243_v18 = vpop.eup %4967  ;;  %v2368_v31 = vpop.permute.xlu0 %2367 }
 0x57f   : > { %4977 = vpow2.f32 %v1615_v61  ;;  %949 = vadd.xlane.f32.xlu0 %v948_v53  ;;  %v1639_v35 = vsel %vm818_vm3, %v6243_v18, 0.0 }
 0x580   : > { %4979 = vpow2.f32 %v1617_v52  ;;  %4530 = vmatprep.mubr.msk.bf16.mxu0 %vm818_vm3, %v1671_v7 }
 0x581   : > { %v4970_v55 = vpop.eup %4969  ;;  %4981 = vpow2.f32 %v1595_v33 }
 0x582   : > { %v1672_v13 = vpack.c.bf16 %v4970_v55, %v6243_v18  ;;  %v6251_v60 = vpop.eup %4971 }
 0x583   : > { %955 = vadd.xlane.f32.xlu0 %v954_v32  ;;  %v6256_v19 = vpop.eup %4973 }
 0x584   : > { %4531 = vmatmul.mubr.msk.bf16.vlgmr.msra.gmra.mrb[52].mxu0 %vm818_vm3, %v1672_v13 }
 0x585   : > { %4543 = vmatpush3.bf16.msra.mxu0 %v6006_v17  ;;  %v6258_v16 = vpop.eup %4975  ;;  %v1627_v17 = vsel %vm818_vm3, %v6251_v60, 0.0 }
 0x586   : > { %4544 = vmatprep.subr.bf16.mxu0 %v6167_v39 }
 0x587   : > { %961 = vadd.xlane.f32.xlu0 %v960_v56 }
 0x589   : > { %v6260_v30 = vpop.eup %4977  ;;  %4545 = vmatpush3.bf16.msra.mxu0 %v6167_v39  ;;  %v1621_v39 = vsel %vm818_vm3, %v6208_v9, 0.0  ;;  %v2243_v9 = vsel %vm531_vm1, %v6171_v41, 0 }
 0x58a   : > { %v6263_v45 = vpop.eup %4979  ;;  %4814 = vmatprep.subr.msk.bf16.mxu0 %vm531_vm1, %v6175_v42  ;;  %v1675_v2 = vpack.c.bf16 %v6260_v30, %v6256_v19  ;;  %v2309_v42 = vsel %vm531_vm1, %v6177_v43, 0 }
 0x58b   : > { %1628 = vadd.xlane.f32.xlu0 %v1627_v17  ;;  %v1676_v44 = vpack.c.bf16 %v6258_v16, %v6263_v45  ;;  %v4982_v48 = vpop.eup %4981 }
 0x58c   : > { %4546 = vmatprep.mubr.msk.bf16.mxu0 %vm818_vm3, %v1675_v2  ;;  %v1630_v54 = vsel %vm818_vm3, %v4982_v48, 0.0 }
 0x58d   : > { %4547 = vmatmul.mubr.msk.bf16.vlgmr.msra.gmra.mrb[56].mxu0 %vm818_vm3, %v1676_v44  ;;  %v1633_v44 = vsel %vm818_vm3, %v6233_v46, 0.0  ;;  %v1663_v46 = vsel %vm818_vm3, %v6263_v45, 0.0  ;;  %v1660_v45 = vsel %vm818_vm3, %v6260_v30, 0.0 }
 0x58e   : > { %4590 = vmatprep.mubr.msk.bf16.mxu0 %vm531_vm1, %v6179_v11  ;;  %v1642_v11 = vsel %vm818_vm3, %v4970_v55, 0.0 }
 0x58f   : > { %1622 = vadd.xlane.f32.xlu0 %v1621_v39  ;;  %2669 = vrot.lane.b32.xlu1 %v5625_v49, %s5353_s17 }
 0x592   : > { %4587 = vmatpush3.bf16.xpose.msra.mxu0 %v2240_v14 }
 0x593   : > { %4815 = vmatprep.subr.msk.bf16.mxu0 %vm531_vm1, %v6171_v41  ;;  %1631 = vadd.xlane.f32.xlu0 %v1630_v54  ;;  %v1636_v54 = vsel %vm818_vm3, %v6231_v57, 0.0  ;;  %v1666_v57 = vsel %vm818_vm3, %v6258_v16, 0.0 }
 0x597   : > { %1643 = vadd.xlane.f32.xlu0 %v1642_v11 }
 0x59a   : > { %4589 = vmatpush3.bf16.xpose.msra.mxu0 %v2243_v9 }
 0x59b   : > { %4816 = vmatprep.subr.msk.bf16.mxu0 %vm531_vm1, %v6177_v43 }
 0x5a1   : > { %4591 = vmatmul.mubr.msk.bf16.vlgmr.msra.gmra.mrb[60].mxu0 %vm531_vm1, %v6183_v36 }
 0x5a2   : > { %4595 = vmatpush3.bf16.xpose.msra.mxu0 %v2309_v42  ;;  %4598 = vmatprep.mubr.msk.bf16.mxu0 %vm531_vm1, %v6185_v62  ;;  %v2378_v62 = vsel %vm531_vm1, %v2368_v31, 0 }
 0x5a3   : > { %4817 = vmatprep.subr.msk.bf16.mxu0 %vm531_vm1, %v6181_v20 }
 0x5a6   : > { %v1554_v41 = vpop.xlane.xlu1 %1553 }
 0x5a7   : > { %v1582_v36 = vsub.f32 %v6129_v27, %v1554_v41 }
 0x5a9   : > { %v1607_v23 = vmul.f32 1.442695, %v1582_v36 }
 0x5aa   : > { %4597 = vmatpush3.bf16.xpose.msra.mxu0 %v2312_v21  ;;  %v2364_v51 = vpop.permute.xlu1 %2363 }
 0x5ab   : > { %4818 = vmatprep.subr.msk.bf16.mxu0 %vm531_vm1, %v2368_v31  ;;  %4983 = vpow2.f32 %v1607_v23 }
 0x5ae   : > { %v2366_v43 = vpop.permute.xlu1 %2365 }
 0x5af   : > { %v1551_v24 = vpop.xlane.xlu0 %1550 }
 0x5b0   : > { %v1581_v22 = vsub.f32 %v6135_v29, %v1551_v24 }
 0x5b1   : > { %4599 = vmatmul.mubr.msk.bf16.vlgmr.msra.gmra.mrb[64].mxu0 %vm531_vm1, %v2297_v63  ;;  %v1657_v63 = vsel %vm818_vm3, %v6256_v19, 0.0 }
 0x5b2   : > { %v1605_v10 = vmul.f32 1.442695, %v1581_v22  ;;  %4603 = vmatpush3.bf16.xpose.msra.mxu0 %v2378_v62  ;;  %4606 = vmatprep.mubr.msk.bf16.mxu0 %vm531_vm1, %v2364_v51  ;;  %v1680_v20 = vpop.permute.xlu1 %1679 }
 0x5b3   : > { %4819 = vmatprep.subr.msk.bf16.mxu0 %vm531_vm1, %v2370_v58  ;;  %v1557_v27 = vpop.xlane.xlu0 %1556  ;;  %1625 = vadd.xlane.f32.xlu1 %v1624_v28 }
 0x5b4   : > { %4985 = vpow2.f32 %v1605_v10  ;;  %v1583_v29 = vsub.f32 %v6141_v47, %v1557_v27  ;;  %4518 = vmatprep.subr.bf16.mxu1 %v1680_v20  ;;  %v1670_v47 = vpack.c.bf16 %v4982_v48, %v6251_v60 }
 0x5b5   : > { %4519 = vmatpush3.bf16.msra.mxu1 %v1680_v20  ;;  %v4984_v53 = vpop.eup %4983 }
 0x5b6   : > { %v1609_v34 = vmul.f32 1.442695, %v1583_v29  ;;  %v1682_v38 = vpop.permute.xlu1 %1681  ;;  %v1648_v11 = vsel %vm818_vm3, %v4984_v53, 0.0 }
 0x5b7   : > { %v1560_v52 = vpop.xlane.xlu0 %1559  ;;  %1640 = vadd.xlane.f32.xlu1 %v1639_v35  ;;  %4520 = vmatprep.subr.bf16.mxu1 %v1682_v38 }
 0x5b8   : > { %4987 = vpow2.f32 %v1609_v34  ;;  %v1584_v6 = vsub.f32 %v6147_v26, %v1560_v52 }
 0x5b9   : > { %4521 = vmatpush3.bf16.msra.mxu1 %v1682_v38 }
 0x5ba   : > { %v1611_v61 = vmul.f32 1.442695, %v1584_v6  ;;  %4605 = vmatpush3.bf16.xpose.msra.mxu0 %v2381_v4  ;;  %v2435_v60 = vpop.permute.xlu1 %2434 }
 0x5bb   : > { %v2437_v50 = vpop.permute.xlu0 %2436 }
 0x5bc   : > { %4989 = vpow2.f32 %v1611_v61  ;;  %4523 = vmatmul.mubr.msk.bf16.vlgmr.msra.gmra.mrb[28].mxu1 %vm818_vm3, %v1670_v47  ;;  %4820 = vmatprep.subr.msk.bf16.mxu0 %vm531_vm1, %v2437_v50  ;;  %v2447_v26 = vsel %vm531_vm1, %v2437_v50, 0  ;;  %v7096_v50 = vld [vmem:[#allocation30_spill] sm:$0xff] }
 0x5be   : > { %v4986_v7 = vpop.eup %4985  ;;  %v1808_v48 = vpop.permute.xlu1 %1807 }
 0x5bf   : > { %v2439_v18 = vpop.permute.xlu0 %2438  ;;  %v1673_v55 = vpack.c.bf16 %v4984_v53, %v4986_v7  ;;  %v1645_v14 = vsel %vm818_vm3, %v4986_v7, 0.0  ;;  %v7097_v7 = vld [vmem:[#allocation31_spill] sm:$0xff] }
 0x5c0   : > { %v2450_v39 = vsel %vm531_vm1, %v2439_v18, 0 }
 0x5c1   : > { %4607 = vmatmul.mubr.msk.bf16.vlgmr.msra.gmra.mrb[68].mxu0 %vm531_vm1, %v2366_v43  ;;  %4538 = vmatprep.mubr.msk.bf16.mxu1 %vm818_vm3, %v1673_v55  ;;  %v4923_v55 = vld [vmem:[#allocation7 + $0x8] sm:$0xff]  }
 0x5c2   : > { %v4988_v33 = vpop.eup %4987  ;;  %4611 = vmatpush3.bf16.xpose.msra.mxu0 %v2447_v26 }
 0x5c3   : > { %4821 = vmatprep.subr.msk.bf16.mxu0 %vm531_vm1, %v2439_v18  ;;  %v2433_v32 = vpop.permute.xlu0 %2432  ;;  %v1651_v13 = vsel %vm818_vm3, %v4988_v33, 0.0 }
 0x5c4   : > { %1652 = vadd.xlane.f32.xlu1 %v1651_v13  ;;  %4614 = vmatprep.mubr.msk.bf16.mxu0 %vm531_vm1, %v2433_v32  ;;  %v7098_v32 = vld [vmem:[#allocation37_spill] sm:$0xff] }
 0x5c6   : > { %v4990_v56 = vpop.eup %4989 }
 0x5c7   : > { %v1806_v17 = vpop.permute.xlu0 %1805  ;;  %v1654_v2 = vsel %vm818_vm3, %v4990_v56, 0.0  ;;  %v1674_v9 = vpack.c.bf16 %v4990_v56, %v4988_v33 }
 0x5c8   : > { %1655 = vadd.xlane.f32.xlu0 %v1654_v2  ;;  %1634 = vadd.xlane.f32.xlu1 %v1633_v44  ;;  %v6390_v2 = vld [vmem:[#allocation7] sm:$0xff]  }
 0x5c9   : > { %4534 = vmatprep.subr.bf16.mxu1 %v1806_v17 }
 0x5ca   : > { %4535 = vmatpush3.bf16.msra.mxu1 %v1806_v17  ;;  %4613 = vmatpush3.bf16.xpose.msra.mxu0 %v2450_v39 }
 0x5cb   : > { %4536 = vmatprep.subr.bf16.mxu1 %v1808_v48 }
 0x5cc   : > { %1646 = vadd.xlane.f32.xlu1 %v1645_v14  ;;  %1637 = vadd.xlane.f32.xlu0 %v1636_v54  ;;  %v7101_v54 = vld [vmem:[#allocation38_spill] sm:$0xff] }
 0x5ce   : > { %4537 = vmatpush3.bf16.msra.mxu1 %v1808_v48  ;;  %v7100_v48 = vld [vmem:[#allocation36_spill] sm:$0xff] }
 0x5cf   : > { %4550 = vmatprep.subr.bf16.mxu1 %v4923_v55 }
 0x5d0   : > { %1664 = vadd.xlane.f32.xlu1 %v1663_v46  ;;  %1649 = vadd.xlane.f32.xlu0 %v1648_v11 }
 0x5d1   : > { %4539 = vmatmul.mubr.msk.bf16.vlgmr.msra.gmra.mrb[32].mxu1 %vm818_vm3, %v1674_v9  ;;  %4615 = vmatmul.mubr.msk.bf16.vlgmr.msra.gmra.mrb[72].mxu0 %vm531_vm1, %v2435_v60  ;;  %v7099_v60 = vld [vmem:[#allocation39_spill] sm:$0xff] }
 0x5d2   : > { %4551 = vmatpush3.bf16.msra.mxu1 %v4923_v55 }
 0x5d3   : > { %4568 = vmatprep.subr.bf16.mxu1 %v6390_v2 }
 0x5d4   : > { %1658 = vadd.xlane.f32.xlu1 %v1657_v63  ;;  %1667 = vadd.xlane.f32.xlu0 %v1666_v57  ;;  %v7102_v57 = vld [vmem:[#allocation33_spill] sm:$0xff] }
 0x5d8   : > { %1661 = vadd.xlane.f32.xlu0 %v1660_v45 }
 0x5e5   : > { %2730 = vrot.lane.b32.xlu1 %v5643_v5, %s5353_s17 }
 0x5e9   : > { %2732 = vrot.lane.b32.xlu1 %v5655_v15, %s5353_s17 }
 0x5ed   : > { %2791 = vrot.lane.b32.xlu1 %v5665_v25, %s5353_s17 }
 0x5ee   : > { %2671 = vrot.lane.b32.xlu0 %v5635_v59, %s5353_s17 }
 0x5ef   : > { %v917_v19 = vpop.xlane.xlu1 %916 }
 0x5f0   : > { %4991 = vrcp.f32 %v917_v19  ;;  %v7103_v19 = vld [vmem:[#allocation35_spill] sm:$0xff] }
 0x5f1   : > { %2793 = vrot.lane.b32.xlu1 %v5675_v37, %s5353_s17 }
 0x5f3   : > { %v923_v16 = vpop.xlane.xlu1 %922 }
 0x5f7   : > { %v929_v30 = vpop.xlane.xlu1 %928 }
 0x5f8   : > { %v920_v42 = vpop.xlane.xlu0 %919 }
 0x5f9   : > { %4993 = vrcp.f32 %v920_v42 }
 0x5fa   : > { %4995 = vrcp.f32 %v923_v16  ;;  %v4992_v51 = vpop.eup %4991 }
 0x5fb   : > { %v935_v58 = vpop.xlane.xlu1 %934  ;;  %v6353_v24 = vmul.f32 %v4992_v51, %v6035_v1 }
 0x5fc   : > { %v926_v41 = vpop.xlane.xlu0 %925 }
 0x5fd   : > { %4997 = vrcp.f32 %v926_v41  ;;  %v7104_v41 = vld [vmem:[#allocation32_spill] sm:$0xff] }
 0x5fe   : > { %4999 = vrcp.f32 %v929_v30 }
 0x5ff   : > { %v941_v21 = vpop.xlane.xlu1 %940 }
 0x600   : > { %v932_v31 = vpop.xlane.xlu0 %931 }
 0x601   : > { %5001 = vrcp.f32 %v932_v31  ;;  %v7105_v31 = vld [vmem:[#allocation34_spill] sm:$0xff] }
 0x602   : > { %5003 = vrcp.f32 %v935_v58 }
 0x603   : > { %v4994_v36 = vpop.eup %4993  ;;  %v947_v43 = vpop.xlane.xlu1 %946 }
 0x604   : > { %v938_v23 = vpop.xlane.xlu0 %937  ;;  %v6356_v22 = vmul.f32 %v4994_v36, %v6039_v3  ;;  %v4996_v62 = vpop.eup %4995 }
 0x605   : > { %5005 = vrcp.f32 %v938_v23  ;;  %v6361_v28 = vmul.f32 %v4996_v62, %v6033_v0 }
 0x606   : > { %5007 = vrcp.f32 %v941_v21 }
 0x607   : > { %v4998_v20 = vpop.eup %4997  ;;  %v953_v3 = vpop.xlane.xlu1 %952 }
 0x608   : > { %v6364_v27 = vmul.f32 %v4998_v20, %v6037_v40  ;;  %v944_v29 = vpop.xlane.xlu0 %943  ;;  %v5000_v34 = vpop.eup %4999 }
 0x609   : > { %5009 = vrcp.f32 %v944_v29  ;;  %v6369_v52 = vmul.f32 %v5000_v34, %v6019_v8 }
 0x60a   : > { %5011 = vrcp.f32 %v947_v43 }
 0x60b   : > { %v5002_v38 = vpop.eup %5001  ;;  %v959_v61 = vpop.xlane.xlu1 %958 }
 0x60c   : > { %v950_v35 = vpop.xlane.xlu0 %949  ;;  %v6372_v6 = vmul.f32 %v5002_v38, %v6023_v12  ;;  %v5004_v0 = vpop.eup %5003 }
 0x60d   : > { %5013 = vrcp.f32 %v950_v35  ;;  %v6377_v53 = vmul.f32 %v5004_v0, %v7096_v50 }
 0x60e   : > { %5015 = vrcp.f32 %v953_v3 }
 0x60f   : > { %v5006_v4 = vpop.eup %5005  ;;  %v6423_v62 = vpop.permute.xlu1 %2669 }
 0x610   : > { %v956_v47 = vpop.xlane.xlu0 %955  ;;  %v6380_v18 = vmul.f32 %v5006_v4, %v7097_v7  ;;  %v5008_v8 = vpop.eup %5007 }
 0x611   : > { %5017 = vrcp.f32 %v956_v47  ;;  %v6385_v13 = vmul.f32 %v5008_v8, %v7098_v32 }
 0x612   : > { %5019 = vrcp.f32 %v959_v61 }
 0x613   : > { %v5010_v26 = vpop.eup %5009 }
 0x614   : > { %v962_v33 = vpop.xlane.xlu0 %961  ;;  %v6388_v56 = vmul.f32 %v5010_v26, %v7099_v60  ;;  %v5012_v17 = vpop.eup %5011 }
 0x615   : > { %5021 = vrcp.f32 %v962_v33  ;;  %v6396_v14 = vmul.f32 %v5012_v17, %v7100_v48 }
 0x617   : > { %v5014_v39 = vpop.eup %5013 }
 0x618   : > { %v6399_v46 = vmul.f32 %v5014_v39, %v7101_v54  ;;  %v5016_v11 = vpop.eup %5015  ;;  %v6419_v43 = vpop.xlane.xlu0 %1628 }
 0x619   : > { %v6404_v45 = vmul.f32 %v5016_v11, %v7102_v57 }
 0x61b   : > { %v5018_v63 = vpop.eup %5017 }
 0x61c   : > { %v6407_v16 = vmul.f32 %v5018_v63, %v7103_v19  ;;  %v5020_v30 = vpop.eup %5019  ;;  %v6421_v23 = vpop.xlane.xlu0 %1622 }
 0x61d   : > { %v6412_v21 = vmul.f32 %v5020_v30, %v7104_v41 }
 0x61f   : > { %v5022_v58 = vpop.eup %5021 }
 0x620   : > { %v6415_v51 = vmul.f32 %v5022_v58, %v7105_v31  ;;  %v6425_v20 = vpop.xlane.xlu0 %1631 }
 0x624   : > { %v1644_v34 = vpop.xlane.xlu0 %1643 }
 0x625   : > { %5023 = vrcp.f32 %v1644_v34 }
 0x62f   : > { %v5024_v61 = vpop.eup %5023 }
 0x640   : > { %v6427_v29 = vpop.xlane.xlu1 %1625 }
 0x644   : > { %v1641_v3 = vpop.xlane.xlu1 %1640 }
 0x645   : > { %5025 = vrcp.f32 %v1641_v3 }
 0x64f   : > { %v5026_v50 = vpop.eup %5025 }
 0x651   : > { %v6429_v38 = vpop.xlane.xlu1 %1652 }
 0x655   : > { %v6431_v35 = vpop.xlane.xlu0 %1655  ;;  %v1635_v0 = vpop.xlane.xlu1 %1634 }
 0x656   : > { %5027 = vrcp.f32 %v1635_v0 }
 0x657   : > { %v4532_v4 = vpop.f32.mrb[52].mxu0 }
 0x658   : > { %v1788_v47 = vpop.f32.mrb[53].mxu0  ;;  %v6433_v55 = vmul.f32 %v5026_v50, %v4532_v4 }
 0x659   : > { %v4533_v7 = vpop.f32.mrb[54].mxu0  ;;  %v1638_v8 = vpop.xlane.xlu0 %1637 }
 0x65a   : > { %v6435_v26 = vmul.f32 %v5024_v61, %v4533_v7  ;;  %5029 = vrcp.f32 %v1638_v8  ;;  %v6437_v33 = vpop.xlane.xlu1 %1646  ;;  %v1791_v32 = vpop.f32.mrb[55].mxu0 }
 0x65d   : > { %v6441_v17 = vpop.xlane.xlu0 %1649 }
 0x65e   : > { %v1665_v39 = vpop.xlane.xlu1 %1664 }
 0x65f   : > { %5031 = vrcp.f32 %v1665_v39 }
 0x660   : > { %v4548_v48 = vpop.f32.mrb[56].mxu0  ;;  %v5028_v63 = vpop.eup %5027 }
 0x661   : > { %v1914_v54 = vpop.f32.mrb[57].mxu0  ;;  %v1668_v11 = vpop.xlane.xlu0 %1667  ;;  %v6443_v41 = vmul.f32 %v5028_v63, %v1788_v47 }
 0x662   : > { %5033 = vrcp.f32 %v1668_v11  ;;  %v1659_v57 = vpop.xlane.xlu1 %1658  ;;  %v4549_v19 = vpop.f32.mrb[58].mxu0 }
 0x663   : > { %v1917_v30 = vpop.f32.mrb[59].mxu0  ;;  %5035 = vrcp.f32 %v1659_v57 }
 0x664   : > { %v5030_v58 = vpop.eup %5029 }
 0x665   : > { %v6445_v31 = vmul.f32 %v5030_v58, %v1791_v32  ;;  %v1662_v34 = vpop.xlane.xlu0 %1661 }
 0x666   : > { %5037 = vrcp.f32 %v1662_v34  ;;  %v2731_v3 = vpop.permute.xlu1 %2730 }
 0x667   : > { %4626 = vmatprep.subr.bf16.mxu0 %v2731_v3  ;;  %5039 = vrcp.f32 %v6419_v43 }
 0x668   : > { %4627 = vmatpush3.bf16.msra.mxu0 %v2731_v3  ;;  %5041 = vrcp.f32 %v6421_v23 }
 0x669   : > { %v5032_v4 = vpop.eup %5031  ;;  %5043 = vrcp.f32 %v6425_v20 }
 0x66a   : > { %v6449_v61 = vmul.f32 %v5032_v4, %v4548_v48  ;;  %v2733_v50 = vpop.permute.xlu1 %2732  ;;  %5045 = vrcp.f32 %v6427_v29 }
 0x66b   : > { %4628 = vmatprep.subr.bf16.mxu0 %v2733_v50  ;;  %5047 = vrcp.f32 %v6429_v38 }
 0x66c   : > { %v5034_v7 = vpop.eup %5033  ;;  %4629 = vmatpush3.bf16.msra.mxu0 %v2733_v50  ;;  %5049 = vrcp.f32 %v6431_v35 }
 0x66d   : > { %v6451_v8 = vmul.f32 %v5034_v7, %v4549_v19  ;;  %v5036_v47 = vpop.eup %5035  ;;  %5051 = vrcp.f32 %v6437_v33 }
 0x66e   : > { %v6455_v11 = vmul.f32 %v5036_v47, %v1914_v54  ;;  %5053 = vrcp.f32 %v6441_v17  ;;  %v7132_v54 = vld [vmem:[#allocation17_spill] sm:$0xff] }
 0x670   : > { %v5038_v39 = vpop.eup %5037 }
 0x671   : > { %v6457_v63 = vmul.f32 %v5038_v39, %v1917_v30 }
 0x674   : > { %v4592_v48 = vpop.f32.mrb[60].mxu0 }
 0x675   : > { %v6463_v34 = vsel %vm5744_vm2, %v4592_v48, -1e+30  ;;  %v2279_v3 = vpop.f32.mrb[61].mxu0  ;;  %v7134_v48 = vld [vmem:[#allocation19_spill] sm:$0xff] }
 0x676   : > { %v2523_v19 = vsel %vm818_vm3, %v6463_v34, -inf  ;;  %v4593_v4 = vpop.f32.mrb[62].mxu0  ;;  %v6469_v7 = vsel %vm5749_vm4, %v2279_v3, -1e+30 }
 0x677   : > { %v6473_v30 = vsel %vm5768_vm6, %v4593_v4, -1e+30  ;;  %v2282_v47 = vpop.f32.mrb[63].mxu0  ;;  %2524 = vmax.xlane.f32.xlu1 %v2523_v19  ;;  %v2517_v42 = vsel %vm818_vm3, %v6469_v7, -inf }
 0x678   : > { %v2526_v39 = vsel %vm818_vm3, %v6473_v30, -inf  ;;  %v6479_v36 = vsel %vm5758_vm5, %v2282_v47, -1e+30 }
 0x679   : > { %2527 = vmax.xlane.f32.xlu0 %v2526_v39  ;;  %v2520_v3 = vsel %vm818_vm3, %v6479_v36, -inf }
 0x67b   : > { %2518 = vmax.xlane.f32.xlu1 %v2517_v42 }
 0x67d   : > { %2521 = vmax.xlane.f32.xlu0 %v2520_v3 }
 0x684   : > { %v4600_v4 = vpop.f32.mrb[64].mxu0 }
 0x685   : > { %v6488_v19 = vsel %vm5744_vm2, %v4600_v4, -1e+30  ;;  %v2348_v9 = vpop.f32.mrb[65].mxu0 }
 0x686   : > { %v2535_v47 = vsel %vm818_vm3, %v6488_v19, -inf  ;;  %v4601_v39 = vpop.f32.mrb[66].mxu0  ;;  %v6496_v42 = vsel %vm5749_vm4, %v2348_v9, -1e+30 }
 0x687   : > { %v6500_v43 = vsel %vm5768_vm6, %v4601_v39, -1e+30  ;;  %2536 = vmax.xlane.f32.xlu1 %v2535_v47  ;;  %v2351_v3 = vpop.f32.mrb[67].mxu0  ;;  %v2529_v9 = vsel %vm818_vm3, %v6496_v42, -inf  ;;  %v5040_v47 = vpop.eup %5039 }
 0x688   : > { %v2538_v23 = vsel %vm818_vm3, %v6500_v43, -inf  ;;  %v6507_v4 = vsel %vm5758_vm5, %v2351_v3, -1e+30  ;;  %v5042_v44 = vpop.eup %5041 }
 0x689   : > { %2539 = vmax.xlane.f32.xlu0 %v2538_v23  ;;  %v2532_v20 = vsel %vm818_vm3, %v6507_v4, -inf  ;;  %v5044_v12 = vpop.eup %5043 }
 0x68a   : > { %v5046_v1 = vpop.eup %5045 }
 0x68b   : > { %2530 = vmax.xlane.f32.xlu1 %v2529_v9 }
 0x68d   : > { %2533 = vmax.xlane.f32.xlu0 %v2532_v20 }
 0x68f   : > { %v4524_v39 = vpop.f32.mrb[28].mxu1 }
 0x690   : > { %v1725_v29 = vpop.f32.mrb[29].mxu1  ;;  %v1947_v10 = vmul.f32 %v5040_v47, %v4524_v39 }
 0x691   : > { %v4525_v40 = vpop.f32.mrb[30].mxu1  ;;  %v1945_v57 = vmul.f32 %v5042_v44, %v1725_v29  ;;  %v5048_v44 = vpop.eup %5047 }
 0x692   : > { %v1948_v32 = vmul.f32 %v5044_v12, %v4525_v40  ;;  %v1728_v3 = vpop.f32.mrb[31].mxu1 }
 0x693   : > { %v1946_v23 = vmul.f32 %v5046_v1, %v1728_v3 }
 0x694   : > { %v1962_v60 = vpack.c.bf16 %v1948_v32, %v1947_v10  ;;  %v4608_v0 = vpop.f32.mrb[68].mxu0 }
 0x695   : > { %v1961_v37 = vpack.c.bf16 %v1946_v23, %v1945_v57  ;;  %v6515_v9 = vsel %vm5744_vm2, %v4608_v0, -1e+30  ;;  %v2417_v20 = vpop.f32.mrb[69].mxu0 }
 0x696   : > { %v2547_v25 = vsel %vm818_vm3, %v6515_v9, -inf  ;;  %v4609_v59 = vpop.f32.mrb[70].mxu0  ;;  %v6521_v15 = vsel %vm5749_vm4, %v2417_v20, -1e+30 }
 0x697   : > { %v6525_v40 = vsel %vm5768_vm6, %v4609_v59, -1e+30  ;;  %2548 = vmax.xlane.f32.xlu1 %v2547_v25  ;;  %4552 = vmatprep.mubr.msk.bf16.mxu1 %vm531_vm1, %v1961_v37  ;;  %v2420_v10 = vpop.f32.mrb[71].mxu0  ;;  %v2541_v59 = vsel %vm818_vm3, %v6521_v15, -inf  ;;  %v7110_v25 = vpack.c.bf16 %v6445_v31, %v6443_v41  ;;  %v5050_v41 = vpop.eup %5049 }
 0x698   : > { %v2550_v1 = vsel %vm818_vm3, %v6525_v40, -inf  ;;  %4553 = vmatmul.mubr.msk.bf16.vlgmr.msra.gmra.mrb[36].mxu1 %vm531_vm1, %v1962_v60  ;;  %v6533_v12 = vsel %vm5758_vm5, %v2420_v10, -1e+30  ;;  %v5052_v0 = vpop.eup %5051 }
 0x699   : > { %4569 = vmatpush3.bf16.msra.mxu1 %v6390_v2  ;;  %2551 = vmax.xlane.f32.xlu0 %v2550_v1  ;;  %v2544_v37 = vsel %vm818_vm3, %v6533_v12, -inf  ;;  %v7111_v2 = vpack.c.bf16 %v6435_v26, %v6433_v55  ;;  %v5054_v57 = vpop.eup %5053 }
 0x69a   : > { %4556 = vmatprep.mubr.msk.bf16.mxu1 %vm531_vm1, %v7110_v25  ;;  %4618 = vmatprep.subr.bf16.mxu1 %v6423_v62 }
 0x69b   : > { %2542 = vmax.xlane.f32.xlu1 %v2541_v59 }
 0x69d   : > { %2545 = vmax.xlane.f32.xlu0 %v2544_v37 }
 0x6a0   : > { %4557 = vmatmul.mubr.msk.bf16.gmra.mrb[40].mxu1 %vm531_vm1, %v7111_v2 }
 0x6a4   : > { %v4540_v38 = vpop.f32.mrb[32].mxu1  ;;  %v4616_v60 = vpop.f32.mrb[72].mxu0 }
 0x6a5   : > { %v6555_v35 = vsel %vm5744_vm2, %v4616_v60, -1e+30  ;;  %v1851_v33 = vpop.f32.mrb[33].mxu1  ;;  %v2486_v31 = vpop.f32.mrb[73].mxu0  ;;  %v1955_v47 = vmul.f32 %v5048_v44, %v4540_v38  ;;  %v7112_v38 = vpack.c.bf16 %v6457_v63, %v6455_v11  ;;  %v7113_v60 = vpack.c.bf16 %v6451_v8, %v6449_v61  ;;  %v7120_v63 = vld [vmem:[#allocation15_spill] sm:$0xff] }
 0x6a6   : > { %v2559_v17 = vsel %vm818_vm3, %v6555_v35, -inf  ;;  %v6561_v32 = vsel %vm5749_vm4, %v2486_v31, -1e+30  ;;  %v4541_v55 = vpop.f32.mrb[34].mxu1  ;;  %v4617_v26 = vpop.f32.mrb[74].mxu0  ;;  %v1953_v10 = vmul.f32 %v5052_v0, %v1851_v33  ;;  %v7115_v33 = vld [vmem:[#allocation25_spill] sm:$0xff]  ;;  %v7117_v11 = vpack.c.bf16 %v6364_v27, %v6361_v28 }
 0x6a7   : > { %v2553_v39 = vsel %vm818_vm3, %v6561_v32, -inf  ;;  %v1956_v29 = vmul.f32 %v5050_v41, %v4541_v55  ;;  %v6567_v3 = vsel %vm5768_vm6, %v4617_v26, -1e+30  ;;  %2560 = vmax.xlane.f32.xlu0 %v2559_v17  ;;  %v1854_v23 = vpop.f32.mrb[35].mxu1  ;;  %v2489_v20 = vpop.f32.mrb[75].mxu0  ;;  %v7114_v41 = vpack.c.bf16 %v6356_v22, %v6353_v24  ;;  %v7116_v31 = vld [vmem:[#allocation12_spill] sm:$0xff] }
 0x6a8   : > { %v1954_v1 = vmul.f32 %v5054_v57, %v1854_v23  ;;  %2554 = vmax.xlane.f32.xlu1 %v2553_v39  ;;  %v2562_v25 = vsel %vm818_vm3, %v6567_v3, -inf  ;;  %v6573_v2 = vsel %vm5758_vm5, %v2489_v20, -1e+30  ;;  %v2672_v61 = vpop.permute.xlu0 %2671  ;;  %v7118_v24 = vpack.c.bf16 %v6372_v6, %v6369_v52  ;;  %v7119_v22 = vld [vmem:[#allocation13_spill] sm:$0xff]  ;;  %v2792_v8 = vpop.permute.xlu1 %2791  ;;  %v7121_v28 = vld [vmem:[#allocation23_spill] sm:$0xff]  ;;  %v7124_v6 = vld [vmem:[#allocation16_spill] sm:$0xff] }
 0x6a9   : > { %v1966_v59 = vpack.c.bf16 %v1956_v29, %v1955_v47  ;;  %v2556_v44 = vsel %vm818_vm3, %v6573_v2, -inf  ;;  %v7122_v27 = vpack.c.bf16 %v6380_v18, %v6377_v53  ;;  %v7123_v52 = vpack.c.bf16 %v6388_v56, %v6385_v13  ;;  %v7127_v13 = vld [vmem:[#allocation18_spill] sm:$0xff] }
 0x6aa   : > { %v1965_v37 = vpack.c.bf16 %v1954_v1, %v1953_v10  ;;  %v7125_v53 = vpack.c.bf16 %v6399_v46, %v6396_v14  ;;  %v7126_v18 = vpack.c.bf16 %v6407_v16, %v6404_v45  ;;  %v7128_v56 = vpack.c.bf16 %v6415_v51, %v6412_v21 }
 0x6ab   : > { %2563 = vmax.xlane.f32.xlu0 %v2562_v25 }
 0x6ac   : > { %4560 = vmatprep.mubr.msk.bf16.mxu1 %vm531_vm1, %v1965_v37 }
 0x6ad   : > { %4561 = vmatmul.mubr.msk.bf16.gmra.mrb[44].mxu1 %vm531_vm1, %v1966_v59 }
 0x6ae   : > { %4564 = vmatprep.mubr.msk.bf16.mxu1 %vm531_vm1, %v7112_v38 }
 0x6af   : > { %2557 = vmax.xlane.f32.xlu0 %v2556_v44 }
 0x6b5   : > { %4565 = vmatmul.mubr.msk.bf16.gmra.mrb[48].mxu1 %vm531_vm1, %v7113_v60 }
 0x6b6   : > { %4570 = vmatprep.mubr.msk.bf16.mxu1 %vm531_vm1, %v7114_v41 }
 0x6b9   : > { %2854 = vrot.lane.b32.xlu1 %v7115_v33, %s5353_s17 }
 0x6bd   : > { %3102 = vrot.lane.b32.xlu1 %v7116_v31, %s5354_s11  ;;  %4571 = vmatmul.mubr.msk.bf16.vlgmr.msra.gmra.mrb[36].mxu1 %vm531_vm1, %v7117_v11 }
 0x6be   : > { %4619 = vmatpush3.bf16.msra.mxu1 %v6423_v62  ;;  %4574 = vmatprep.mubr.msk.bf16.mxu1 %vm531_vm1, %v7118_v24  ;;  %v2794_v62 = vpop.permute.xlu1 %2793 }
 0x6bf   : > { %4620 = vmatprep.subr.bf16.mxu1 %v2672_v61 }
 0x6c1   : > { %3104 = vrot.lane.b32.xlu1 %v7119_v22, %s5354_s11 }
 0x6c2   : > { %4621 = vmatpush3.bf16.msra.mxu1 %v2672_v61 }
 0x6c3   : > { %4634 = vmatprep.subr.bf16.mxu1 %v2792_v8 }
 0x6c5   : > { %3171 = vrot.lane.b32.xlu1 %v7120_v63, %s5354_s11  ;;  %2852 = vrot.lane.b32.xlu0 %v7121_v28, %s5353_s17 }
 0x6c6   : > { %4575 = vmatmul.mubr.msk.bf16.gmra.mrb[40].mxu1 %vm531_vm1, %v7122_v27 }
 0x6c7   : > { %4578 = vmatprep.mubr.msk.bf16.mxu1 %vm531_vm1, %v7123_v52 }
 0x6c9   : > { %3100 = vrot.lane.b32.xlu1 %v7119_v22, %s5355_s29  ;;  %3098 = vrot.lane.b32.xlu0 %v7116_v31, %s5355_s29 }
 0x6cd   : > { %3173 = vrot.lane.b32.xlu1 %v7124_v6, %s5354_s11 }
 0x6ce   : > { %4579 = vmatmul.mubr.msk.bf16.gmra.mrb[44].mxu1 %vm531_vm1, %v7125_v53 }
 0x6cf   : > { %4582 = vmatprep.mubr.msk.bf16.mxu1 %vm531_vm1, %v7126_v18 }
 0x6d1   : > { %3240 = vrot.lane.b32.xlu1 %v7127_v13, %s5354_s11 }
 0x6d6   : > { %4583 = vmatmul.mubr.msk.bf16.gmra.mrb[48].mxu1 %vm531_vm1, %v7128_v56 }
 0x704   : > { %v2525_v0 = vpop.xlane.xlu1 %2524 }
 0x705   : > { %v2567_v17 = vsub.f32 %v6463_v34, %v2525_v0 }
 0x706   : > { %v2528_v14 = vpop.xlane.xlu0 %2527 }
 0x707   : > { %v2585_v46 = vmul.f32 1.442695, %v2567_v17  ;;  %v2568_v55 = vsub.f32 %v6473_v30, %v2528_v14 }
 0x708   : > { %v2519_v26 = vpop.xlane.xlu1 %2518 }
 0x709   : > { %5055 = vpow2.f32 %v2585_v46  ;;  %v2565_v45 = vsub.f32 %v6469_v7, %v2519_v26  ;;  %v2587_v16 = vmul.f32 1.442695, %v2568_v55 }
 0x70a   : > { %v2522_v57 = vpop.xlane.xlu0 %2521 }
 0x70b   : > { %v2581_v47 = vmul.f32 1.442695, %v2565_v45  ;;  %v2566_v39 = vsub.f32 %v6479_v36, %v2522_v57 }
 0x70d   : > { %5057 = vpow2.f32 %v2581_v47  ;;  %v2583_v21 = vmul.f32 1.442695, %v2566_v39 }
 0x70e   : > { %5059 = vpow2.f32 %v2587_v16 }
 0x70f   : > { %5061 = vpow2.f32 %v2583_v21 }
 0x713   : > { %v5056_v51 = vpop.eup %5055 }
 0x714   : > { %v2537_v29 = vpop.xlane.xlu1 %2536  ;;  %v2619_v34 = vsel %vm818_vm3, %v5056_v51, 0.0 }
 0x715   : > { %v2571_v23 = vsub.f32 %v6488_v19, %v2537_v29  ;;  %2620 = vadd.xlane.f32.xlu0 %v2619_v34 }
 0x716   : > { %v2540_v30 = vpop.xlane.xlu0 %2539 }
 0x717   : > { %v5058_v20 = vpop.eup %5057  ;;  %v2593_v10 = vmul.f32 1.442695, %v2571_v23  ;;  %v2572_v7 = vsub.f32 %v6500_v43, %v2540_v30 }
 0x718   : > { %v5060_v1 = vpop.eup %5059  ;;  %v2531_v59 = vpop.xlane.xlu1 %2530  ;;  %v2613_v36 = vsel %vm818_vm3, %v5058_v20, 0.0 }
 0x719   : > { %v5062_v25 = vpop.eup %5061  ;;  %5063 = vpow2.f32 %v2593_v10  ;;  %v2595_v37 = vmul.f32 1.442695, %v2572_v7  ;;  %v2569_v44 = vsub.f32 %v6496_v42, %v2531_v59  ;;  %2614 = vadd.xlane.f32.xlu0 %v2613_v36  ;;  %v2662_v41 = vpack.c.bf16 %v5060_v1, %v5056_v51  ;;  %v4925_v42 = vld [vmem:[#allocation7 + $0x10] sm:$0xff]  }
 0x71a   : > { %v2534_v38 = vpop.xlane.xlu0 %2533  ;;  %v2616_v60 = vsel %vm818_vm3, %v5062_v25, 0.0  ;;  %v2661_v19 = vpack.c.bf16 %v5062_v25, %v5058_v20  ;;  %v2622_v43 = vsel %vm818_vm3, %v5060_v1, 0.0 }
 0x71b   : > { %5065 = vpow2.f32 %v2595_v37  ;;  %v2589_v31 = vmul.f32 1.442695, %v2569_v44  ;;  %v2570_v11 = vsub.f32 %v6507_v4, %v2534_v38  ;;  %2617 = vadd.xlane.f32.xlu1 %v2616_v60 }
 0x71c   : > { %4622 = vmatprep.mubr.msk.bf16.mxu1 %vm818_vm3, %v2661_v19 }
 0x71d   : > { %5067 = vpow2.f32 %v2589_v31  ;;  %v2591_v61 = vmul.f32 1.442695, %v2570_v11  ;;  %4623 = vmatmul.mubr.msk.bf16.vlgmr.msra.gmra.mrb[52].mxu1 %vm818_vm3, %v2662_v41  ;;  %2623 = vadd.xlane.f32.xlu0 %v2622_v43 }
 0x71e   : > { %4635 = vmatpush3.bf16.msra.mxu1 %v2792_v8 }
 0x71f   : > { %5069 = vpow2.f32 %v2591_v61  ;;  %4636 = vmatprep.subr.bf16.mxu1 %v2794_v62 }
 0x722   : > { %4637 = vmatpush3.bf16.msra.mxu1 %v2794_v62 }
 0x723   : > { %v5064_v24 = vpop.eup %5063  ;;  %4650 = vmatprep.subr.bf16.mxu1 %v4925_v42 }
 0x724   : > { %v2549_v22 = vpop.xlane.xlu1 %2548  ;;  %v2631_v4 = vsel %vm818_vm3, %v5064_v24, 0.0 }
 0x725   : > { %v5066_v27 = vpop.eup %5065  ;;  %v2575_v52 = vsub.f32 %v6515_v9, %v2549_v22  ;;  %2632 = vadd.xlane.f32.xlu1 %v2631_v4 }
 0x726   : > { %v2552_v53 = vpop.xlane.xlu0 %2551  ;;  %v2634_v18 = vsel %vm818_vm3, %v5066_v27, 0.0  ;;  %v2664_v47 = vpack.c.bf16 %v5066_v27, %v5064_v24 }
 0x727   : > { %v5068_v56 = vpop.eup %5067  ;;  %v2601_v0 = vmul.f32 1.442695, %v2575_v52  ;;  %v2576_v8 = vsub.f32 %v6525_v40, %v2552_v53  ;;  %2635 = vadd.xlane.f32.xlu0 %v2634_v18  ;;  %v7130_v52 = vld [vmem:[#allocation24_spill] sm:$0xff] }
 0x728   : > { %v2543_v17 = vpop.xlane.xlu1 %2542  ;;  %v2625_v62 = vsel %vm818_vm3, %v5068_v56, 0.0 }
 0x729   : > { %v5070_v14 = vpop.eup %5069  ;;  %5071 = vpow2.f32 %v2601_v0  ;;  %v2573_v46 = vsub.f32 %v6521_v15, %v2543_v17  ;;  %2626 = vadd.xlane.f32.xlu1 %v2625_v62  ;;  %v2603_v55 = vmul.f32 1.442695, %v2576_v8 }
 0x72a   : > { %v2546_v26 = vpop.xlane.xlu0 %2545  ;;  %v2628_v9 = vsel %vm818_vm3, %v5070_v14, 0.0  ;;  %v2663_v45 = vpack.c.bf16 %v5070_v14, %v5068_v56  ;;  %v7131_v14 = vld [vmem:[#allocation22_spill] sm:$0xff] }
 0x72b   : > { %v2597_v16 = vmul.f32 1.442695, %v2573_v46  ;;  %v2574_v57 = vsub.f32 %v6533_v12, %v2546_v26  ;;  %2629 = vadd.xlane.f32.xlu0 %v2628_v9 }
 0x72c   : > { %4630 = vmatprep.mubr.msk.bf16.mxu0 %vm818_vm3, %v2663_v45 }
 0x72d   : > { %5073 = vpow2.f32 %v2597_v16  ;;  %v2599_v40 = vmul.f32 1.442695, %v2574_v57  ;;  %4631 = vmatmul.mubr.msk.bf16.vlgmr.msra.gmra.mrb[76].mxu0 %vm818_vm3, %v2664_v47 }
 0x72e   : > { %5075 = vpow2.f32 %v2603_v55 }
 0x72f   : > { %5077 = vpow2.f32 %v2599_v40 }
 0x733   : > { %v5072_v15 = vpop.eup %5071 }
 0x734   : > { %v2561_v39 = vpop.xlane.xlu0 %2560  ;;  %v2643_v21 = vsel %vm818_vm3, %v5072_v15, 0.0 }
 0x735   : > { %2644 = vadd.xlane.f32.xlu1 %v2643_v21  ;;  %v2555_v51 = vpop.xlane.xlu1 %2554  ;;  %v2579_v1 = vsub.f32 %v6555_v35, %v2561_v39 }
 0x736   : > { %v2577_v34 = vsub.f32 %v6561_v32, %v2555_v51 }
 0x737   : > { %v5074_v29 = vpop.eup %5073  ;;  %v2609_v60 = vmul.f32 1.442695, %v2579_v1 }
 0x738   : > { %v5076_v12 = vpop.eup %5075  ;;  %v2564_v23 = vpop.xlane.xlu0 %2563  ;;  %v2637_v30 = vsel %vm818_vm3, %v5074_v29, 0.0  ;;  %v2605_v36 = vmul.f32 1.442695, %v2577_v34 }
 0x739   : > { %v5078_v20 = vpop.eup %5077  ;;  %v2580_v10 = vsub.f32 %v6567_v3, %v2564_v23  ;;  %2638 = vadd.xlane.f32.xlu1 %v2637_v30  ;;  %v2855_v7 = vpop.permute.xlu1 %2854  ;;  %v2666_v25 = vpack.c.bf16 %v5076_v12, %v5072_v15 }
 0x73a   : > { %v2665_v59 = vpack.c.bf16 %v5078_v20, %v5074_v29  ;;  %5079 = vpow2.f32 %v2605_v36  ;;  %v2640_v56 = vsel %vm818_vm3, %v5078_v20, 0.0 }
 0x73b   : > { %v2611_v37 = vmul.f32 1.442695, %v2580_v10 }
 0x73c   : > { %v2558_v44 = vpop.xlane.xlu0 %2557  ;;  %4638 = vmatprep.mubr.msk.bf16.mxu1 %vm818_vm3, %v2665_v59 }
 0x73d   : > { %v2578_v32 = vsub.f32 %v6573_v2, %v2558_v44  ;;  %4639 = vmatmul.mubr.msk.bf16.vlgmr.msra.gmra.mrb[56].mxu1 %vm818_vm3, %v2666_v25  ;;  %v3103_v38 = vpop.permute.xlu1 %3102  ;;  %5081 = vpow2.f32 %v2611_v37 }
 0x73e   : > { %4651 = vmatpush3.bf16.msra.mxu1 %v4925_v42  ;;  %v3113_v4 = vsel %vm531_vm1, %v3103_v38, 0 }
 0x73f   : > { %v2607_v3 = vmul.f32 1.442695, %v2578_v32 }
 0x740   : > { %v2853_v19 = vpop.permute.xlu0 %2852 }
 0x741   : > { %5083 = vpow2.f32 %v2607_v3  ;;  %4642 = vmatprep.subr.bf16.mxu0 %v2853_v19  ;;  %3169 = vrot.lane.b32.xlu0 %v7124_v6, %s5355_s29  ;;  %v3105_v35 = vpop.permute.xlu1 %3104  ;;  %v7129_v6 = vld [vmem:[#allocation20_spill] sm:$0xff] }
 0x742   : > { %5085 = vpow2.f32 %v2609_v60  ;;  %4643 = vmatpush3.bf16.msra.mxu0 %v2853_v19  ;;  %v3116_v53 = vsel %vm531_vm1, %v3105_v35, 0 }
 0x743   : > { %4644 = vmatprep.subr.bf16.mxu0 %v2855_v7 }
 0x744   : > { %v5080_v2 = vpop.eup %5079  ;;  %v3099_v27 = vpop.permute.xlu0 %3098 }
 0x745   : > { %v3172_v41 = vpop.permute.xlu1 %3171 }
 0x746   : > { %4645 = vmatpush3.bf16.msra.mxu0 %v2855_v7  ;;  %v3182_v18 = vsel %vm531_vm1, %v3172_v41, 0 }
 0x747   : > { %4822 = vmatprep.subr.msk.bf16.mxu0 %vm531_vm1, %v3103_v38  ;;  %v5082_v11 = vpop.eup %5081 }
 0x748   : > { %v2658_v17 = vsel %vm818_vm3, %v5082_v11, 0.0 }
 0x749   : > { %v3101_v31 = vpop.permute.xlu1 %3100 }
 0x74a   : > { %3167 = vrot.lane.b32.xlu1 %v7120_v63, %s5355_s29 }
 0x74b   : > { %v5084_v43 = vpop.eup %5083 }
 0x74c   : > { %v5086_v61 = vpop.eup %5085  ;;  %v2667_v42 = vpack.c.bf16 %v5084_v43, %v5080_v2  ;;  %v2652_v62 = vsel %vm818_vm3, %v5084_v43, 0.0 }
 0x74d   : > { %v3174_v24 = vpop.permute.xlu1 %3173  ;;  %v2668_v22 = vpack.c.bf16 %v5082_v11, %v5086_v61  ;;  %v2655_v8 = vsel %vm818_vm3, %v5086_v61, 0.0 }
 0x74e   : > { %3242 = vrot.lane.b32.xlu1 %v7129_v6, %s5354_s11  ;;  %4646 = vmatprep.mubr.msk.bf16.mxu0 %vm818_vm3, %v2667_v42  ;;  %v3185_v0 = vsel %vm531_vm1, %v3174_v24, 0 }
 0x74f   : > { %4647 = vmatmul.mubr.msk.bf16.vlgmr.msra.gmra.mrb[80].mxu0 %vm818_vm3, %v2668_v22 }
 0x750   : > { %4669 = vmatpush3.bf16.xpose.msra.mxu0 %v3113_v4  ;;  %4672 = vmatprep.mubr.msk.bf16.mxu0 %vm531_vm1, %v3099_v27 }
 0x751   : > { %4823 = vmatprep.subr.msk.bf16.mxu0 %vm531_vm1, %v3105_v35  ;;  %v6682_v63 = vpop.permute.xlu1 %3240 }
 0x752   : > { %3236 = vrot.lane.b32.xlu1 %v7127_v13, %s5355_s29  ;;  %4826 = vmatprep.subr.msk.bf16.mxu1 %vm531_vm1, %v6682_v63  ;;  %v2646_v13 = vsel %vm818_vm3, %v5076_v12, 0.0  ;;  %v3251_v35 = vsel %vm531_vm1, %v6682_v63, 0 }
 0x756   : > { %3311 = vrot.lane.b32.xlu1 %v7130_v52, %s5354_s11 }
 0x758   : > { %4671 = vmatpush3.bf16.xpose.msra.mxu0 %v3116_v53 }
 0x759   : > { %4824 = vmatprep.subr.msk.bf16.mxu0 %vm531_vm1, %v3172_v41 }
 0x75a   : > { %3307 = vrot.lane.b32.xlu1 %v7130_v52, %s5355_s29 }
 0x75e   : > { %3542 = vrot.lane.b32.xlu1 %v5625_v49, %s5355_s29  ;;  %v2649_v49 = vsel %vm818_vm3, %v5080_v2, 0.0 }
 0x75f   : > { %4673 = vmatmul.mubr.msk.bf16.vlgmr.msra.gmra.mrb[84].mxu0 %vm531_vm1, %v3101_v31 }
 0x760   : > { %4677 = vmatpush3.bf16.xpose.msra.mxu0 %v3182_v18  ;;  %2647 = vadd.xlane.f32.xlu0 %v2646_v13 }
 0x761   : > { %4825 = vmatprep.subr.msk.bf16.mxu0 %vm531_vm1, %v3174_v24 }
 0x764   : > { %2641 = vadd.xlane.f32.xlu0 %v2640_v56 }
 0x768   : > { %4679 = vmatpush3.bf16.xpose.msra.mxu0 %v3185_v0  ;;  %2656 = vadd.xlane.f32.xlu0 %v2655_v8 }
 0x76c   : > { %2650 = vadd.xlane.f32.xlu0 %v2649_v49 }
 0x770   : > { %2659 = vadd.xlane.f32.xlu0 %v2658_v17 }
 0x774   : > { %2653 = vadd.xlane.f32.xlu0 %v2652_v62 }
 0x78a   : > { %3309 = vrot.lane.b32.xlu0 %v7131_v14, %s5354_s11 }
 0x78e   : > { %3238 = vrot.lane.b32.xlu0 %v7129_v6, %s5355_s29 }
 0x792   : > { %3305 = vrot.lane.b32.xlu0 %v7131_v14, %s5355_s29 }
 0x7a2   : > { %v2621_v46 = vpop.xlane.xlu0 %2620 }
 0x7a3   : > { %5087 = vrcp.f32 %v2621_v46 }
 0x7a6   : > { %v2615_v26 = vpop.xlane.xlu0 %2614 }
 0x7a7   : > { %5089 = vrcp.f32 %v2615_v26 }
 0x7a8   : > { %v2618_v55 = vpop.xlane.xlu1 %2617 }
 0x7aa   : > { %v2624_v45 = vpop.xlane.xlu0 %2623 }
 0x7ab   : > { %5091 = vrcp.f32 %v2624_v45 }
 0x7ac   : > { %5093 = vrcp.f32 %v2618_v55 }
 0x7ad   : > { %v5088_v34 = vpop.eup %5087 }
 0x7b1   : > { %v5090_v30 = vpop.eup %5089 }
 0x7b2   : > { %v2633_v9 = vpop.xlane.xlu1 %2632 }
 0x7b3   : > { %5095 = vrcp.f32 %v2633_v9 }
 0x7b4   : > { %v2636_v57 = vpop.xlane.xlu0 %2635 }
 0x7b5   : > { %v5092_v7 = vpop.eup %5091  ;;  %5097 = vrcp.f32 %v2636_v57 }
 0x7b6   : > { %v2627_v16 = vpop.xlane.xlu1 %2626  ;;  %v5094_v59 = vpop.eup %5093 }
 0x7b7   : > { %5099 = vrcp.f32 %v2627_v16 }
 0x7b8   : > { %v2630_v40 = vpop.xlane.xlu0 %2629 }
 0x7b9   : > { %5101 = vrcp.f32 %v2630_v40 }
 0x7bc   : > { %v3170_v21 = vpop.permute.xlu0 %3169 }
 0x7bd   : > { %v5096_v11 = vpop.eup %5095 }
 0x7bf   : > { %v5098_v61 = vpop.eup %5097 }
 0x7c1   : > { %v5100_v6 = vpop.eup %5099 }
 0x7c2   : > { %v2645_v47 = vpop.xlane.xlu1 %2644 }
 0x7c3   : > { %v5102_v63 = vpop.eup %5101  ;;  %5103 = vrcp.f32 %v2645_v47 }
 0x7c6   : > { %v6712_v15 = vpop.xlane.xlu1 %2638 }
 0x7c7   : > { %5105 = vrcp.f32 %v6712_v15 }
 0x7ca   : > { %v3168_v39 = vpop.permute.xlu1 %3167 }
 0x7cb   : > { %4680 = vmatprep.mubr.msk.bf16.mxu0 %vm531_vm1, %v3168_v39 }
 0x7cc   : > { %4681 = vmatmul.mubr.msk.bf16.vlgmr.msra.gmra.mrb[88].mxu0 %vm531_vm1, %v3170_v21 }
 0x7cd   : > { %v5104_v55 = vpop.eup %5103 }
 0x7ce   : > { %v3243_v51 = vpop.permute.xlu1 %3242 }
 0x7cf   : > { %v3254_v42 = vsel %vm531_vm1, %v3243_v51, 0 }
 0x7d1   : > { %v5106_v9 = vpop.eup %5105 }
 0x7d2   : > { %v6716_v12 = vpop.permute.xlu1 %3236 }
 0x7d6   : > { %v3312_v3 = vpop.permute.xlu1 %3311 }
 0x7d7   : > { %v3323_v46 = vsel %vm531_vm1, %v3312_v3, 0 }
 0x7da   : > { %v3308_v2 = vpop.permute.xlu1 %3307 }
 0x7de   : > { %v6726_v4 = vpop.permute.xlu1 %3542 }
 0x7ed   : > { %v2648_v29 = vpop.xlane.xlu0 %2647 }
 0x7ee   : > { %5107 = vrcp.f32 %v2648_v29 }
 0x7f0   : > { %v4624_v23 = vpop.f32.mrb[52].mxu1 }
 0x7f1   : > { %v2715_v20 = vpop.f32.mrb[53].mxu1  ;;  %v2642_v10 = vpop.xlane.xlu0 %2641  ;;  %v2931_v36 = vmul.f32 %v5088_v34, %v4624_v23 }
 0x7f2   : > { %v4625_v1 = vpop.f32.mrb[54].mxu1  ;;  %v2929_v44 = vmul.f32 %v5090_v30, %v2715_v20  ;;  %5109 = vrcp.f32 %v2642_v10 }
 0x7f3   : > { %v2932_v25 = vmul.f32 %v5092_v7, %v4625_v1  ;;  %v2718_v37 = vpop.f32.mrb[55].mxu1 }
 0x7f4   : > { %v2930_v32 = vmul.f32 %v5094_v59, %v2718_v37 }
 0x7f5   : > { %v2946_v38 = vpack.c.bf16 %v2932_v25, %v2931_v36  ;;  %v6718_v60 = vpop.xlane.xlu0 %2656 }
 0x7f6   : > { %v2945_v19 = vpack.c.bf16 %v2930_v32, %v2929_v44  ;;  %5111 = vrcp.f32 %v6718_v60 }
 0x7f8   : > { %4652 = vmatprep.mubr.msk.bf16.mxu1 %vm531_vm1, %v2945_v19  ;;  %v5108_v57 = vpop.eup %5107 }
 0x7f9   : > { %v2651_v41 = vpop.xlane.xlu0 %2650  ;;  %4653 = vmatmul.mubr.msk.bf16.vlgmr.msra.gmra.mrb[36].mxu1 %vm531_vm1, %v2946_v38 }
 0x7fa   : > { %4685 = vmatpush3.bf16.xpose.msra.mxu1 %v3251_v35  ;;  %5113 = vrcp.f32 %v2651_v41 }
 0x7fb   : > { %4827 = vmatprep.subr.msk.bf16.mxu1 %vm531_vm1, %v3243_v51 }
 0x7fc   : > { %v5110_v15 = vpop.eup %5109 }
 0x7fd   : > { %v2660_v31 = vpop.xlane.xlu0 %2659 }
 0x7fe   : > { %5115 = vrcp.f32 %v2660_v31 }
 0x800   : > { %v4632_v43 = vpop.f32.mrb[76].mxu0  ;;  %v5112_v23 = vpop.eup %5111 }
 0x801   : > { %v2776_v24 = vpop.f32.mrb[77].mxu0  ;;  %v2654_v22 = vpop.xlane.xlu0 %2653  ;;  %v2935_v52 = vmul.f32 %v5096_v11, %v4632_v43 }
 0x802   : > { %4687 = vmatpush3.bf16.xpose.msra.mxu1 %v3254_v42  ;;  %v4633_v27 = vpop.f32.mrb[78].mxu0  ;;  %v2933_v13 = vmul.f32 %v5100_v6, %v2776_v24  ;;  %5117 = vrcp.f32 %v2654_v22 }
 0x803   : > { %v2936_v53 = vmul.f32 %v5098_v61, %v4633_v27  ;;  %4700 = vmatprep.subr.bf16.mxu1 %v6726_v4  ;;  %v2779_v18 = vpop.f32.mrb[79].mxu0 }
 0x804   : > { %v2934_v56 = vmul.f32 %v5102_v63, %v2779_v18  ;;  %v5114_v20 = vpop.eup %5113 }
 0x805   : > { %v2948_v0 = vpack.c.bf16 %v2936_v53, %v2935_v52  ;;  %v3310_v8 = vpop.permute.xlu0 %3309 }
 0x806   : > { %v2947_v49 = vpack.c.bf16 %v2934_v56, %v2933_v13  ;;  %v3320_v17 = vsel %vm531_vm1, %v3310_v8, 0  ;;  %4828 = vmatprep.subr.msk.bf16.mxu0 %vm531_vm1, %v3310_v8 }
 0x807   : > { %4693 = vmatpush3.bf16.xpose.msra.mxu0 %v3320_v17 }
 0x808   : > { %4656 = vmatprep.mubr.msk.bf16.mxu1 %vm531_vm1, %v2947_v49  ;;  %4829 = vmatprep.subr.msk.bf16.mxu0 %vm531_vm1, %v3312_v3  ;;  %v5116_v7 = vpop.eup %5115 }
 0x809   : > { %v3239_v62 = vpop.permute.xlu0 %3238  ;;  %4657 = vmatmul.mubr.msk.bf16.gmra.mrb[40].mxu1 %vm531_vm1, %v2948_v0 }
 0x80c   : > { %v5118_v59 = vpop.eup %5117 }
 0x80d   : > { %v3306_v14 = vpop.permute.xlu0 %3305 }
 0x80e   : > { %4696 = vmatprep.mubr.msk.bf16.mxu0 %vm531_vm1, %v3306_v14 }
 0x80f   : > { %4695 = vmatpush3.bf16.xpose.msra.mxu0 %v3323_v46 }
 0x810   : > { %v4640_v26 = vpop.f32.mrb[56].mxu1 }
 0x811   : > { %v2939_v45 = vmul.f32 %v5104_v55, %v4640_v26  ;;  %v2837_v16 = vpop.f32.mrb[57].mxu1 }
 0x812   : > { %v2937_v47 = vmul.f32 %v5106_v9, %v2837_v16  ;;  %v4641_v40 = vpop.f32.mrb[58].mxu1 }
 0x813   : > { %v2940_v39 = vmul.f32 %v5108_v57, %v4641_v40  ;;  %v2840_v21 = vpop.f32.mrb[59].mxu1 }
 0x814   : > { %v2938_v51 = vmul.f32 %v5110_v15, %v2840_v21 }
 0x815   : > { %v2950_v29 = vpack.c.bf16 %v2940_v39, %v2939_v45 }
 0x816   : > { %v2949_v34 = vpack.c.bf16 %v2938_v51, %v2937_v47  ;;  %4697 = vmatmul.mubr.msk.bf16.vlgmr.msra.gmra.mrb[92].mxu0 %vm531_vm1, %v3308_v2 }
 0x818   : > { %4660 = vmatprep.mubr.msk.bf16.mxu1 %vm531_vm1, %v2949_v34 }
 0x819   : > { %4661 = vmatmul.mubr.msk.bf16.gmra.mrb[44].mxu1 %vm531_vm1, %v2950_v29 }
 0x822   : > { %v4648_v30 = vpop.f32.mrb[80].mxu0 }
 0x823   : > { %v2898_v10 = vpop.f32.mrb[81].mxu0  ;;  %v2943_v36 = vmul.f32 %v5112_v23, %v4648_v30 }
 0x824   : > { %v4649_v1 = vpop.f32.mrb[82].mxu0  ;;  %v2941_v44 = vmul.f32 %v5114_v20, %v2898_v10 }
 0x825   : > { %v2944_v25 = vmul.f32 %v5116_v7, %v4649_v1  ;;  %v2901_v37 = vpop.f32.mrb[83].mxu0 }
 0x826   : > { %v2942_v32 = vmul.f32 %v5118_v59, %v2901_v37 }
 0x827   : > { %v2952_v38 = vpack.c.bf16 %v2944_v25, %v2943_v36 }
 0x828   : > { %v2951_v60 = vpack.c.bf16 %v2942_v32, %v2941_v44 }
 0x82a   : > { %4664 = vmatprep.mubr.msk.bf16.mxu1 %vm531_vm1, %v2951_v60 }
 0x82b   : > { %4665 = vmatmul.mubr.msk.bf16.gmra.mrb[48].mxu1 %vm531_vm1, %v2952_v38 }
 0x82c   : > { %4688 = vmatprep.mubr.msk.bf16.mxu1 %vm531_vm1, %v6716_v12 }
 0x832   : > { %v4674_v3 = vpop.f32.mrb[84].mxu0 }
 0x833   : > { %v3376_v19 = vsel %vm5744_vm2, %v4674_v3, -1e+30  ;;  %v3152_v35 = vpop.f32.mrb[85].mxu0  ;;  %4689 = vmatmul.mubr.msk.bf16.vlgmr.msra.gmra.mrb[60].mxu1 %vm531_vm1, %v3239_v62 }
 0x834   : > { %v3396_v41 = vsel %vm818_vm3, %v3376_v19, -inf  ;;  %v4675_v2 = vpop.f32.mrb[86].mxu0  ;;  %4701 = vmatpush3.bf16.msra.mxu1 %v6726_v4  ;;  %v3374_v31 = vsel %vm5749_vm4, %v3152_v35, -1e+30 }
 0x835   : > { %3397 = vmax.xlane.f32.xlu0 %v3396_v41  ;;  %v3155_v11 = vpop.f32.mrb[87].mxu0  ;;  %v3390_v61 = vsel %vm818_vm3, %v3374_v31, -inf  ;;  %v3377_v42 = vsel %vm5768_vm6, %v4675_v2, -1e+30 }
 0x836   : > { %v3375_v12 = vsel %vm5758_vm5, %v3155_v11, -1e+30  ;;  %v3399_v24 = vsel %vm818_vm3, %v3377_v42, -inf }
 0x837   : > { %v3393_v43 = vsel %vm818_vm3, %v3375_v12, -inf }
 0x838   : > { %3394 = vmax.xlane.f32.xlu1 %v3393_v43  ;;  %v7135_v43 = vld [vmem:[#allocation21_spill] sm:$0xff] }
 0x839   : > { %3391 = vmax.xlane.f32.xlu0 %v3390_v61 }
 0x83d   : > { %3400 = vmax.xlane.f32.xlu0 %v3399_v24 }
 0x89f   : > { %v4682_v22 = vpop.f32.mrb[88].mxu0 }
 0x8a0   : > { %v6761_v6 = vsel %vm5744_vm2, %v4682_v22, -1e+30  ;;  %v3221_v4 = vpop.f32.mrb[89].mxu0 }
 0x8a1   : > { %v3408_v27 = vsel %vm818_vm3, %v6761_v6, -inf  ;;  %v4683_v63 = vpop.f32.mrb[90].mxu0  ;;  %v6767_v52 = vsel %vm5749_vm4, %v3221_v4, -1e+30 }
 0x8a2   : > { %v6771_v53 = vsel %vm5768_vm6, %v4683_v63, -1e+30  ;;  %3409 = vmax.xlane.f32.xlu1 %v3408_v27  ;;  %v3224_v18 = vpop.f32.mrb[91].mxu0  ;;  %v3402_v0 = vsel %vm818_vm3, %v6767_v52, -inf }
 0x8a3   : > { %v3411_v13 = vsel %vm818_vm3, %v6771_v53, -inf  ;;  %v6777_v56 = vsel %vm5758_vm5, %v3224_v18, -1e+30 }
 0x8a4   : > { %3412 = vmax.xlane.f32.xlu0 %v3411_v13  ;;  %v3405_v8 = vsel %vm818_vm3, %v6777_v56, -inf }
 0x8a6   : > { %3403 = vmax.xlane.f32.xlu1 %v3402_v0 }
 0x8a8   : > { %3406 = vmax.xlane.f32.xlu0 %v3405_v8 }
 0x8c2   : > { %v3398_v49 = vpop.xlane.xlu0 %3397 }
 0x8c3   : > { %v3440_v62 = vsub.f32 %v3376_v19, %v3398_v49 }
 0x8c5   : > { %v3395_v17 = vpop.xlane.xlu1 %3394  ;;  %v3458_v45 = vmul.f32 1.442695, %v3440_v62 }
 0x8c6   : > { %v3439_v14 = vsub.f32 %v3375_v12, %v3395_v17  ;;  %v3392_v46 = vpop.xlane.xlu0 %3391  ;;  %v7133_v12 = vld [vmem:[#allocation14_spill] sm:$0xff] }
 0x8c7   : > { %v3438_v55 = vsub.f32 %v3374_v31, %v3392_v46 }
 0x8c8   : > { %v3456_v26 = vmul.f32 1.442695, %v3439_v14 }
 0x8c9   : > { %v3454_v9 = vmul.f32 1.442695, %v3438_v55 }
 0x8ca   : > { %5119 = vpow2.f32 %v3456_v26  ;;  %v3401_v16 = vpop.xlane.xlu0 %3400 }
 0x8cb   : > { %5121 = vpow2.f32 %v3454_v9  ;;  %v3441_v57 = vsub.f32 %v3377_v42, %v3401_v16 }
 0x8cc   : > { %5123 = vpow2.f32 %v3458_v45 }
 0x8cd   : > { %v3460_v47 = vmul.f32 1.442695, %v3441_v57 }
 0x8cf   : > { %5125 = vpow2.f32 %v3460_v47 }
 0x8d4   : > { %v6783_v40 = vpop.eup %5119 }
 0x8d5   : > { %v6785_v15 = vpop.eup %5121  ;;  %v3489_v14 = vsel %vm818_vm3, %v6783_v40, 0.0 }
 0x8d6   : > { %v3534_v39 = vpack.c.bf16 %v6783_v40, %v6785_v15  ;;  %v6789_v21 = vpop.eup %5123 }
 0x8d8   : > { %4704 = vmatprep.mubr.msk.bf16.mxu1 %vm818_vm3, %v3534_v39 }
 0x8d9   : > { %v6792_v51 = vpop.eup %5125 }
 0x8da   : > { %v3535_v29 = vpack.c.bf16 %v6792_v51, %v6789_v21  ;;  %v3495_v62 = vsel %vm818_vm3, %v6792_v51, 0.0 }
 0x8e9   : > { %v4698_v34 = vpop.f32.mrb[92].mxu0 }
 0x8ea   : > { %v6798_v23 = vsel %vm5744_vm2, %v4698_v34, -1e+30  ;;  %v3359_v30 = vpop.f32.mrb[93].mxu0 }
 0x8eb   : > { %v3432_v20 = vsel %vm818_vm3, %v6798_v23, -inf  ;;  %v6804_v10 = vsel %vm5749_vm4, %v3359_v30, -1e+30  ;;  %v4699_v7 = vpop.f32.mrb[94].mxu0 }
 0x8ec   : > { %v3426_v1 = vsel %vm818_vm3, %v6804_v10, -inf  ;;  %v6810_v59 = vsel %vm5768_vm6, %v4699_v7, -1e+30  ;;  %3433 = vmax.xlane.f32.xlu0 %v3432_v20  ;;  %v3362_v36 = vpop.f32.mrb[95].mxu0 }
 0x8ed   : > { %3427 = vmax.xlane.f32.xlu1 %v3426_v1  ;;  %v3435_v25 = vsel %vm818_vm3, %v6810_v59, -inf  ;;  %v6816_v37 = vsel %vm5758_vm5, %v3362_v36, -1e+30 }
 0x8ee   : > { %v3429_v44 = vsel %vm818_vm3, %v6816_v37, -inf }
 0x8f0   : > { %3436 = vmax.xlane.f32.xlu0 %v3435_v25 }
 0x8f4   : > { %3430 = vmax.xlane.f32.xlu0 %v3429_v44 }
 0x906   : > { %v4690_v32 = vpop.f32.mrb[60].mxu1 }
 0x907   : > { %v6822_v38 = vsel %vm5744_vm2, %v4690_v32, -1e+30  ;;  %v3290_v60 = vpop.f32.mrb[61].mxu1 }
 0x908   : > { %v3420_v3 = vsel %vm818_vm3, %v6822_v38, -inf  ;;  %v4691_v19 = vpop.f32.mrb[62].mxu1  ;;  %v6828_v35 = vsel %vm5749_vm4, %v3290_v60, -1e+30 }
 0x909   : > { %v6832_v41 = vsel %vm5768_vm6, %v4691_v19, -1e+30  ;;  %v3293_v2 = vpop.f32.mrb[63].mxu1  ;;  %3421 = vmax.xlane.f32.xlu1 %v3420_v3  ;;  %v3414_v11 = vsel %vm818_vm3, %v6828_v35, -inf }
 0x90a   : > { %v3423_v58 = vsel %vm818_vm3, %v6832_v41, -inf  ;;  %v6838_v31 = vsel %vm5758_vm5, %v3293_v2, -1e+30 }
 0x90b   : > { %3424 = vmax.xlane.f32.xlu0 %v3423_v58  ;;  %v3417_v50 = vsel %vm818_vm3, %v6838_v31, -inf }
 0x90d   : > { %3415 = vmax.xlane.f32.xlu1 %v3414_v11 }
 0x90f   : > { %3418 = vmax.xlane.f32.xlu0 %v3417_v50 }
 0x91e   : > { %3603 = vrot.lane.b32.xlu1 %v5643_v5, %s5355_s29 }
 0x922   : > { %3605 = vrot.lane.b32.xlu1 %v7132_v54, %s5355_s29 }
 0x925   : > { %3544 = vrot.lane.b32.xlu0 %v7133_v12, %s5355_s29 }
 0x926   : > { %3664 = vrot.lane.b32.xlu1 %v7134_v48, %s5355_s29 }
 0x929   : > { %3725 = vrot.lane.b32.xlu0 %v7121_v28, %s5355_s29 }
 0x92a   : > { %3666 = vrot.lane.b32.xlu1 %v7135_v43, %s5355_s29 }
 0x92e   : > { %3727 = vrot.lane.b32.xlu1 %v7115_v33, %s5355_s29 }
 0x92f   : > { %v3410_v61 = vpop.xlane.xlu1 %3409 }
 0x930   : > { %v3444_v5 = vsub.f32 %v6761_v6, %v3410_v61 }
 0x931   : > { %v3413_v42 = vpop.xlane.xlu0 %3412 }
 0x932   : > { %v3466_v24 = vmul.f32 1.442695, %v3444_v5  ;;  %v3445_v22 = vsub.f32 %v6771_v53, %v3413_v42 }
 0x933   : > { %v3404_v4 = vpop.xlane.xlu1 %3403 }
 0x934   : > { %v3468_v27 = vmul.f32 1.442695, %v3445_v22  ;;  %v3442_v63 = vsub.f32 %v6767_v52, %v3404_v4  ;;  %5127 = vpow2.f32 %v3466_v24  ;;  %v3486_v52 = vsel %vm818_vm3, %v6785_v15, 0.0 }
 0x935   : > { %v3407_v18 = vpop.xlane.xlu0 %3406 }
 0x936   : > { %5129 = vpow2.f32 %v3468_v27  ;;  %v3462_v28 = vmul.f32 1.442695, %v3442_v63  ;;  %v3443_v13 = vsub.f32 %v6777_v56, %v3407_v18  ;;  %v3492_v56 = vsel %vm818_vm3, %v6789_v21, 0.0 }
 0x938   : > { %v3464_v0 = vmul.f32 1.442695, %v3443_v13  ;;  %5131 = vpow2.f32 %v3462_v28 }
 0x93a   : > { %5133 = vpow2.f32 %v3464_v0 }
 0x93e   : > { %v6862_v33 = vpop.eup %5127 }
 0x93f   : > { %v3504_v9 = vsel %vm818_vm3, %v6862_v33, 0.0 }
 0x940   : > { %v6864_v6 = vpop.eup %5129 }
 0x941   : > { %v3537_v53 = vpack.c.bf16 %v6864_v6, %v6862_v33  ;;  %v3507_v26 = vsel %vm818_vm3, %v6864_v6, 0.0  ;;  %v4926_v6 = vld [vmem:[#allocation7 + $0x18] sm:$0xff]  }
 0x942   : > { %v5132_v8 = vpop.eup %5131 }
 0x943   : > { %v3498_v55 = vsel %vm818_vm3, %v5132_v8, 0.0 }
 0x944   : > { %v5134_v49 = vpop.eup %5133 }
 0x945   : > { %v3536_v17 = vpack.c.bf16 %v5134_v49, %v5132_v8  ;;  %v3501_v46 = vsel %vm818_vm3, %v5134_v49, 0.0 }
 0x948   : > { %3487 = vadd.xlane.f32.xlu0 %v3486_v52 }
 0x94c   : > { %3493 = vadd.xlane.f32.xlu0 %v3492_v56 }
 0x950   : > { %3496 = vadd.xlane.f32.xlu0 %v3495_v62 }
 0x952   : > { %3490 = vadd.xlane.f32.xlu1 %v3489_v14 }
 0x954   : > { %3502 = vadd.xlane.f32.xlu0 %v3501_v46 }
 0x956   : > { %3499 = vadd.xlane.f32.xlu1 %v3498_v55 }
 0x958   : > { %3508 = vadd.xlane.f32.xlu0 %v3507_v26 }
 0x95a   : > { %3505 = vadd.xlane.f32.xlu1 %v3504_v9 }
 0x979   : > { %v3434_v45 = vpop.xlane.xlu0 %3433 }
 0x97a   : > { %v3428_v57 = vpop.xlane.xlu1 %3427 }
 0x97b   : > { %v3450_v7 = vsub.f32 %v6804_v10, %v3428_v57 }
 0x97d   : > { %v3437_v16 = vpop.xlane.xlu0 %3436 }
 0x97e   : > { %v3453_v19 = vsub.f32 %v6810_v59, %v3437_v16 }
 0x981   : > { %v3431_v47 = vpop.xlane.xlu0 %3430 }
 0x982   : > { %v3451_v40 = vsub.f32 %v6816_v37, %v3431_v47  ;;  %v3478_v37 = vmul.f32 1.442695, %v3450_v7 }
 0x984   : > { %v3480_v30 = vmul.f32 1.442695, %v3451_v40 }
 0x986   : > { %5135 = vpow2.f32 %v3480_v30 }
 0x990   : > { %v5136_v59 = vpop.eup %5135 }
 0x991   : > { %v3525_v13 = vsel %vm818_vm3, %v5136_v59, 0.0 }
 0x996   : > { %v3422_v15 = vpop.xlane.xlu1 %3421 }
 0x997   : > { %v3448_v39 = vsub.f32 %v6822_v38, %v3422_v15 }
 0x998   : > { %v3425_v34 = vpop.xlane.xlu0 %3424 }
 0x999   : > { %v3449_v20 = vsub.f32 %v6832_v41, %v3425_v34  ;;  %v3474_v1 = vmul.f32 1.442695, %v3448_v39  ;;  %v3452_v41 = vsub.f32 %v6798_v23, %v3434_v45 }
 0x99a   : > { %v3416_v36 = vpop.xlane.xlu1 %3415 }
 0x99b   : > { %v3446_v25 = vsub.f32 %v6828_v35, %v3416_v36  ;;  %v3476_v44 = vmul.f32 1.442695, %v3449_v20  ;;  %5137 = vpow2.f32 %v3474_v1  ;;  %v3484_v35 = vmul.f32 1.442695, %v3453_v19 }
 0x99c   : > { %v3419_v32 = vpop.xlane.xlu0 %3418  ;;  %v3482_v11 = vmul.f32 1.442695, %v3452_v41 }
 0x99d   : > { %v3470_v60 = vmul.f32 1.442695, %v3446_v25  ;;  %v3447_v3 = vsub.f32 %v6838_v31, %v3419_v32 }
 0x99e   : > { %v3604_v38 = vpop.permute.xlu1 %3603 }
 0x99f   : > { %5139 = vpow2.f32 %v3470_v60  ;;  %v3472_v2 = vmul.f32 1.442695, %v3447_v3 }
 0x9a0   : > { %5141 = vpow2.f32 %v3476_v44  ;;  %v3545_v10 = vpop.permute.xlu0 %3544 }
 0x9a1   : > { %5143 = vpow2.f32 %v3472_v2  ;;  %4702 = vmatprep.subr.bf16.mxu1 %v3545_v10 }
 0x9a2   : > { %5145 = vpow2.f32 %v3478_v37  ;;  %4703 = vmatpush3.bf16.msra.mxu1 %v3545_v10  ;;  %v3606_v58 = vpop.permute.xlu1 %3605 }
 0x9a3   : > { %4708 = vmatprep.subr.bf16.mxu1 %v3604_v38  ;;  %5147 = vpow2.f32 %v3484_v35 }
 0x9a4   : > { %5149 = vpow2.f32 %v3482_v11  ;;  %v3726_v51 = vpop.permute.xlu0 %3725 }
 0x9a5   : > { %4705 = vmatmul.mubr.msk.bf16.vlgmr.msra.gmra.mrb[64].mxu1 %vm818_vm3, %v3535_v29  ;;  %v5138_v31 = vpop.eup %5137 }
 0x9a6   : > { %4709 = vmatpush3.bf16.msra.mxu1 %v3604_v38  ;;  %4712 = vmatprep.mubr.msk.bf16.mxu1 %vm818_vm3, %v3536_v17  ;;  %v3665_v23 = vpop.permute.xlu1 %3664  ;;  %v3516_v24 = vsel %vm818_vm3, %v5138_v31, 0.0 }
 0x9a7   : > { %4710 = vmatprep.subr.bf16.mxu1 %v3606_v58  ;;  %4716 = vmatprep.subr.bf16.mxu0 %v3665_v23 }
 0x9a8   : > { %4717 = vmatpush3.bf16.msra.mxu0 %v3665_v23 }
 0x9a9   : > { %v5140_v50 = vpop.eup %5139 }
 0x9aa   : > { %v5142_v54 = vpop.eup %5141  ;;  %4711 = vmatpush3.bf16.msra.mxu1 %v3606_v58  ;;  %v3667_v12 = vpop.permute.xlu1 %3666  ;;  %v3510_v48 = vsel %vm818_vm3, %v5140_v50, 0.0 }
 0x9ab   : > { %v5144_v21 = vpop.eup %5143  ;;  %3511 = vadd.xlane.f32.xlu1 %v3510_v48  ;;  %4718 = vmatprep.subr.bf16.mxu0 %v3667_v12  ;;  %v3539_v22 = vpack.c.bf16 %v5142_v54, %v5138_v31  ;;  %v3519_v27 = vsel %vm818_vm3, %v5142_v54, 0.0 }
 0x9ac   : > { %v5146_v29 = vpop.eup %5145  ;;  %4724 = vmatprep.subr.bf16.mxu1 %v3726_v51  ;;  %4719 = vmatpush3.bf16.msra.mxu0 %v3667_v12  ;;  %v3513_v43 = vsel %vm818_vm3, %v5144_v21, 0.0  ;;  %v3538_v61 = vpack.c.bf16 %v5144_v21, %v5140_v50 }
 0x9ad   : > { %3514 = vadd.xlane.f32.xlu0 %v3513_v43  ;;  %4713 = vmatmul.mubr.msk.bf16.vlgmr.msra.gmra.mrb[68].mxu1 %vm818_vm3, %v3537_v53  ;;  %v3540_v5 = vpack.c.bf16 %v5136_v59, %v5146_v29  ;;  %v5148_v4 = vpop.eup %5147  ;;  %v3522_v18 = vsel %vm818_vm3, %v5146_v29, 0.0 }
 0x9ae   : > { %4720 = vmatprep.mubr.msk.bf16.mxu0 %vm818_vm3, %v3538_v61  ;;  %4725 = vmatpush3.bf16.msra.mxu1 %v3726_v51  ;;  %v3728_v42 = vpop.permute.xlu1 %3727  ;;  %v5150_v63 = vpop.eup %5149  ;;  %v3531_v33 = vsel %vm818_vm3, %v5148_v4, 0.0 }
 0x9af   : > { %4728 = vmatprep.mubr.msk.bf16.mxu1 %vm818_vm3, %v3540_v5  ;;  %3517 = vadd.xlane.f32.xlu1 %v3516_v24  ;;  %v3541_v28 = vpack.c.bf16 %v5148_v4, %v5150_v63  ;;  %v3528_v0 = vsel %vm818_vm3, %v5150_v63, 0.0 }
 0x9b0   : > { %4721 = vmatmul.mubr.msk.bf16.vlgmr.msra.gmra.mrb[96].mxu0 %vm818_vm3, %v3539_v22  ;;  %4726 = vmatprep.subr.bf16.mxu1 %v3728_v42 }
 0x9b1   : > { %3520 = vadd.xlane.f32.xlu0 %v3519_v27 }
 0x9b2   : > { %4727 = vmatpush3.bf16.msra.mxu1 %v3728_v42 }
 0x9b3   : > { %3523 = vadd.xlane.f32.xlu1 %v3522_v18  ;;  %4732 = vmatprep.subr.bf16.mxu1 %v4926_v6 }
 0x9b5   : > { %3526 = vadd.xlane.f32.xlu0 %v3525_v13  ;;  %4729 = vmatmul.mubr.msk.bf16.vlgmr.msra.gmra.mrb[72].mxu1 %vm818_vm3, %v3541_v28 }
 0x9b6   : > { %4733 = vmatpush3.bf16.msra.mxu1 %v4926_v6 }
 0x9b7   : > { %3529 = vadd.xlane.f32.xlu1 %v3528_v0 }
 0x9b9   : > { %3532 = vadd.xlane.f32.xlu0 %v3531_v33 }
 0x9d5   : > { %v3488_v53 = vpop.xlane.xlu0 %3487 }
 0x9d6   : > { %5151 = vrcp.f32 %v3488_v53 }
 0x9d9   : > { %v3494_v8 = vpop.xlane.xlu0 %3493 }
 0x9da   : > { %5153 = vrcp.f32 %v3494_v8 }
 0x9dd   : > { %v3497_v17 = vpop.xlane.xlu0 %3496 }
 0x9de   : > { %5155 = vrcp.f32 %v3497_v17 }
 0x9df   : > { %v3491_v49 = vpop.xlane.xlu1 %3490 }
 0x9e0   : > { %5157 = vrcp.f32 %v3491_v49  ;;  %v5152_v57 = vpop.eup %5151 }
 0x9e1   : > { %v3503_v56 = vpop.xlane.xlu0 %3502 }
 0x9e2   : > { %5159 = vrcp.f32 %v3503_v56 }
 0x9e3   : > { %v3500_v52 = vpop.xlane.xlu1 %3499 }
 0x9e4   : > { %5161 = vrcp.f32 %v3500_v52  ;;  %v5154_v40 = vpop.eup %5153 }
 0x9e5   : > { %v3509_v14 = vpop.xlane.xlu0 %3508 }
 0x9e6   : > { %5163 = vrcp.f32 %v3509_v14 }
 0x9e7   : > { %v3506_v62 = vpop.xlane.xlu1 %3505 }
 0x9e8   : > { %5165 = vrcp.f32 %v3506_v62  ;;  %v5156_v39 = vpop.eup %5155 }
 0x9ea   : > { %v5158_v30 = vpop.eup %5157 }
 0x9ec   : > { %v5160_v37 = vpop.eup %5159 }
 0x9ee   : > { %v5162_v19 = vpop.eup %5161 }
 0x9f0   : > { %v5164_v2 = vpop.eup %5163 }
 0x9f2   : > { %v5166_v10 = vpop.eup %5165 }
 0xa38   : > { %v3512_v46 = vpop.xlane.xlu1 %3511 }
 0xa39   : > { %5167 = vrcp.f32 %v3512_v46  ;;  %v4247_v46 = vld [vmem:[%s7013_s4] ss:$0 sm:$0xff] }
 0xa3a   : > { %v3515_v55 = vpop.xlane.xlu0 %3514 }
 0xa3c   : > { %v3518_v26 = vpop.xlane.xlu1 %3517 }
 0xa3d   : > { %5169 = vrcp.f32 %v3518_v26 }
 0xa3e   : > { %v3521_v9 = vpop.xlane.xlu0 %3520 }
 0xa3f   : > { %5171 = vrcp.f32 %v3521_v9 }
 0xa40   : > { %v3524_v45 = vpop.xlane.xlu1 %3523  ;;  %5173 = vrcp.f32 %v3515_v55 }
 0xa41   : > { %5175 = vrcp.f32 %v3524_v45 }
 0xa42   : > { %v3527_v16 = vpop.xlane.xlu0 %3526 }
 0xa43   : > { %v5168_v58 = vpop.eup %5167 }
 0xa44   : > { %v3530_v36 = vpop.xlane.xlu1 %3529 }
 0xa45   : > { %5177 = vrcp.f32 %v3530_v36 }
 0xa46   : > { %v3533_v32 = vpop.xlane.xlu0 %3532 }
 0xa47   : > { %5179 = vrcp.f32 %v3533_v32  ;;  %v5170_v50 = vpop.eup %5169 }
 0xa48   : > { %5181 = vrcp.f32 %v3527_v16 }
 0xa49   : > { %v5172_v21 = vpop.eup %5171 }
 0xa4a   : > { %v5174_v43 = vpop.eup %5173 }
 0xa4b   : > { %v5176_v27 = vpop.eup %5175 }
 0xa4f   : > { %v5178_v28 = vpop.eup %5177 }
 0xa51   : > { %v5180_v33 = vpop.eup %5179 }
 0xa52   : > { %v5182_v53 = vpop.eup %5181 }
 0xa78   : > { %v4706_v47 = vpop.f32.mrb[64].mxu1 }
 0xa79   : > { %v3588_v15 = vpop.f32.mrb[65].mxu1  ;;  %v3804_v20 = vmul.f32 %v5154_v40, %v4706_v47 }
 0xa7a   : > { %v4707_v34 = vpop.f32.mrb[66].mxu1  ;;  %v3802_v25 = vmul.f32 %v5152_v57, %v3588_v15 }
 0xa7b   : > { %v3805_v7 = vmul.f32 %v5156_v39, %v4707_v34  ;;  %v3591_v1 = vpop.f32.mrb[67].mxu1 }
 0xa7c   : > { %v3803_v44 = vmul.f32 %v5158_v30, %v3591_v1 }
 0xa7d   : > { %v3819_v60 = vpack.c.bf16 %v3805_v7, %v3804_v20 }
 0xa7e   : > { %v3818_v3 = vpack.c.bf16 %v3803_v44, %v3802_v25 }
 0xa80   : > { %v4714_v38 = vpop.f32.mrb[68].mxu1  ;;  %4734 = vmatprep.mubr.msk.bf16.mxu1 %vm531_vm1, %v3818_v3 }
 0xa81   : > { %v3649_v41 = vpop.f32.mrb[69].mxu1  ;;  %4735 = vmatmul.mubr.msk.bf16.vlgmr.msra.gmra.mrb[36].mxu1 %vm531_vm1, %v3819_v60  ;;  %v3808_v11 = vmul.f32 %v5166_v10, %v4714_v38 }
 0xa82   : > { %v4715_v35 = vpop.f32.mrb[70].mxu1  ;;  %v3806_v54 = vmul.f32 %v5162_v19, %v3649_v41 }
 0xa83   : > { %v3809_v23 = vmul.f32 %v5164_v2, %v4715_v35  ;;  %v4722_v59 = vpop.f32.mrb[96].mxu0  ;;  %v3652_v31 = vpop.f32.mrb[71].mxu1 }
 0xa84   : > { %v3807_v12 = vmul.f32 %v5160_v37, %v3652_v31  ;;  %v3710_v48 = vpop.f32.mrb[97].mxu0  ;;  %v3812_v61 = vmul.f32 %v5170_v50, %v4722_v59 }
 0xa85   : > { %v3821_v51 = vpack.c.bf16 %v3809_v23, %v3808_v11  ;;  %v4723_v29 = vpop.f32.mrb[98].mxu0  ;;  %v3810_v22 = vmul.f32 %v5168_v58, %v3710_v48 }
 0xa86   : > { %v3820_v5 = vpack.c.bf16 %v3807_v12, %v3806_v54  ;;  %v3813_v42 = vmul.f32 %v5172_v21, %v4723_v29  ;;  %v3713_v24 = vpop.f32.mrb[99].mxu0 }
 0xa87   : > { %v3811_v4 = vmul.f32 %v5174_v43, %v3713_v24 }
 0xa88   : > { %v3823_v63 = vpack.c.bf16 %v3813_v42, %v3812_v61  ;;  %v4730_v18 = vpop.f32.mrb[72].mxu1  ;;  %4738 = vmatprep.mubr.msk.bf16.mxu1 %vm531_vm1, %v3820_v5 }
 0xa89   : > { %v3822_v13 = vpack.c.bf16 %v3811_v4, %v3810_v22  ;;  %v3771_v0 = vpop.f32.mrb[73].mxu1  ;;  %4739 = vmatmul.mubr.msk.bf16.gmra.mrb[40].mxu1 %vm531_vm1, %v3821_v51  ;;  %v3816_v8 = vmul.f32 %v5178_v28, %v4730_v18 }
 0xa8a   : > { %v4731_v6 = vpop.f32.mrb[74].mxu1  ;;  %v3814_v52 = vmul.f32 %v5176_v27, %v3771_v0 }
 0xa8b   : > { %v3817_v49 = vmul.f32 %v5180_v33, %v4731_v6  ;;  %4742 = vmatprep.mubr.msk.bf16.mxu1 %vm531_vm1, %v3822_v13  ;;  %v3774_v17 = vpop.f32.mrb[75].mxu1 }
 0xa8c   : > { %v3815_v56 = vmul.f32 %v5182_v53, %v3774_v17 }
 0xa8d   : > { %v3825_v62 = vpack.c.bf16 %v3817_v49, %v3816_v8 }
 0xa8e   : > { %v3824_v14 = vpack.c.bf16 %v3815_v56, %v3814_v52 }
 0xa91   : > { %4743 = vmatmul.mubr.msk.bf16.gmra.mrb[44].mxu1 %vm531_vm1, %v3823_v63 }
 0xa92   : > { %4746 = vmatprep.mubr.msk.bf16.mxu1 %vm531_vm1, %v3824_v14 }
 0xa99   : > { %4747 = vmatmul.mubr.msk.bf16.gmra.mrb[48].mxu1 %vm531_vm1, %v3825_v62 }
 0xb54   : > { %v4736_v55 = vpop.f32.mrb[36].mxu1 }
 0xb55   : > { %v3980_v26 = vadd.f32 %v4736_v55, %v4247_v46  ;;  %v3892_v9 = vpop.f32.mrb[37].mxu1 }
 0xb56   : > { %v3978_v45 = vadd.f32 %v4247_v46, %v3892_v9  ;;  %v4737_v16 = vpop.f32.mrb[38].mxu1 }
 0xb57   : > { %3996 = vst.msk [vmem:[%s6924_s9 + $0x10] sm:$0xff] %vm360_vm0, %v3980_v26  ;;  %v3981_v57 = vadd.f32 %v4737_v16, %v4247_v46  ;;  %v3895_v47 = vpop.f32.mrb[39].mxu1 }
 0xb58   : > { %3994 = vst.msk [vmem:[%s6924_s9] sm:$0xff] %vm360_vm0, %v3978_v45  ;;  %v3979_v40 = vadd.f32 %v4247_v46, %v3895_v47 }
 0xb59   : > { %3997 = vst.msk [vmem:[%s6924_s9 + $0x18] sm:$0xff] %vm360_vm0, %v3981_v57 }
 0xb5a   : > { %3995 = vst.msk [vmem:[%s6924_s9 + $0x8] sm:$0xff] %vm360_vm0, %v3979_v40 }
 0xb5c   : > { %v4740_v15 = vpop.f32.mrb[40].mxu1 }
 0xb5d   : > { %v3984_v39 = vadd.f32 %v4740_v15, %v4247_v46  ;;  %v3908_v34 = vpop.f32.mrb[41].mxu1 }
 0xb5e   : > { %v3982_v30 = vadd.f32 %v4247_v46, %v3908_v34  ;;  %v4741_v20 = vpop.f32.mrb[42].mxu1 }
 0xb5f   : > { %4000 = vst.msk [vmem:[%s6924_s9 + $0x30] sm:$0xff] %vm360_vm0, %v3984_v39  ;;  %v3985_v7 = vadd.f32 %v4741_v20, %v4247_v46  ;;  %v3911_v1 = vpop.f32.mrb[43].mxu1 }
 0xb60   : > { %3998 = vst.msk [vmem:[%s6924_s9 + $0x20] sm:$0xff] %vm360_vm0, %v3982_v30  ;;  %v3983_v36 = vadd.f32 %v4247_v46, %v3911_v1 }
 0xb61   : > { %4001 = vst.msk [vmem:[%s6924_s9 + $0x38] sm:$0xff] %vm360_vm0, %v3985_v7 }
 0xb62   : > { %3999 = vst.msk [vmem:[%s6924_s9 + $0x28] sm:$0xff] %vm360_vm0, %v3983_v36 }
 0xb64   : > { %v4744_v25 = vpop.f32.mrb[44].mxu1 }
 0xb65   : > { %v3988_v44 = vadd.f32 %v4744_v25, %v4247_v46  ;;  %v3924_v32 = vpop.f32.mrb[45].mxu1 }
 0xb66   : > { %v3986_v60 = vadd.f32 %v4247_v46, %v3924_v32  ;;  %v4745_v3 = vpop.f32.mrb[46].mxu1 }
 0xb67   : > { %4004 = vst.msk [vmem:[%s6924_s9 + $0x50] sm:$0xff] %vm360_vm0, %v3988_v44  ;;  %v3989_v37 = vadd.f32 %v4745_v3, %v4247_v46  ;;  %v3927_v19 = vpop.f32.mrb[47].mxu1 }
 0xb68   : > { %4002 = vst.msk [vmem:[%s6924_s9 + $0x40] sm:$0xff] %vm360_vm0, %v3986_v60  ;;  %v3987_v38 = vadd.f32 %v4247_v46, %v3927_v19 }
 0xb69   : > { %4005 = vst.msk [vmem:[%s6924_s9 + $0x58] sm:$0xff] %vm360_vm0, %v3989_v37 }
 0xb6a   : > { %4003 = vst.msk [vmem:[%s6924_s9 + $0x48] sm:$0xff] %vm360_vm0, %v3987_v38 }
 0xb6c   : > { %v4748_v2 = vpop.f32.mrb[48].mxu1 }
 0xb6d   : > { %v3992_v41 = vadd.f32 %v4748_v2, %v4247_v46  ;;  %v3940_v10 = vpop.f32.mrb[49].mxu1 }
 0xb6e   : > { %v3990_v35 = vadd.f32 %v4247_v46, %v3940_v10  ;;  %v4749_v58 = vpop.f32.mrb[50].mxu1 }
 0xb6f   : > { %4008 = vst.msk [vmem:[%s6924_s9 + $0x70] sm:$0xff] %vm360_vm0, %v3992_v41  ;;  %v3993_v11 = vadd.f32 %v4749_v58, %v4247_v46  ;;  %v3943_v23 = vpop.f32.mrb[51].mxu1 }
 0xb70   : > { %4006 = vst.msk [vmem:[%s6924_s9 + $0x60] sm:$0xff] %vm360_vm0, %v3990_v35  ;;  %v3991_v59 = vadd.f32 %v4247_v46, %v3943_v23 }
 0xb71   : > { %4009 = vst.msk [vmem:[%s6924_s9 + $0x78] sm:$0xff] %vm360_vm0, %v3993_v11 }
 0xb72   : > { %4007 = vst.msk [vmem:[%s6924_s9 + $0x68] sm:$0xff] %vm360_vm0, %v3991_v59 }
 0xb73   : > { %5282 = shalt.err (!%p5279_p1)
}
 0xb74   : > { %s5283_s17 = scalar_lea.hbm %s6957_s26, 2048  ;;  %s5287_s12 = scalar_lea.hbm %s7014_s5, 4096 }
 0xb75   : > { %p5284_p13 = scmp.ne.s32.totalorder %s6957_s26, %s5283_s17  ;;  %p5288_p4 = scmp.lt.u32.totalorder %s6957_s26, %s7014_s5 }
 0xb76   : > { %p5289_p7 = scmp.lt.u32.totalorder %s5287_s12, %s5283_s17  ;;  %p5291_p11 = scmp.lt.u32.totalorder %s5283_s17, %s6957_s26 }
 0xb77   : > { %p5285_p6 = pnand %p5284_p13, %p7136_p0 }
 0xb78   : > { %p5290_p8 = por %p5289_p7, %p5288_p4 }
 0xb79   : > { %p5286_p10 = pneg %p5285_p6 }
 0xb7a   : > { %p5292_p2 = por %p5291_p11, %p5290_p8 }
 0xb7c   : > { %p5293_p3 = pnand %p5292_p2, %p5286_p10 }
 0xb7e   : > { %5296 = shalt.err (!%p5293_p3)
}
 0xb7f   : > { %s5357_s6 = smov 128   ;;  %s5358_s14 = smov 8  }
 0xb80   : > { %4840 = dma.vmem_to_hbm [thread:$0]  (%p7136_p0), %s6959_s10, 2048, %s6957_s26, %s4011_s22, %s5357_s6, %s5357_s6, %s5358_s14  }
 0xb81 PF: > { %s4040_s24 = sand.u32 1, %s5327_s18   ;;  %p7137_p5 = scmp.ne.s32.totalorder %s7051_s25, 0 }
 0xb82   : > { %p7138_p9 = scmp.ge.s32.totalorder %s5339_s21, 2  ;;  %s4041_s15 = scalar_lea.sflag [#allocation4], %s4040_s24 }
 0xb84   : > { %p4854_p12 = pnand %p7138_p9, %p7137_p5 }
 0xb86   : > { %5322 = dma.done.wait (!%p4854_p12), %s4041_s15, 2048  }
 0xb87   : > { %5324 = vsyncadd (!%p4854_p12), %s4041_s15, 4294965248  ;;  %p19_p1 = scmp.ge.s32.totalorder %s5502_s23, 4   ;;  %s7139_s18 = smov %s5331_s19 }
 0xb88   : > { %s7140_s19 = smov %s5335_s20  ;;  %s7141_s20 = smov %s5511_s7 }
 0xb89   : > { %s7142_s21 = smov %s5502_s23  ;;  %21 = sbr.rel (!%p19_p1) target bundleno = 6 (0x6), region = 93 }
 0xb90   :  { %4046 = vsyncpa [#allocation3], 1 }
 0xb91   :  { %4048 = vsyncpa [#allocation3 + $0x1], 1 }
 0xb92   :  { %4049 = vsyncpa [#allocation6], 1 }
 0xb93   :  { %4050 = vsyncpa [#allocation4], 1 }
 0xb94   :  { %4052 = vsyncpa [#allocation4 + $0x1], 1 }

</bundles_post_ra>
